<compile_context>
chip_gen: v5e
topology: v5e:2x2
jax: 0.10.0
libtpu: 0.0.40
codegen_flags: <defaults>
</compile_context>

<pallas_src>
import jax
import jax.numpy as jnp
from jax.experimental import pallas as pl
from jax.experimental.pallas import tpu as pltpu

_LANES = 128  # pad the output-channel axis of weights/bias to full lane width


def _round_up(x, m):
    return (x + m - 1) // m * m


# ----------------------------------------------------------------------------
# Pallas kernels
# ----------------------------------------------------------------------------
def _conv_relu_pool_kernel(p_ref, w_ref, b_ref, o_ref):
    """Fused conv (im2col matmul) + 2x2 max-pool + bias + ReLU.

    p_ref: (4, TILE_N, K)   bf16, 4 = positions inside each 2x2 pool window
    w_ref: (K, 128)         bf16, conv weight with Cout zero-padded to 128 lanes
    b_ref: (1, 128)         f32,  bias zero-padded to 128 lanes
    o_ref: (Cout, TILE_N)   f32,  lane-dense (TILE_N on the lane axis)
    """
    npos, tn, k = p_ref.shape           # npos == 4
    cpad = w_ref.shape[1]               # 128
    cout = o_ref.shape[0]

    # One long-M matmul instead of 4 short ones (keeps MXU pipeline full).
    p2d = p_ref[...].reshape(npos * tn, k)
    y = jnp.dot(p2d, w_ref[...], preferred_element_type=jnp.float32)  # (4*TN,128)

    # 2x2 max-pool: 3 VPU maxima over the 4 position groups.
    m = y[0:tn]
    for p in range(1, npos):
        m = jnp.maximum(m, y[p * tn:(p + 1) * tn])

    # Bias + ReLU hoisted out of the pool max (monotonic -> equivalent).
    m = jnp.maximum(m + b_ref[...], 0.0)                              # (TN, 128)

    # Lane-dense store: transpose (TN,128)->(128,TN), keep the real channels.
    o_ref[...] = jnp.transpose(m)[:cout, :]


def _linear_kernel(x_ref, w_ref, b_ref, o_ref):
    """o^T = (x @ w + b)^T, stored lane-dense as (Dout, TILE_B).

    x_ref: (TILE_B, D) bf16, w_ref: (D, 128) bf16 (Dout padded), b_ref: (1, 128) f32
    o_ref: (Dout, TILE_B) f32
    """
    dout = o_ref.shape[0]
    y = jnp.dot(x_ref[...], w_ref[...], preferred_element_type=jnp.float32)
    y = y + b_ref[...]                                                # (TB, 128)
    o_ref[...] = jnp.transpose(y)[:dout, :]


# ----------------------------------------------------------------------------
# JAX glue: pool-grouped im2col on channel-major (C, B, H, W) activations
# ----------------------------------------------------------------------------
def _im2col_pooled(x_cbhw, k=3):
    """3x3 patches (stride 1, pad 1) grouped by 2x2 max-pool window.

    Returns (4, B*Ho*Wo, C*k*k) with patch features ordered (c, ky, kx),
    matching a (Cin, kH, kW, Cout)-flattened conv weight.
    """
    C, B, H, W = x_cbhw.shape
    Ho, Wo = H // 2, W // 2
    xp = jnp.pad(x_cbhw, ((0, 0), (0, 0), (1, 1), (1, 1)))
    taps = [xp[:, :, ky:ky + H, kx:kx + W] for ky in range(k) for kx in range(k)]
    pat = jnp.stack(taps, axis=1)                      # (C, 9, B, H, W)
    pat = pat.reshape(C, k * k, B, Ho, 2, Wo, 2)
    pat = pat.transpose(4, 6, 2, 3, 5, 0, 1)           # (dy, dx, B, Ho, Wo, C, 9)
    return pat.reshape(4, B * Ho * Wo, C * k * k)


# ----------------------------------------------------------------------------
# Layer wrappers
# ----------------------------------------------------------------------------
def conv_relu_pool(x_cbhw, w_oihw, b, *, tile_n=512):
    """One nn.Sequential(Conv2d(3,1,1), ReLU, MaxPool2d(2)) block.

    x_cbhw: (Cin, B, H, W) f32 -> returns (Cout, B, H//2, W//2) f32.
    """
    Cin, B, H, W = x_cbhw.shape
    Cout = w_oihw.shape[0]
    Ho, Wo = H // 2, W // 2

    patches = _im2col_pooled(x_cbhw)                   # (4, N, K) f32
    _, N, K = patches.shape

    tile_n = min(tile_n, _round_up(N, 128))            # keep multiple of 128
    N_pad = _round_up(N, tile_n)
    patches = jnp.pad(patches, ((0, 0), (0, N_pad - N), (0, 0)))
    patches = patches.astype(jnp.bfloat16)             # bf16 MXU operand

    # (Cout, Cin, kH, kW) -> (Cin, kH, kW, Cout) -> (K, Cout) -> pad Cout to 128.
    w_flat = jnp.transpose(w_oihw, (1, 2, 3, 0)).reshape(K, Cout)
    w_flat = jnp.pad(w_flat, ((0, 0), (0, _LANES - Cout))).astype(jnp.bfloat16)
    b_pad = jnp.pad(b.astype(jnp.float32), (0, _LANES - Cout)).reshape(1, _LANES)

    grid = (N_pad // tile_n,)
    cost = pl.CostEstimate(
        flops=2 * 4 * N_pad * K * _LANES,
        transcendentals=0,
        bytes_accessed=patches.size * 2 + w_flat.size * 2 + Cout * N_pad * 4,
    )

    out = pl.pallas_call(
        _conv_relu_pool_kernel,
        out_shape=jax.ShapeDtypeStruct((Cout, N_pad), jnp.float32),
        grid=grid,
        in_specs=[
            pl.BlockSpec((4, tile_n, K), lambda i: (0, i, 0)),
            pl.BlockSpec((K, _LANES), lambda i: (0, 0)),
            pl.BlockSpec((1, _LANES), lambda i: (0, 0)),
        ],
        out_specs=pl.BlockSpec((Cout, tile_n), lambda i: (0, i)),
        compiler_params=pltpu.CompilerParams(
            dimension_semantics=("parallel",),
            vmem_limit_bytes=32 * 1024 * 1024,
        ),
        cost_estimate=cost,
    )(patches, w_flat, b_pad)

    # Drop the N padding; stay channel-major for the next layer.
    return out[:, :N].reshape(Cout, B, Ho, Wo)


def linear(x, w, b, *, tile_b=128):
    """out = x @ w + b, gridded over batch tiles, lane-dense transposed store."""
    B, D = x.shape
    Dout = w.shape[1]

    B_pad = _round_up(B, tile_b)
    x_pad = jnp.pad(x, ((0, B_pad - B), (0, 0))).astype(jnp.bfloat16)
    w_pad = jnp.pad(w, ((0, 0), (0, _LANES - Dout))).astype(jnp.bfloat16)
    b_pad = jnp.pad(b.astype(jnp.float32), (0, _LANES - Dout)).reshape(1, _LANES)

    grid = (B_pad // tile_b,)
    cost = pl.CostEstimate(
        flops=2 * B_pad * D * _LANES,
        transcendentals=0,
        bytes_accessed=x_pad.size * 2 + w_pad.size * 2 + Dout * B_pad * 4,
    )

    out = pl.pallas_call(
        _linear_kernel,
        out_shape=jax.ShapeDtypeStruct((Dout, B_pad), jnp.float32),
        grid=grid,
        in_specs=[
            pl.BlockSpec((tile_b, D), lambda i: (i, 0)),
            pl.BlockSpec((D, _LANES), lambda i: (0, 0)),
            pl.BlockSpec((1, _LANES), lambda i: (0, 0)),
        ],
        out_specs=pl.BlockSpec((Dout, tile_b), lambda i: (0, i)),
        compiler_params=pltpu.CompilerParams(
            dimension_semantics=("parallel",),
            vmem_limit_bytes=32 * 1024 * 1024,
        ),
        cost_estimate=cost,
    )(x_pad, w_pad, b_pad)

    return jnp.transpose(out)[:B]                      # (B, Dout)


# ----------------------------------------------------------------------------
# Full CNN forward (matches the PyTorch module)
# ----------------------------------------------------------------------------
def cnn_forward(x_nchw, params):
    B = x_nchw.shape[0]
    # NCHW -> channel-major (C, B, H, W); free for Cin == 1.
    x = jnp.transpose(x_nchw, (1, 0, 2, 3))                     # (1,  B, 28, 28)
    x = conv_relu_pool(x, params["w1"], params["b1"])           # (16, B, 14, 14)
    x = conv_relu_pool(x, params["w2"], params["b2"])           # (32, B,  7,  7)
    # PyTorch .view flattens per-sample in (C, H, W) order; activations are
    # already channel-major so only the batch axis moves (one small copy),
    # and w3 is used unmodified.
    x = jnp.transpose(x, (1, 0, 2, 3)).reshape(B, -1)           # (B, 1568)
    return linear(x, params["w3"], params["b3"])                # (B, 10)


def init_params(key):
    k1, k2, k3 = jax.random.split(key, 3)
    return dict(
        w1=0.10 * jax.random.normal(k1, (16, 1, 3, 3), jnp.float32),
        b1=jnp.linspace(-0.05, 0.05, 16).astype(jnp.float32),
        w2=0.05 * jax.random.normal(k2, (32, 16, 3, 3), jnp.float32),
        b2=jnp.linspace(-0.05, 0.05, 32).astype(jnp.float32),
        w3=0.02 * jax.random.normal(k3, (32 * 7 * 7, 10), jnp.float32),
        b3=jnp.linspace(-0.10, 0.10, 10).astype(jnp.float32),
    )


# Pure-JAX fp32 reference (correctness assert only).
def cnn_reference(x_nchw, p):
    def block(x, w, b):
        y = jax.lax.conv_general_dilated(
            x, w, (1, 1), ((1, 1), (1, 1)),
            dimension_numbers=("NCHW", "OIHW", "NCHW"))
        y = jnp.maximum(y + b[None, :, None, None], 0.0)
        return jax.lax.reduce_window(
            y, -jnp.inf, jax.lax.max, (1, 1, 2, 2), (1, 1, 2, 2), "VALID")

    y = block(x_nchw, p["w1"], p["b1"])
    y = block(y, p["w2"], p["b2"])
    y = y.reshape(y.shape[0], -1)
    return y @ p["w3"] + p["b3"]


if __name__ == "__main__":
    key = jax.random.PRNGKey(0)
    kx, kp = jax.random.split(key)
    # Linear(32*7*7, 10) implies 28x28 spatial input with 1 channel.
    x = jax.random.normal(kx, (2, 1, 28, 28), jnp.float32)
    params = init_params(kp)

    out = jax.block_until_ready(jax.jit(cnn_forward)(x, params))
    ref = cnn_reference(x, params)

    assert out.shape == (2, 10), out.shape
    # bf16 MXU operands (fp32 accumulation) -> relaxed tolerance vs fp32 reference.
    assert jnp.allclose(out, ref, atol=3e-2, rtol=3e-2), "mismatch vs reference"
    print("KERNEL_OK")
</pallas_src>

<mosaic_0001>
module attributes {stable_mosaic.version = 11 : i64} {
  func.func @_conv_relu_pool_kernel(%arg0: i32, %arg1: memref<4x512x9xbf16, #tpu.memory_space<vmem>>, %arg2: memref<9x128xbf16, #tpu.memory_space<vmem>>, %arg3: memref<1x128xf32, #tpu.memory_space<vmem>>, %arg4: memref<16x512xf32, #tpu.memory_space<vmem>>) attributes {dimension_semantics = [#tpu.dimension_semantics<parallel>], iteration_bounds = array<i64: 1>, scalar_prefetch = 0 : i64, scratch_operands = 0 : i64, tpu.core_type = #tpu.core_type<tc>, window_params = [{transform_indices = @transform_0, window_bounds = array<i64: 4, 512, 9>}, {pipeline_mode = #tpu.pipeline_mode<synchronous>, transform_indices = @transform_1, window_bounds = array<i64: 9, 128>}, {pipeline_mode = #tpu.pipeline_mode<synchronous>, transform_indices = @transform_2, window_bounds = array<i64: 1, 128>}, {transform_indices = @transform_3, window_bounds = array<i64: 16, 512>}]} {
    %c0 = arith.constant 0 : index
    %c0_0 = arith.constant 0 : index
    %c0_1 = arith.constant 0 : index
    %0 = vector.load %arg1[%c0, %c0_0, %c0_1] : memref<4x512x9xbf16, #tpu.memory_space<vmem>>, vector<4x512x9xbf16>
    %1 = vector.shape_cast %0 : vector<4x512x9xbf16> to vector<2048x9xbf16>
    %c0_2 = arith.constant 0 : index
    %c0_3 = arith.constant 0 : index
    %2 = vector.load %arg2[%c0_2, %c0_3] : memref<9x128xbf16, #tpu.memory_space<vmem>>, vector<9x128xbf16>
    %cst = arith.constant dense<0.000000e+00> : vector<2048x128xf32>
    %3 = tpu.matmul %1, %2, %cst {dimension_numbers = #tpu.dot_dimension_numbers<[1], [0], [0], [1], [0, 0, 1, 1], [], []>} : vector<2048x9xbf16>, vector<9x128xbf16>, vector<2048x128xf32> -> vector<2048x128xf32>
    %4 = vector.extract_strided_slice %3 {offsets = [0, 0], sizes = [512, 128], strides = [1, 1]} : vector<2048x128xf32> to vector<512x128xf32>
    %5 = vector.extract_strided_slice %3 {offsets = [512, 0], sizes = [512, 128], strides = [1, 1]} : vector<2048x128xf32> to vector<512x128xf32>
    %6 = arith.maximumf %4, %5 : vector<512x128xf32>
    %7 = vector.extract_strided_slice %3 {offsets = [1024, 0], sizes = [512, 128], strides = [1, 1]} : vector<2048x128xf32> to vector<512x128xf32>
    %8 = arith.maximumf %6, %7 : vector<512x128xf32>
    %9 = vector.extract_strided_slice %3 {offsets = [1536, 0], sizes = [512, 128], strides = [1, 1]} : vector<2048x128xf32> to vector<512x128xf32>
    %10 = arith.maximumf %8, %9 : vector<512x128xf32>
    %c0_4 = arith.constant 0 : index
    %c0_5 = arith.constant 0 : index
    %11 = vector.load %arg3[%c0_4, %c0_5] : memref<1x128xf32, #tpu.memory_space<vmem>>, vector<1x128xf32>
    %12 = vector.broadcast %11 : vector<1x128xf32> to vector<512x128xf32>
    %13 = arith.addf %10, %12 : vector<512x128xf32>
    %cst_6 = arith.constant 0.000000e+00 : f32
    %14 = vector.broadcast %cst_6 : f32 to vector<512x128xf32>
    %15 = arith.maximumf %13, %14 : vector<512x128xf32>
    %16 = tpu.transpose %15, [1, 0] : vector<512x128xf32> -> vector<128x512xf32>
    %17 = vector.extract_strided_slice %16 {offsets = [0, 0], sizes = [16, 512], strides = [1, 1]} : vector<128x512xf32> to vector<16x512xf32>
    %c0_7 = arith.constant 0 : index
    %c0_8 = arith.constant 0 : index
    %18 = vector.load %arg4[%c0_7, %c0_8] : memref<16x512xf32, #tpu.memory_space<vmem>>, vector<16x512xf32>
    tpu.vector_store %arg4[%c0_7, %c0_8], %17 {strides = array<i32>} : memref<16x512xf32, #tpu.memory_space<vmem>>, vector<16x512xf32>,
    return
  }
  func.func @transform_0(%arg0: i32) -> (i32, i32, i32) {
    %c0_i32 = arith.constant 0 : i32
    %c0_i32_0 = arith.constant 0 : i32
    %c0_i32_1 = arith.constant 0 : i32
    return %c0_i32, %arg0, %c0_i32_0 : i32, i32, i32
  }
  func.func @transform_1(%arg0: i32) -> (i32, i32) {
    %c0_i32 = arith.constant 0 : i32
    %c0_i32_0 = arith.constant 0 : i32
    %c0_i32_1 = arith.constant 0 : i32
    return %c0_i32, %c0_i32_0 : i32, i32
  }
  func.func @transform_2(%arg0: i32) -> (i32, i32) {
    %c0_i32 = arith.constant 0 : i32
    %c0_i32_0 = arith.constant 0 : i32
    %c0_i32_1 = arith.constant 0 : i32
    return %c0_i32, %c0_i32_0 : i32, i32
  }
  func.func @transform_3(%arg0: i32) -> (i32, i32) {
    %c0_i32 = arith.constant 0 : i32
    %c0_i32_0 = arith.constant 0 : i32
    return %c0_i32, %arg0 : i32, i32
  }
}

module attributes {stable_mosaic.version = 11 : i64} {
  func.func @_conv_relu_pool_kernel(%arg0: i32, %arg1: memref<4x128x144xbf16, #tpu.memory_space<vmem>>, %arg2: memref<144x128xbf16, #tpu.memory_space<vmem>>, %arg3: memref<1x128xf32, #tpu.memory_space<vmem>>, %arg4: memref<32x128xf32, #tpu.memory_space<vmem>>) attributes {dimension_semantics = [#tpu.dimension_semantics<parallel>], iteration_bounds = array<i64: 1>, scalar_prefetch = 0 : i64, scratch_operands = 0 : i64, tpu.core_type = #tpu.core_type<tc>, window_params = [{transform_indices = @transform_0, window_bounds = array<i64: 4, 128, 144>}, {pipeline_mode = #tpu.pipeline_mode<synchronous>, transform_indices = @transform_1, window_bounds = array<i64: 144, 128>}, {pipeline_mode = #tpu.pipeline_mode<synchronous>, transform_indices = @transform_2, window_bounds = array<i64: 1, 128>}, {transform_indices = @transform_3, window_bounds = array<i64: 32, 128>}]} {
    %c0 = arith.constant 0 : index
    %c0_0 = arith.constant 0 : index
    %c0_1 = arith.constant 0 : index
    %0 = vector.load %arg1[%c0, %c0_0, %c0_1] : memref<4x128x144xbf16, #tpu.memory_space<vmem>>, vector<4x128x144xbf16>
    %1 = vector.shape_cast %0 : vector<4x128x144xbf16> to vector<512x144xbf16>
    %c0_2 = arith.constant 0 : index
    %c0_3 = arith.constant 0 : index
    %2 = vector.load %arg2[%c0_2, %c0_3] : memref<144x128xbf16, #tpu.memory_space<vmem>>, vector<144x128xbf16>
    %cst = arith.constant dense<0.000000e+00> : vector<512x128xf32>
    %3 = tpu.matmul %1, %2, %cst {dimension_numbers = #tpu.dot_dimension_numbers<[1], [0], [0], [1], [0, 0, 1, 1], [], []>} : vector<512x144xbf16>, vector<144x128xbf16>, vector<512x128xf32> -> vector<512x128xf32>
    %4 = vector.extract_strided_slice %3 {offsets = [0, 0], sizes = [128, 128], strides = [1, 1]} : vector<512x128xf32> to vector<128x128xf32>
    %5 = vector.extract_strided_slice %3 {offsets = [128, 0], sizes = [128, 128], strides = [1, 1]} : vector<512x128xf32> to vector<128x128xf32>
    %6 = arith.maximumf %4, %5 : vector<128x128xf32>
    %7 = vector.extract_strided_slice %3 {offsets = [256, 0], sizes = [128, 128], strides = [1, 1]} : vector<512x128xf32> to vector<128x128xf32>
    %8 = arith.maximumf %6, %7 : vector<128x128xf32>
    %9 = vector.extract_strided_slice %3 {offsets = [384, 0], sizes = [128, 128], strides = [1, 1]} : vector<512x128xf32> to vector<128x128xf32>
    %10 = arith.maximumf %8, %9 : vector<128x128xf32>
    %c0_4 = arith.constant 0 : index
    %c0_5 = arith.constant 0 : index
    %11 = vector.load %arg3[%c0_4, %c0_5] : memref<1x128xf32, #tpu.memory_space<vmem>>, vector<1x128xf32>
    %12 = vector.broadcast %11 : vector<1x128xf32> to vector<128x128xf32>
    %13 = arith.addf %10, %12 : vector<128x128xf32>
    %cst_6 = arith.constant 0.000000e+00 : f32
    %14 = vector.broadcast %cst_6 : f32 to vector<128x128xf32>
    %15 = arith.maximumf %13, %14 : vector<128x128xf32>
    %16 = tpu.transpose %15, [1, 0] : vector<128x128xf32> -> vector<128x128xf32>
    %17 = vector.extract_strided_slice %16 {offsets = [0, 0], sizes = [32, 128], strides = [1, 1]} : vector<128x128xf32> to vector<32x128xf32>
    %c0_7 = arith.constant 0 : index
    %c0_8 = arith.constant 0 : index
    %18 = vector.load %arg4[%c0_7, %c0_8] : memref<32x128xf32, #tpu.memory_space<vmem>>, vector<32x128xf32>
    tpu.vector_store %arg4[%c0_7, %c0_8], %17 {strides = array<i32>} : memref<32x128xf32, #tpu.memory_space<vmem>>, vector<32x128xf32>,
    return
  }
  func.func @transform_0(%arg0: i32) -> (i32, i32, i32) {
    %c0_i32 = arith.constant 0 : i32
    %c0_i32_0 = arith.constant 0 : i32
    %c0_i32_1 = arith.constant 0 : i32
    return %c0_i32, %arg0, %c0_i32_0 : i32, i32, i32
  }
  func.func @transform_1(%arg0: i32) -> (i32, i32) {
    %c0_i32 = arith.constant 0 : i32
    %c0_i32_0 = arith.constant 0 : i32
    %c0_i32_1 = arith.constant 0 : i32
    return %c0_i32, %c0_i32_0 : i32, i32
  }
  func.func @transform_2(%arg0: i32) -> (i32, i32) {
    %c0_i32 = arith.constant 0 : i32
    %c0_i32_0 = arith.constant 0 : i32
    %c0_i32_1 = arith.constant 0 : i32
    return %c0_i32, %c0_i32_0 : i32, i32
  }
  func.func @transform_3(%arg0: i32) -> (i32, i32) {
    %c0_i32 = arith.constant 0 : i32
    %c0_i32_0 = arith.constant 0 : i32
    return %c0_i32, %arg0 : i32, i32
  }
}

module attributes {stable_mosaic.version = 11 : i64} {
  func.func @_linear_kernel(%arg0: i32, %arg1: memref<128x1568xbf16, #tpu.memory_space<vmem>>, %arg2: memref<1568x128xbf16, #tpu.memory_space<vmem>>, %arg3: memref<1x128xf32, #tpu.memory_space<vmem>>, %arg4: memref<10x128xf32, #tpu.memory_space<vmem>>) attributes {dimension_semantics = [#tpu.dimension_semantics<parallel>], iteration_bounds = array<i64: 1>, scalar_prefetch = 0 : i64, scratch_operands = 0 : i64, tpu.core_type = #tpu.core_type<tc>, window_params = [{transform_indices = @transform_0, window_bounds = array<i64: 128, 1568>}, {pipeline_mode = #tpu.pipeline_mode<synchronous>, transform_indices = @transform_1, window_bounds = array<i64: 1568, 128>}, {pipeline_mode = #tpu.pipeline_mode<synchronous>, transform_indices = @transform_2, window_bounds = array<i64: 1, 128>}, {transform_indices = @transform_3, window_bounds = array<i64: 10, 128>}]} {
    %c0 = arith.constant 0 : index
    %c0_0 = arith.constant 0 : index
    %0 = vector.load %arg1[%c0, %c0_0] : memref<128x1568xbf16, #tpu.memory_space<vmem>>, vector<128x1568xbf16>
    %c0_1 = arith.constant 0 : index
    %c0_2 = arith.constant 0 : index
    %1 = vector.load %arg2[%c0_1, %c0_2] : memref<1568x128xbf16, #tpu.memory_space<vmem>>, vector<1568x128xbf16>
    %cst = arith.constant dense<0.000000e+00> : vector<128x128xf32>
    %2 = tpu.matmul %0, %1, %cst {dimension_numbers = #tpu.dot_dimension_numbers<[1], [0], [0], [1], [0, 0, 1, 1], [], []>} : vector<128x1568xbf16>, vector<1568x128xbf16>, vector<128x128xf32> -> vector<128x128xf32>
    %c0_3 = arith.constant 0 : index
    %c0_4 = arith.constant 0 : index
    %3 = vector.load %arg3[%c0_3, %c0_4] : memref<1x128xf32, #tpu.memory_space<vmem>>, vector<1x128xf32>
    %4 = vector.broadcast %3 : vector<1x128xf32> to vector<128x128xf32>
    %5 = arith.addf %2, %4 : vector<128x128xf32>
    %6 = tpu.transpose %5, [1, 0] : vector<128x128xf32> -> vector<128x128xf32>
    %7 = vector.extract_strided_slice %6 {offsets = [0, 0], sizes = [10, 128], strides = [1, 1]} : vector<128x128xf32> to vector<10x128xf32>
    %c0_5 = arith.constant 0 : index
    %c0_6 = arith.constant 0 : index
    %8 = vector.load %arg4[%c0_5, %c0_6] : memref<10x128xf32, #tpu.memory_space<vmem>>, vector<10x128xf32>
    tpu.vector_store %arg4[%c0_5, %c0_6], %7 {strides = array<i32>} : memref<10x128xf32, #tpu.memory_space<vmem>>, vector<10x128xf32>,
    return
  }
  func.func @transform_0(%arg0: i32) -> (i32, i32) {
    %c0_i32 = arith.constant 0 : i32
    %c0_i32_0 = arith.constant 0 : i32
    return %arg0, %c0_i32 : i32, i32
  }
  func.func @transform_1(%arg0: i32) -> (i32, i32) {
    %c0_i32 = arith.constant 0 : i32
    %c0_i32_0 = arith.constant 0 : i32
    %c0_i32_1 = arith.constant 0 : i32
    return %c0_i32, %c0_i32_0 : i32, i32
  }
  func.func @transform_2(%arg0: i32) -> (i32, i32) {
    %c0_i32 = arith.constant 0 : i32
    %c0_i32_0 = arith.constant 0 : i32
    %c0_i32_1 = arith.constant 0 : i32
    return %c0_i32, %c0_i32_0 : i32, i32
  }
  func.func @transform_3(%arg0: i32) -> (i32, i32) {
    %c0_i32 = arith.constant 0 : i32
    %c0_i32_0 = arith.constant 0 : i32
    return %c0_i32, %arg0 : i32, i32
  }
}

</mosaic_0001>

<bundles_post_ra>
// kernel: cnn_forward.3
= control target key start
LH: loop header
LB: loop body
LE: loop exit
PB: predicated region body
PF: predicated region fallthrough
CT: control target
= control target key end

     0   :  { %vm1303_vm0 = vcmask 1043456   ;;  %vm1304_vm1 = vcmask 1044480   ;;  %v3202_v2 = vmov 65535   ;;  %vm918_vm2 = vcmask 72704   ;;  %s3839_s1 = inlined_call_operand.vmem [shape: bf16[9,128], index: 1, kind: input, shape index: {}]   ;;  %s3840_s0 = inlined_call_operand.vmem [shape: bf16[4,512,9], index: 0, kind: input, shape index: {}]   ;;  %s3841_s2 = inlined_call_operand.vmem [shape: f32[1,128], index: 2, kind: input, shape index: {}]   ;;  %s3842_s3 = inlined_call_operand.vmem [shape: f32[16,512], index: 3, kind: output, shape index: {}]  }
   0x1   :  { %v2937_v0 = vld [vmem:[%s3839_s1] sm:$0xf]  ;;  %v3195_v1 = vld [vmem:[%s3839_s1] sm:$0x10]  ;;  %v1305_v3 = vsel %vm1303_vm0, 4294967295, %v3202_v2  ;;  %v3068_v11 = vld [vmem:[%s3840_s0 + $0x8] sm:$0xff] }
   0x2   :  { %v2938_v4 = vor.u32 %v3195_v1, %v2937_v0  ;;  %v1306_v5 = vsel %vm1304_vm1, %v1305_v3, 0  ;;  %v3067_v7 = vld [vmem:[%s3840_s0] sm:$0xff]  ;;  %v3100_v12 = vld [vmem:[%s3840_s0 + $0x108] sm:$0xff]  ;;  %v3069_v15 = vld [vmem:[%s3840_s0 + $0x10] sm:$0xff] }
   0x3   :  { %v3099_v8 = vld [vmem:[%s3840_s0 + $0x100] sm:$0xff]  ;;  %v3132_v13 = vld [vmem:[%s3840_s0 + $0x208] sm:$0xff]  ;;  %v3101_v16 = vld [vmem:[%s3840_s0 + $0x110] sm:$0xff] }
   0x4   :  { %v1308_v6 = vand.u32 %v2938_v4, %v1306_v5  ;;  %v3131_v9 = vld [vmem:[%s3840_s0 + $0x200] sm:$0xff]  ;;  %v3164_v14 = vld [vmem:[%s3840_s0 + $0x308] sm:$0xff]  ;;  %v3133_v17 = vld [vmem:[%s3840_s0 + $0x210] sm:$0xff] }
   0x5   :  { %v3163_v10 = vld [vmem:[%s3840_s0 + $0x300] sm:$0xff]  ;;  %v3165_v18 = vld [vmem:[%s3840_s0 + $0x310] sm:$0xff]  ;;  %v3070_v19 = vld [vmem:[%s3840_s0 + $0x18] sm:$0xff] }
   0x6   :  { %1317 = vmatpush.bf16.msra.mxu0 %v1308_v6  ;;  %3196 = vmatpush.bf16.msra.mxu1 %v1308_v6  ;;  %v3102_v20 = vld [vmem:[%s3840_s0 + $0x118] sm:$0xff]  ;;  %v3071_v23 = vld [vmem:[%s3840_s0 + $0x20] sm:$0xff]  ;;  %v3072_v27 = vld [vmem:[%s3840_s0 + $0x28] sm:$0xff] }
   0x7   :  { %3197 = vmatpush.bf16.msra.mxu2 %v1308_v6  ;;  %3198 = vmatpush.bf16.msra.mxu3 %v1308_v6  ;;  %v3134_v21 = vld [vmem:[%s3840_s0 + $0x218] sm:$0xff]  ;;  %v3103_v24 = vld [vmem:[%s3840_s0 + $0x120] sm:$0xff]  ;;  %v3104_v28 = vld [vmem:[%s3840_s0 + $0x128] sm:$0xff] }
   0x8   :  { %v3166_v22 = vld [vmem:[%s3840_s0 + $0x318] sm:$0xff]  ;;  %v3135_v25 = vld [vmem:[%s3840_s0 + $0x220] sm:$0xff]  ;;  %v3136_v29 = vld [vmem:[%s3840_s0 + $0x228] sm:$0xff] }
   0x9   :  { %2939 = vmatmul.msk.bf16.vlgmr.msra.gmra.mxu0 %vm918_vm2, %v3067_v7  ;;  %2971 = vmatmul.msk.bf16.vlgmr.msra.gmra.mxu1 %vm918_vm2, %v3099_v8  ;;  %v3167_v26 = vld [vmem:[%s3840_s0 + $0x320] sm:$0xff]  ;;  %v3168_v30 = vld [vmem:[%s3840_s0 + $0x328] sm:$0xff]  ;;  %v3073_v31 = vld [vmem:[%s3840_s0 + $0x30] sm:$0xff] }
   0xa   :  { %3003 = vmatmul.msk.bf16.vlgmr.msra.gmra.mxu2 %vm918_vm2, %v3131_v9  ;;  %3035 = vmatmul.msk.bf16.vlgmr.msra.gmra.mxu3 %vm918_vm2, %v3163_v10  ;;  %v3105_v32 = vld [vmem:[%s3840_s0 + $0x130] sm:$0xff]  ;;  %v3074_v35 = vld [vmem:[%s3840_s0 + $0x38] sm:$0xff]  ;;  %v3075_v39 = vld [vmem:[%s3840_s0 + $0x40] sm:$0xff] }
   0xb   :  { %v3137_v33 = vld [vmem:[%s3840_s0 + $0x230] sm:$0xff]  ;;  %v3106_v36 = vld [vmem:[%s3840_s0 + $0x138] sm:$0xff]  ;;  %v3107_v40 = vld [vmem:[%s3840_s0 + $0x140] sm:$0xff] }
   0xc   :  { %v3169_v34 = vld [vmem:[%s3840_s0 + $0x330] sm:$0xff]  ;;  %v3138_v37 = vld [vmem:[%s3840_s0 + $0x238] sm:$0xff]  ;;  %v3139_v43 = vld [vmem:[%s3840_s0 + $0x240] sm:$0xff] }
   0xd   :  { %v3170_v38 = vld [vmem:[%s3840_s0 + $0x338] sm:$0xff]  ;;  %v3171_v44 = vld [vmem:[%s3840_s0 + $0x340] sm:$0xff]  ;;  %v3076_v58 = vld [vmem:[%s3840_s0 + $0x48] sm:$0xff] }
   0xe   :  { %v3376_v51 = vld [vmem:[%s3841_s2] ss:$0 sm:$0xff]  ;;  %v3108_v59 = vld [vmem:[%s3840_s0 + $0x148] sm:$0xff] }
   0xf   :  { %v3140_v63 = vld [vmem:[%s3840_s0 + $0x248] sm:$0xff] }
  0x10   :  { %v3172_v0 = vld [vmem:[%s3840_s0 + $0x348] sm:$0xff] }
  0x19   :  { %2940 = vmatmul.msk.bf16.gmra.mxu0 %vm918_vm2, %v3068_v11  ;;  %2972 = vmatmul.msk.bf16.gmra.mxu1 %vm918_vm2, %v3100_v12 }
  0x1a   :  { %3004 = vmatmul.msk.bf16.gmra.mxu2 %vm918_vm2, %v3132_v13  ;;  %3036 = vmatmul.msk.bf16.gmra.mxu3 %vm918_vm2, %v3164_v14 }
  0x29   :  { %2941 = vmatmul.msk.bf16.gmra.mxu0 %vm918_vm2, %v3069_v15  ;;  %2973 = vmatmul.msk.bf16.gmra.mxu1 %vm918_vm2, %v3101_v16  ;;  %v3077_v16 = vld [vmem:[%s3840_s0 + $0x50] sm:$0xff] }
  0x2a   :  { %3005 = vmatmul.msk.bf16.gmra.mxu2 %vm918_vm2, %v3133_v17  ;;  %3037 = vmatmul.msk.bf16.gmra.mxu3 %vm918_vm2, %v3165_v18  ;;  %v3109_v17 = vld [vmem:[%s3840_s0 + $0x150] sm:$0xff] }
  0x39   :  { %2942 = vmatmul.msk.bf16.gmra.mxu0 %vm918_vm2, %v3070_v19  ;;  %2974 = vmatmul.msk.bf16.gmra.mxu1 %vm918_vm2, %v3102_v20 }
  0x3a   :  { %3006 = vmatmul.msk.bf16.gmra.mxu2 %vm918_vm2, %v3134_v21  ;;  %3038 = vmatmul.msk.bf16.gmra.mxu3 %vm918_vm2, %v3166_v22  ;;  %v3141_v21 = vld [vmem:[%s3840_s0 + $0x250] sm:$0xff] }
  0x3b   :  { %v3173_v22 = vld [vmem:[%s3840_s0 + $0x350] sm:$0xff] }
  0x49   :  { %2943 = vmatmul.msk.bf16.gmra.mxu0 %vm918_vm2, %v3071_v23  ;;  %2975 = vmatmul.msk.bf16.gmra.mxu1 %vm918_vm2, %v3103_v24 }
  0x4a   :  { %3007 = vmatmul.msk.bf16.gmra.mxu2 %vm918_vm2, %v3135_v25  ;;  %3039 = vmatmul.msk.bf16.gmra.mxu3 %vm918_vm2, %v3167_v26 }
  0x59   :  { %2944 = vmatmul.msk.bf16.gmra.mxu0 %vm918_vm2, %v3072_v27  ;;  %2976 = vmatmul.msk.bf16.gmra.mxu1 %vm918_vm2, %v3104_v28 }
  0x5a   :  { %3008 = vmatmul.msk.bf16.gmra.mxu2 %vm918_vm2, %v3136_v29  ;;  %3040 = vmatmul.msk.bf16.gmra.mxu3 %vm918_vm2, %v3168_v30 }
  0x69   :  { %2945 = vmatmul.msk.bf16.gmra.mxu0 %vm918_vm2, %v3073_v31  ;;  %2977 = vmatmul.msk.bf16.gmra.mxu1 %vm918_vm2, %v3105_v32 }
  0x6a   :  { %3009 = vmatmul.msk.bf16.gmra.mxu2 %vm918_vm2, %v3137_v33  ;;  %3041 = vmatmul.msk.bf16.gmra.mxu3 %vm918_vm2, %v3169_v34 }
  0x79   :  { %2946 = vmatmul.msk.bf16.gmra.mxu0 %vm918_vm2, %v3074_v35  ;;  %2978 = vmatmul.msk.bf16.gmra.mxu1 %vm918_vm2, %v3106_v36 }
  0x7a   :  { %3010 = vmatmul.msk.bf16.gmra.mxu2 %vm918_vm2, %v3138_v37  ;;  %3042 = vmatmul.msk.bf16.gmra.mxu3 %vm918_vm2, %v3170_v38  ;;  %v3078_v38 = vld [vmem:[%s3840_s0 + $0x58] sm:$0xff] }
  0x86   :  { %v1319_v41 = vpop.f32.mrf.mxu0  ;;  %v1479_v42 = vpop.f32.mrf.mxu1 }
  0x87   :  { %v1959_v45 = vmax.f32 %v1319_v41, %v1479_v42 }
  0x89   :  { %2947 = vmatmul.msk.bf16.gmra.mxu0 %vm918_vm2, %v3075_v39  ;;  %2979 = vmatmul.msk.bf16.gmra.mxu1 %vm918_vm2, %v3107_v40  ;;  %v3110_v39 = vld [vmem:[%s3840_s0 + $0x158] sm:$0xff] }
  0x8a   :  { %3011 = vmatmul.msk.bf16.gmra.mxu2 %vm918_vm2, %v3139_v43  ;;  %3043 = vmatmul.msk.bf16.gmra.mxu3 %vm918_vm2, %v3171_v44  ;;  %v3142_v43 = vld [vmem:[%s3840_s0 + $0x258] sm:$0xff] }
  0x8b   :  { %v3174_v44 = vld [vmem:[%s3840_s0 + $0x358] sm:$0xff] }
  0x8d   :  { %v1639_v46 = vpop.f32.mrf.mxu2  ;;  %v1799_v47 = vpop.f32.mrf.mxu3 }
  0x8e   :  { %v2023_v48 = vmax.f32 %v1959_v45, %v1639_v46  ;;  %v1321_v49 = vpop.f32.mrf.mxu0  ;;  %v1481_v50 = vpop.f32.mrf.mxu1 }
  0x8f   :  { %v1960_v54 = vmax.f32 %v1321_v49, %v1481_v50 }
  0x90   :  { %v2087_v52 = vmax.f32 %v2023_v48, %v1799_v47 }
  0x92   :  { %v2155_v53 = vadd.f32 %v3376_v51, %v2087_v52 }
  0x94   :  { %v2219_v55 = vmax.f32 %v2155_v53, 0.0 }
  0x95   :  { %v1641_v56 = vpop.f32.mrf.mxu2  ;;  %v1801_v57 = vpop.f32.mrf.mxu3 }
  0x96   :  { %v2024_v60 = vmax.f32 %v1960_v54, %v1641_v56  ;;  %2283 = vxpose.xlu0.b32.start [1/16] (narrow) %v2219_v55, 16  ;;  %v1324_v61 = vpop.f32.mrf.mxu0  ;;  %v1484_v62 = vpop.f32.mrf.mxu1 }
  0x97   :  { %v1961_v2 = vmax.f32 %v1324_v61, %v1484_v62  ;;  %v3079_v61 = vld [vmem:[%s3840_s0 + $0x60] sm:$0xff] }
  0x98   :  { %v2088_v1 = vmax.f32 %v2024_v60, %v1801_v57  ;;  %v3111_v62 = vld [vmem:[%s3840_s0 + $0x160] sm:$0xff] }
  0x99   :  { %2948 = vmatmul.msk.bf16.gmra.mxu0 %vm918_vm2, %v3076_v58  ;;  %2980 = vmatmul.msk.bf16.gmra.mxu1 %vm918_vm2, %v3108_v59 }
  0x9a   :  { %3012 = vmatmul.msk.bf16.gmra.mxu2 %vm918_vm2, %v3140_v63  ;;  %3044 = vmatmul.msk.bf16.gmra.mxu3 %vm918_vm2, %v3172_v0  ;;  %v2156_v3 = vadd.f32 %v3376_v51, %v2088_v1 }
  0x9c   :  { %v2220_v4 = vmax.f32 %v2156_v3, 0.0  ;;  %v3175_v3 = vld [vmem:[%s3840_s0 + $0x360] sm:$0xff] }
  0x9d   :  { %v1644_v5 = vpop.f32.mrf.mxu2  ;;  %v1804_v6 = vpop.f32.mrf.mxu3 }
  0x9e   :  { %v2025_v7 = vmax.f32 %v1961_v2, %v1644_v5  ;;  %2284 = vxpose.xlu0.b32.cont [2/16] (narrow) %v2220_v4, 16  ;;  %v1326_v8 = vpop.f32.mrf.mxu0  ;;  %v1486_v9 = vpop.f32.mrf.mxu1  ;;  %v3143_v2 = vld [vmem:[%s3840_s0 + $0x260] sm:$0xff] }
  0x9f   :  { %v1962_v12 = vmax.f32 %v1326_v8, %v1486_v9 }
  0xa0   :  { %v2089_v10 = vmax.f32 %v2025_v7, %v1804_v6 }
  0xa2   :  { %v2157_v11 = vadd.f32 %v3376_v51, %v2089_v10 }
  0xa4   :  { %v2221_v13 = vmax.f32 %v2157_v11, 0.0 }
  0xa5   :  { %v1646_v14 = vpop.f32.mrf.mxu2  ;;  %v1806_v15 = vpop.f32.mrf.mxu3 }
  0xa6   :  { %v2026_v18 = vmax.f32 %v1962_v12, %v1646_v14  ;;  %2285 = vxpose.xlu0.b32.cont [3/16] (narrow) %v2221_v13, 16  ;;  %v1329_v19 = vpop.f32.mrf.mxu0  ;;  %v1489_v20 = vpop.f32.mrf.mxu1 }
  0xa7   :  { %v1963_v24 = vmax.f32 %v1329_v19, %v1489_v20  ;;  %v3080_v19 = vld [vmem:[%s3840_s0 + $0x68] sm:$0xff] }
  0xa8   :  { %v2090_v23 = vmax.f32 %v2026_v18, %v1806_v15  ;;  %v3112_v20 = vld [vmem:[%s3840_s0 + $0x168] sm:$0xff] }
  0xa9   :  { %2949 = vmatmul.msk.bf16.gmra.mxu0 %vm918_vm2, %v3077_v16  ;;  %2981 = vmatmul.msk.bf16.gmra.mxu1 %vm918_vm2, %v3109_v17 }
  0xaa   :  { %3013 = vmatmul.msk.bf16.gmra.mxu2 %vm918_vm2, %v3141_v21  ;;  %3045 = vmatmul.msk.bf16.gmra.mxu3 %vm918_vm2, %v3173_v22  ;;  %v2158_v25 = vadd.f32 %v3376_v51, %v2090_v23 }
  0xac   :  { %v2222_v26 = vmax.f32 %v2158_v25, 0.0  ;;  %v3176_v25 = vld [vmem:[%s3840_s0 + $0x368] sm:$0xff] }
  0xad   :  { %v1649_v27 = vpop.f32.mrf.mxu2  ;;  %v1809_v28 = vpop.f32.mrf.mxu3 }
  0xae   :  { %v2027_v29 = vmax.f32 %v1963_v24, %v1649_v27  ;;  %2286 = vxpose.xlu0.b32.cont [4/16] (narrow) %v2222_v26, 16  ;;  %v1331_v30 = vpop.f32.mrf.mxu0  ;;  %v1491_v31 = vpop.f32.mrf.mxu1  ;;  %v3144_v24 = vld [vmem:[%s3840_s0 + $0x268] sm:$0xff] }
  0xaf   :  { %v1964_v34 = vmax.f32 %v1331_v30, %v1491_v31 }
  0xb0   :  { %v2091_v32 = vmax.f32 %v2027_v29, %v1809_v28 }
  0xb2   :  { %v2159_v33 = vadd.f32 %v3376_v51, %v2091_v32 }
  0xb4   :  { %v2223_v35 = vmax.f32 %v2159_v33, 0.0 }
  0xb5   :  { %v1651_v36 = vpop.f32.mrf.mxu2  ;;  %v1811_v37 = vpop.f32.mrf.mxu3 }
  0xb6   :  { %v2028_v40 = vmax.f32 %v1964_v34, %v1651_v36  ;;  %2287 = vxpose.xlu0.b32.cont [5/16] (narrow) %v2223_v35, 16  ;;  %v1334_v41 = vpop.f32.mrf.mxu0  ;;  %v1494_v42 = vpop.f32.mrf.mxu1 }
  0xb7   :  { %v1965_v46 = vmax.f32 %v1334_v41, %v1494_v42  ;;  %v3081_v41 = vld [vmem:[%s3840_s0 + $0x70] sm:$0xff] }
  0xb8   :  { %v2092_v45 = vmax.f32 %v2028_v40, %v1811_v37  ;;  %v3113_v42 = vld [vmem:[%s3840_s0 + $0x170] sm:$0xff] }
  0xb9   :  { %2950 = vmatmul.msk.bf16.gmra.mxu0 %vm918_vm2, %v3078_v38  ;;  %2982 = vmatmul.msk.bf16.gmra.mxu1 %vm918_vm2, %v3110_v39 }
  0xba   :  { %3014 = vmatmul.msk.bf16.gmra.mxu2 %vm918_vm2, %v3142_v43  ;;  %3046 = vmatmul.msk.bf16.gmra.mxu3 %vm918_vm2, %v3174_v44  ;;  %v2160_v47 = vadd.f32 %v3376_v51, %v2092_v45 }
  0xbc   :  { %v2224_v48 = vmax.f32 %v2160_v47, 0.0  ;;  %v3177_v47 = vld [vmem:[%s3840_s0 + $0x370] sm:$0xff] }
  0xbd   :  { %v1654_v49 = vpop.f32.mrf.mxu2  ;;  %v1814_v50 = vpop.f32.mrf.mxu3 }
  0xbe   :  { %v2029_v52 = vmax.f32 %v1965_v46, %v1654_v49  ;;  %2288 = vxpose.xlu0.b32.cont [6/16] (narrow) %v2224_v48, 16  ;;  %v1336_v53 = vpop.f32.mrf.mxu0  ;;  %v1496_v54 = vpop.f32.mrf.mxu1  ;;  %v3145_v46 = vld [vmem:[%s3840_s0 + $0x270] sm:$0xff] }
  0xbf   :  { %v1966_v57 = vmax.f32 %v1336_v53, %v1496_v54 }
  0xc0   :  { %v2093_v55 = vmax.f32 %v2029_v52, %v1814_v50 }
  0xc2   :  { %v2161_v56 = vadd.f32 %v3376_v51, %v2093_v55 }
  0xc4   :  { %v2225_v58 = vmax.f32 %v2161_v56, 0.0 }
  0xc5   :  { %v1656_v59 = vpop.f32.mrf.mxu2  ;;  %v1816_v60 = vpop.f32.mrf.mxu3 }
  0xc6   :  { %v2030_v63 = vmax.f32 %v1966_v57, %v1656_v59  ;;  %2289 = vxpose.xlu0.b32.cont [7/16] (narrow) %v2225_v58, 16  ;;  %v1339_v0 = vpop.f32.mrf.mxu0  ;;  %v1499_v1 = vpop.f32.mrf.mxu1 }
  0xc7   :  { %v1967_v5 = vmax.f32 %v1339_v0, %v1499_v1  ;;  %v3082_v0 = vld [vmem:[%s3840_s0 + $0x78] sm:$0xff] }
  0xc8   :  { %v2094_v4 = vmax.f32 %v2030_v63, %v1816_v60  ;;  %v3114_v1 = vld [vmem:[%s3840_s0 + $0x178] sm:$0xff] }
  0xc9   :  { %2951 = vmatmul.msk.bf16.gmra.mxu0 %vm918_vm2, %v3079_v61  ;;  %2983 = vmatmul.msk.bf16.gmra.mxu1 %vm918_vm2, %v3111_v62 }
  0xca   :  { %3015 = vmatmul.msk.bf16.gmra.mxu2 %vm918_vm2, %v3143_v2  ;;  %3047 = vmatmul.msk.bf16.gmra.mxu3 %vm918_vm2, %v3175_v3  ;;  %v2162_v6 = vadd.f32 %v3376_v51, %v2094_v4 }
  0xcc   :  { %v2226_v7 = vmax.f32 %v2162_v6, 0.0  ;;  %v3178_v6 = vld [vmem:[%s3840_s0 + $0x378] sm:$0xff] }
  0xcd   :  { %v1659_v8 = vpop.f32.mrf.mxu2  ;;  %v1819_v9 = vpop.f32.mrf.mxu3 }
  0xce   :  { %v2031_v10 = vmax.f32 %v1967_v5, %v1659_v8  ;;  %2290 = vxpose.xlu0.b32.cont [8/16] (narrow) %v2226_v7, 16  ;;  %v1341_v11 = vpop.f32.mrf.mxu0  ;;  %v1501_v12 = vpop.f32.mrf.mxu1  ;;  %v3146_v5 = vld [vmem:[%s3840_s0 + $0x278] sm:$0xff] }
  0xcf   :  { %v1968_v15 = vmax.f32 %v1341_v11, %v1501_v12 }
  0xd0   :  { %v2095_v13 = vmax.f32 %v2031_v10, %v1819_v9 }
  0xd2   :  { %v2163_v14 = vadd.f32 %v3376_v51, %v2095_v13 }
  0xd4   :  { %v2227_v16 = vmax.f32 %v2163_v14, 0.0 }
  0xd5   :  { %v1661_v17 = vpop.f32.mrf.mxu2  ;;  %v1821_v18 = vpop.f32.mrf.mxu3 }
  0xd6   :  { %v2032_v21 = vmax.f32 %v1968_v15, %v1661_v17  ;;  %2291 = vxpose.xlu0.b32.cont [9/16] (narrow) %v2227_v16, 16  ;;  %v1344_v22 = vpop.f32.mrf.mxu0  ;;  %v1504_v23 = vpop.f32.mrf.mxu1 }
  0xd7   :  { %v1969_v27 = vmax.f32 %v1344_v22, %v1504_v23  ;;  %v3083_v22 = vld [vmem:[%s3840_s0 + $0x80] sm:$0xff] }
  0xd8   :  { %v2096_v26 = vmax.f32 %v2032_v21, %v1821_v18  ;;  %v3115_v23 = vld [vmem:[%s3840_s0 + $0x180] sm:$0xff] }
  0xd9   :  { %2952 = vmatmul.msk.bf16.gmra.mxu0 %vm918_vm2, %v3080_v19  ;;  %2984 = vmatmul.msk.bf16.gmra.mxu1 %vm918_vm2, %v3112_v20 }
  0xda   :  { %3016 = vmatmul.msk.bf16.gmra.mxu2 %vm918_vm2, %v3144_v24  ;;  %3048 = vmatmul.msk.bf16.gmra.mxu3 %vm918_vm2, %v3176_v25  ;;  %v2164_v28 = vadd.f32 %v3376_v51, %v2096_v26 }
  0xdc   :  { %v2228_v29 = vmax.f32 %v2164_v28, 0.0  ;;  %v3179_v28 = vld [vmem:[%s3840_s0 + $0x380] sm:$0xff] }
  0xdd   :  { %v1664_v30 = vpop.f32.mrf.mxu2  ;;  %v1824_v31 = vpop.f32.mrf.mxu3 }
  0xde   :  { %v2033_v32 = vmax.f32 %v1969_v27, %v1664_v30  ;;  %2292 = vxpose.xlu0.b32.cont [10/16] (narrow) %v2228_v29, 16  ;;  %v1346_v33 = vpop.f32.mrf.mxu0  ;;  %v1506_v34 = vpop.f32.mrf.mxu1  ;;  %v3147_v27 = vld [vmem:[%s3840_s0 + $0x280] sm:$0xff] }
  0xdf   :  { %v1970_v37 = vmax.f32 %v1346_v33, %v1506_v34 }
  0xe0   :  { %v2097_v35 = vmax.f32 %v2033_v32, %v1824_v31 }
  0xe2   :  { %v2165_v36 = vadd.f32 %v3376_v51, %v2097_v35 }
  0xe4   :  { %v2229_v38 = vmax.f32 %v2165_v36, 0.0 }
  0xe5   :  { %v1666_v39 = vpop.f32.mrf.mxu2  ;;  %v1826_v40 = vpop.f32.mrf.mxu3 }
  0xe6   :  { %v2034_v43 = vmax.f32 %v1970_v37, %v1666_v39  ;;  %2293 = vxpose.xlu0.b32.cont [11/16] (narrow) %v2229_v38, 16  ;;  %v1349_v44 = vpop.f32.mrf.mxu0  ;;  %v1509_v45 = vpop.f32.mrf.mxu1 }
  0xe7   :  { %v1971_v49 = vmax.f32 %v1349_v44, %v1509_v45  ;;  %v3084_v44 = vld [vmem:[%s3840_s0 + $0x88] sm:$0xff] }
  0xe8   :  { %v2098_v48 = vmax.f32 %v2034_v43, %v1826_v40  ;;  %v3116_v45 = vld [vmem:[%s3840_s0 + $0x188] sm:$0xff] }
  0xe9   :  { %2953 = vmatmul.msk.bf16.gmra.mxu0 %vm918_vm2, %v3081_v41  ;;  %2985 = vmatmul.msk.bf16.gmra.mxu1 %vm918_vm2, %v3113_v42 }
  0xea   :  { %3017 = vmatmul.msk.bf16.gmra.mxu2 %vm918_vm2, %v3145_v46  ;;  %3049 = vmatmul.msk.bf16.gmra.mxu3 %vm918_vm2, %v3177_v47  ;;  %v2166_v50 = vadd.f32 %v3376_v51, %v2098_v48 }
  0xec   :  { %v2230_v52 = vmax.f32 %v2166_v50, 0.0  ;;  %v3180_v50 = vld [vmem:[%s3840_s0 + $0x388] sm:$0xff] }
  0xed   :  { %v1669_v53 = vpop.f32.mrf.mxu2  ;;  %v1829_v54 = vpop.f32.mrf.mxu3 }
  0xee   :  { %v2035_v55 = vmax.f32 %v1971_v49, %v1669_v53  ;;  %2294 = vxpose.xlu0.b32.cont [12/16] (narrow) %v2230_v52, 16  ;;  %v1351_v56 = vpop.f32.mrf.mxu0  ;;  %v1511_v57 = vpop.f32.mrf.mxu1  ;;  %v3148_v49 = vld [vmem:[%s3840_s0 + $0x288] sm:$0xff] }
  0xef   :  { %v1972_v60 = vmax.f32 %v1351_v56, %v1511_v57 }
  0xf0   :  { %v2099_v58 = vmax.f32 %v2035_v55, %v1829_v54 }
  0xf2   :  { %v2167_v59 = vadd.f32 %v3376_v51, %v2099_v58 }
  0xf4   :  { %v2231_v61 = vmax.f32 %v2167_v59, 0.0 }
  0xf5   :  { %v1671_v62 = vpop.f32.mrf.mxu2  ;;  %v1831_v63 = vpop.f32.mrf.mxu3 }
  0xf6   :  { %v2036_v2 = vmax.f32 %v1972_v60, %v1671_v62  ;;  %2295 = vxpose.xlu0.b32.cont [13/16] (narrow) %v2231_v61, 16  ;;  %v1354_v3 = vpop.f32.mrf.mxu0  ;;  %v1514_v4 = vpop.f32.mrf.mxu1 }
  0xf7   :  { %v1973_v8 = vmax.f32 %v1354_v3, %v1514_v4  ;;  %v3085_v3 = vld [vmem:[%s3840_s0 + $0x90] sm:$0xff] }
  0xf8   :  { %v2100_v7 = vmax.f32 %v2036_v2, %v1831_v63  ;;  %v3117_v4 = vld [vmem:[%s3840_s0 + $0x190] sm:$0xff] }
  0xf9   :  { %2954 = vmatmul.msk.bf16.gmra.mxu0 %vm918_vm2, %v3082_v0  ;;  %2986 = vmatmul.msk.bf16.gmra.mxu1 %vm918_vm2, %v3114_v1 }
  0xfa   :  { %3018 = vmatmul.msk.bf16.gmra.mxu2 %vm918_vm2, %v3146_v5  ;;  %3050 = vmatmul.msk.bf16.gmra.mxu3 %vm918_vm2, %v3178_v6  ;;  %v2168_v9 = vadd.f32 %v3376_v51, %v2100_v7 }
  0xfc   :  { %v2232_v10 = vmax.f32 %v2168_v9, 0.0  ;;  %v3181_v9 = vld [vmem:[%s3840_s0 + $0x390] sm:$0xff] }
  0xfd   :  { %v1674_v11 = vpop.f32.mrf.mxu2  ;;  %v1834_v12 = vpop.f32.mrf.mxu3 }
  0xfe   :  { %v2037_v13 = vmax.f32 %v1973_v8, %v1674_v11  ;;  %2296 = vxpose.xlu0.b32.cont [14/16] (narrow) %v2232_v10, 16  ;;  %v1356_v14 = vpop.f32.mrf.mxu0  ;;  %v1516_v15 = vpop.f32.mrf.mxu1  ;;  %v3149_v8 = vld [vmem:[%s3840_s0 + $0x290] sm:$0xff] }
  0xff   :  { %v1974_v18 = vmax.f32 %v1356_v14, %v1516_v15 }
 0x100   :  { %v2101_v16 = vmax.f32 %v2037_v13, %v1834_v12 }
 0x102   :  { %v2169_v17 = vadd.f32 %v3376_v51, %v2101_v16 }
 0x104   :  { %v2233_v19 = vmax.f32 %v2169_v17, 0.0 }
 0x105   :  { %v1676_v20 = vpop.f32.mrf.mxu2  ;;  %v1836_v21 = vpop.f32.mrf.mxu3 }
 0x106   :  { %v2038_v24 = vmax.f32 %v1974_v18, %v1676_v20  ;;  %2297 = vxpose.xlu0.b32.cont [15/16] (narrow) %v2233_v19, 16  ;;  %v1359_v25 = vpop.f32.mrf.mxu0  ;;  %v1519_v26 = vpop.f32.mrf.mxu1 }
 0x107   :  { %v1975_v30 = vmax.f32 %v1359_v25, %v1519_v26  ;;  %v3086_v25 = vld [vmem:[%s3840_s0 + $0x98] sm:$0xff] }
 0x108   :  { %v2102_v29 = vmax.f32 %v2038_v24, %v1836_v21  ;;  %v3118_v26 = vld [vmem:[%s3840_s0 + $0x198] sm:$0xff] }
 0x109   :  { %2955 = vmatmul.msk.bf16.gmra.mxu0 %vm918_vm2, %v3083_v22  ;;  %2987 = vmatmul.msk.bf16.gmra.mxu1 %vm918_vm2, %v3115_v23 }
 0x10a   :  { %3019 = vmatmul.msk.bf16.gmra.mxu2 %vm918_vm2, %v3147_v27  ;;  %3051 = vmatmul.msk.bf16.gmra.mxu3 %vm918_vm2, %v3179_v28  ;;  %v2170_v31 = vadd.f32 %v3376_v51, %v2102_v29 }
 0x10c   :  { %v2234_v32 = vmax.f32 %v2170_v31, 0.0  ;;  %v3182_v31 = vld [vmem:[%s3840_s0 + $0x398] sm:$0xff] }
 0x10d   :  { %v1679_v33 = vpop.f32.mrf.mxu2  ;;  %v1839_v34 = vpop.f32.mrf.mxu3 }
 0x10e   :  { %v2039_v35 = vmax.f32 %v1975_v30, %v1679_v33  ;;  %2298 = vxpose.xlu0.b32.end [16/16] (narrow) %v2234_v32, 16  ;;  %v1361_v36 = vpop.f32.mrf.mxu0  ;;  %v1521_v37 = vpop.f32.mrf.mxu1  ;;  %v3150_v30 = vld [vmem:[%s3840_s0 + $0x298] sm:$0xff] }
 0x10f   :  { %v1976_v40 = vmax.f32 %v1361_v36, %v1521_v37 }
 0x110   :  { %v2103_v38 = vmax.f32 %v2039_v35, %v1839_v34 }
 0x112   :  { %v2171_v39 = vadd.f32 %v3376_v51, %v2103_v38 }
 0x114   :  { %v2235_v41 = vmax.f32 %v2171_v39, 0.0 }
 0x115   :  { %v1681_v42 = vpop.f32.mrf.mxu2  ;;  %v1841_v43 = vpop.f32.mrf.mxu3 }
 0x116   :  { %v2040_v46 = vmax.f32 %v1976_v40, %v1681_v42  ;;  %2315 = vxpose.xlu1.b32.start [1/16] (narrow) %v2235_v41, 16  ;;  %v1364_v47 = vpop.f32.mrf.mxu0  ;;  %v1524_v48 = vpop.f32.mrf.mxu1 }
 0x117   :  { %v1977_v53 = vmax.f32 %v1364_v47, %v1524_v48  ;;  %v3087_v47 = vld [vmem:[%s3840_s0 + $0xa0] sm:$0xff] }
 0x118   :  { %v2104_v52 = vmax.f32 %v2040_v46, %v1841_v43  ;;  %v3119_v48 = vld [vmem:[%s3840_s0 + $0x1a0] sm:$0xff] }
 0x119   :  { %2956 = vmatmul.msk.bf16.gmra.mxu0 %vm918_vm2, %v3084_v44  ;;  %2988 = vmatmul.msk.bf16.gmra.mxu1 %vm918_vm2, %v3116_v45 }
 0x11a   :  { %3020 = vmatmul.msk.bf16.gmra.mxu2 %vm918_vm2, %v3148_v49  ;;  %3052 = vmatmul.msk.bf16.gmra.mxu3 %vm918_vm2, %v3180_v50  ;;  %v2172_v54 = vadd.f32 %v3376_v51, %v2104_v52 }
 0x11c   :  { %v2236_v55 = vmax.f32 %v2172_v54, 0.0  ;;  %v3183_v54 = vld [vmem:[%s3840_s0 + $0x3a0] sm:$0xff] }
 0x11d   :  { %v1684_v56 = vpop.f32.mrf.mxu2  ;;  %v1844_v57 = vpop.f32.mrf.mxu3 }
 0x11e   :  { %v2041_v58 = vmax.f32 %v1977_v53, %v1684_v56  ;;  %2316 = vxpose.xlu1.b32.cont [2/16] (narrow) %v2236_v55, 16  ;;  %v1366_v59 = vpop.f32.mrf.mxu0  ;;  %v1526_v60 = vpop.f32.mrf.mxu1  ;;  %v3151_v53 = vld [vmem:[%s3840_s0 + $0x2a0] sm:$0xff] }
 0x11f   :  { %v1978_v63 = vmax.f32 %v1366_v59, %v1526_v60 }
 0x120   :  { %v2105_v61 = vmax.f32 %v2041_v58, %v1844_v57 }
 0x122   :  { %v2173_v62 = vadd.f32 %v3376_v51, %v2105_v61 }
 0x124   :  { %v2237_v0 = vmax.f32 %v2173_v62, 0.0 }
 0x125   :  { %v1686_v1 = vpop.f32.mrf.mxu2  ;;  %v1846_v2 = vpop.f32.mrf.mxu3 }
 0x126   :  { %v2042_v5 = vmax.f32 %v1978_v63, %v1686_v1  ;;  %2317 = vxpose.xlu1.b32.cont [3/16] (narrow) %v2237_v0, 16  ;;  %v1369_v6 = vpop.f32.mrf.mxu0  ;;  %v1529_v7 = vpop.f32.mrf.mxu1 }
 0x127   :  { %v1979_v11 = vmax.f32 %v1369_v6, %v1529_v7  ;;  %v3088_v6 = vld [vmem:[%s3840_s0 + $0xa8] sm:$0xff] }
 0x128   :  { %v2106_v10 = vmax.f32 %v2042_v5, %v1846_v2  ;;  %v3120_v7 = vld [vmem:[%s3840_s0 + $0x1a8] sm:$0xff] }
 0x129   :  { %2957 = vmatmul.msk.bf16.gmra.mxu0 %vm918_vm2, %v3085_v3  ;;  %2989 = vmatmul.msk.bf16.gmra.mxu1 %vm918_vm2, %v3117_v4 }
 0x12a   :  { %3021 = vmatmul.msk.bf16.gmra.mxu2 %vm918_vm2, %v3149_v8  ;;  %3053 = vmatmul.msk.bf16.gmra.mxu3 %vm918_vm2, %v3181_v9  ;;  %v2174_v12 = vadd.f32 %v3376_v51, %v2106_v10 }
 0x12c   :  { %v2238_v13 = vmax.f32 %v2174_v12, 0.0  ;;  %v3184_v12 = vld [vmem:[%s3840_s0 + $0x3a8] sm:$0xff] }
 0x12d   :  { %v1689_v14 = vpop.f32.mrf.mxu2  ;;  %v1849_v15 = vpop.f32.mrf.mxu3 }
 0x12e   :  { %v2043_v16 = vmax.f32 %v1979_v11, %v1689_v14  ;;  %2318 = vxpose.xlu1.b32.cont [4/16] (narrow) %v2238_v13, 16  ;;  %v1371_v17 = vpop.f32.mrf.mxu0  ;;  %v1531_v18 = vpop.f32.mrf.mxu1  ;;  %v3152_v11 = vld [vmem:[%s3840_s0 + $0x2a8] sm:$0xff] }
 0x12f   :  { %v1980_v21 = vmax.f32 %v1371_v17, %v1531_v18 }
 0x130   :  { %v2107_v19 = vmax.f32 %v2043_v16, %v1849_v15 }
 0x132   :  { %v2175_v20 = vadd.f32 %v3376_v51, %v2107_v19 }
 0x134   :  { %v2239_v22 = vmax.f32 %v2175_v20, 0.0 }
 0x135   :  { %v1691_v23 = vpop.f32.mrf.mxu2  ;;  %v1851_v24 = vpop.f32.mrf.mxu3 }
 0x136   :  { %v2044_v27 = vmax.f32 %v1980_v21, %v1691_v23  ;;  %2319 = vxpose.xlu1.b32.cont [5/16] (narrow) %v2239_v22, 16  ;;  %v1374_v28 = vpop.f32.mrf.mxu0  ;;  %v1534_v29 = vpop.f32.mrf.mxu1 }
 0x137   :  { %v1981_v33 = vmax.f32 %v1374_v28, %v1534_v29  ;;  %v3089_v28 = vld [vmem:[%s3840_s0 + $0xb0] sm:$0xff] }
 0x138   :  { %v2108_v32 = vmax.f32 %v2044_v27, %v1851_v24  ;;  %v3121_v29 = vld [vmem:[%s3840_s0 + $0x1b0] sm:$0xff] }
 0x139   :  { %2958 = vmatmul.msk.bf16.gmra.mxu0 %vm918_vm2, %v3086_v25  ;;  %2990 = vmatmul.msk.bf16.gmra.mxu1 %vm918_vm2, %v3118_v26 }
 0x13a   :  { %3022 = vmatmul.msk.bf16.gmra.mxu2 %vm918_vm2, %v3150_v30  ;;  %3054 = vmatmul.msk.bf16.gmra.mxu3 %vm918_vm2, %v3182_v31  ;;  %v2176_v34 = vadd.f32 %v3376_v51, %v2108_v32 }
 0x13c   :  { %v2240_v35 = vmax.f32 %v2176_v34, 0.0  ;;  %v3185_v34 = vld [vmem:[%s3840_s0 + $0x3b0] sm:$0xff] }
 0x13d   :  { %v1694_v36 = vpop.f32.mrf.mxu2  ;;  %v1854_v37 = vpop.f32.mrf.mxu3 }
 0x13e   :  { %v2045_v38 = vmax.f32 %v1981_v33, %v1694_v36  ;;  %2320 = vxpose.xlu1.b32.cont [6/16] (narrow) %v2240_v35, 16  ;;  %v1376_v39 = vpop.f32.mrf.mxu0  ;;  %v1536_v40 = vpop.f32.mrf.mxu1  ;;  %v3153_v33 = vld [vmem:[%s3840_s0 + $0x2b0] sm:$0xff] }
 0x13f   :  { %v1982_v43 = vmax.f32 %v1376_v39, %v1536_v40 }
 0x140   :  { %v2109_v41 = vmax.f32 %v2045_v38, %v1854_v37 }
 0x142   :  { %v2177_v42 = vadd.f32 %v3376_v51, %v2109_v41 }
 0x144   :  { %v2241_v44 = vmax.f32 %v2177_v42, 0.0 }
 0x145   :  { %v1696_v45 = vpop.f32.mrf.mxu2  ;;  %v1856_v46 = vpop.f32.mrf.mxu3 }
 0x146   :  { %v2046_v49 = vmax.f32 %v1982_v43, %v1696_v45  ;;  %2321 = vxpose.xlu1.b32.cont [7/16] (narrow) %v2241_v44, 16  ;;  %v1379_v50 = vpop.f32.mrf.mxu0  ;;  %v1539_v52 = vpop.f32.mrf.mxu1 }
 0x147   :  { %v1983_v56 = vmax.f32 %v1379_v50, %v1539_v52  ;;  %v3090_v50 = vld [vmem:[%s3840_s0 + $0xb8] sm:$0xff] }
 0x148   :  { %v2110_v55 = vmax.f32 %v2046_v49, %v1856_v46  ;;  %v3122_v52 = vld [vmem:[%s3840_s0 + $0x1b8] sm:$0xff] }
 0x149   :  { %2959 = vmatmul.msk.bf16.gmra.mxu0 %vm918_vm2, %v3087_v47  ;;  %2991 = vmatmul.msk.bf16.gmra.mxu1 %vm918_vm2, %v3119_v48 }
 0x14a   :  { %3023 = vmatmul.msk.bf16.gmra.mxu2 %vm918_vm2, %v3151_v53  ;;  %3055 = vmatmul.msk.bf16.gmra.mxu3 %vm918_vm2, %v3183_v54  ;;  %v2178_v57 = vadd.f32 %v3376_v51, %v2110_v55 }
 0x14c   :  { %v2242_v58 = vmax.f32 %v2178_v57, 0.0  ;;  %v3186_v57 = vld [vmem:[%s3840_s0 + $0x3b8] sm:$0xff] }
 0x14d   :  { %v1699_v59 = vpop.f32.mrf.mxu2  ;;  %v1859_v60 = vpop.f32.mrf.mxu3 }
 0x14e   :  { %v2047_v61 = vmax.f32 %v1983_v56, %v1699_v59  ;;  %2322 = vxpose.xlu1.b32.cont [8/16] (narrow) %v2242_v58, 16  ;;  %v1381_v62 = vpop.f32.mrf.mxu0  ;;  %v1541_v63 = vpop.f32.mrf.mxu1  ;;  %v3154_v56 = vld [vmem:[%s3840_s0 + $0x2b8] sm:$0xff] }
 0x14f   :  { %v1984_v2 = vmax.f32 %v1381_v62, %v1541_v63 }
 0x150   :  { %v2111_v0 = vmax.f32 %v2047_v61, %v1859_v60 }
 0x152   :  { %v2179_v1 = vadd.f32 %v3376_v51, %v2111_v0 }
 0x154   :  { %v2243_v3 = vmax.f32 %v2179_v1, 0.0 }
 0x155   :  { %v1701_v4 = vpop.f32.mrf.mxu2  ;;  %v1861_v5 = vpop.f32.mrf.mxu3 }
 0x156   :  { %v2048_v8 = vmax.f32 %v1984_v2, %v1701_v4  ;;  %2323 = vxpose.xlu1.b32.cont [9/16] (narrow) %v2243_v3, 16  ;;  %v1384_v9 = vpop.f32.mrf.mxu0  ;;  %v1544_v10 = vpop.f32.mrf.mxu1 }
 0x157   :  { %v1985_v14 = vmax.f32 %v1384_v9, %v1544_v10  ;;  %v3091_v9 = vld [vmem:[%s3840_s0 + $0xc0] sm:$0xff] }
 0x158   :  { %v2112_v13 = vmax.f32 %v2048_v8, %v1861_v5  ;;  %v3123_v10 = vld [vmem:[%s3840_s0 + $0x1c0] sm:$0xff] }
 0x159   :  { %2960 = vmatmul.msk.bf16.gmra.mxu0 %vm918_vm2, %v3088_v6  ;;  %2992 = vmatmul.msk.bf16.gmra.mxu1 %vm918_vm2, %v3120_v7 }
 0x15a   :  { %3024 = vmatmul.msk.bf16.gmra.mxu2 %vm918_vm2, %v3152_v11  ;;  %3056 = vmatmul.msk.bf16.gmra.mxu3 %vm918_vm2, %v3184_v12  ;;  %v2180_v15 = vadd.f32 %v3376_v51, %v2112_v13 }
 0x15c   :  { %v2244_v16 = vmax.f32 %v2180_v15, 0.0  ;;  %v3187_v15 = vld [vmem:[%s3840_s0 + $0x3c0] sm:$0xff] }
 0x15d   :  { %v1704_v17 = vpop.f32.mrf.mxu2  ;;  %v1864_v18 = vpop.f32.mrf.mxu3 }
 0x15e   :  { %v2049_v19 = vmax.f32 %v1985_v14, %v1704_v17  ;;  %2324 = vxpose.xlu1.b32.cont [10/16] (narrow) %v2244_v16, 16  ;;  %v1386_v20 = vpop.f32.mrf.mxu0  ;;  %v1546_v21 = vpop.f32.mrf.mxu1  ;;  %v3155_v14 = vld [vmem:[%s3840_s0 + $0x2c0] sm:$0xff] }
 0x15f   :  { %v1986_v24 = vmax.f32 %v1386_v20, %v1546_v21 }
 0x160   :  { %v2113_v22 = vmax.f32 %v2049_v19, %v1864_v18 }
 0x162   :  { %v2181_v23 = vadd.f32 %v3376_v51, %v2113_v22 }
 0x164   :  { %v2245_v25 = vmax.f32 %v2181_v23, 0.0 }
 0x165   :  { %v1706_v26 = vpop.f32.mrf.mxu2  ;;  %v1866_v27 = vpop.f32.mrf.mxu3 }
 0x166   :  { %v2050_v30 = vmax.f32 %v1986_v24, %v1706_v26  ;;  %2325 = vxpose.xlu1.b32.cont [11/16] (narrow) %v2245_v25, 16  ;;  %v1389_v31 = vpop.f32.mrf.mxu0  ;;  %v1549_v32 = vpop.f32.mrf.mxu1 }
 0x167   :  { %v1987_v36 = vmax.f32 %v1389_v31, %v1549_v32  ;;  %v3092_v31 = vld [vmem:[%s3840_s0 + $0xc8] sm:$0xff] }
 0x168   :  { %v2114_v35 = vmax.f32 %v2050_v30, %v1866_v27  ;;  %v3124_v32 = vld [vmem:[%s3840_s0 + $0x1c8] sm:$0xff] }
 0x169   :  { %2961 = vmatmul.msk.bf16.gmra.mxu0 %vm918_vm2, %v3089_v28  ;;  %2993 = vmatmul.msk.bf16.gmra.mxu1 %vm918_vm2, %v3121_v29 }
 0x16a   :  { %3025 = vmatmul.msk.bf16.gmra.mxu2 %vm918_vm2, %v3153_v33  ;;  %3057 = vmatmul.msk.bf16.gmra.mxu3 %vm918_vm2, %v3185_v34  ;;  %v2182_v37 = vadd.f32 %v3376_v51, %v2114_v35 }
 0x16c   :  { %v2246_v38 = vmax.f32 %v2182_v37, 0.0  ;;  %v3188_v37 = vld [vmem:[%s3840_s0 + $0x3c8] sm:$0xff] }
 0x16d   :  { %v1709_v39 = vpop.f32.mrf.mxu2  ;;  %v1869_v40 = vpop.f32.mrf.mxu3 }
 0x16e   :  { %v2051_v41 = vmax.f32 %v1987_v36, %v1709_v39  ;;  %2326 = vxpose.xlu1.b32.cont [12/16] (narrow) %v2246_v38, 16  ;;  %v1391_v42 = vpop.f32.mrf.mxu0  ;;  %v1551_v43 = vpop.f32.mrf.mxu1  ;;  %v3156_v36 = vld [vmem:[%s3840_s0 + $0x2c8] sm:$0xff] }
 0x16f   :  { %v1988_v46 = vmax.f32 %v1391_v42, %v1551_v43 }
 0x170   :  { %v2115_v44 = vmax.f32 %v2051_v41, %v1869_v40 }
 0x172   :  { %v2183_v45 = vadd.f32 %v3376_v51, %v2115_v44 }
 0x174   :  { %v2247_v47 = vmax.f32 %v2183_v45, 0.0 }
 0x175   :  { %v1711_v48 = vpop.f32.mrf.mxu2  ;;  %v1871_v49 = vpop.f32.mrf.mxu3 }
 0x176   :  { %v2052_v53 = vmax.f32 %v1988_v46, %v1711_v48  ;;  %2327 = vxpose.xlu1.b32.cont [13/16] (narrow) %v2247_v47, 16  ;;  %v1394_v54 = vpop.f32.mrf.mxu0  ;;  %v1554_v55 = vpop.f32.mrf.mxu1 }
 0x177   :  { %v1989_v59 = vmax.f32 %v1394_v54, %v1554_v55  ;;  %v3093_v54 = vld [vmem:[%s3840_s0 + $0xd0] sm:$0xff] }
 0x178   :  { %v2116_v58 = vmax.f32 %v2052_v53, %v1871_v49  ;;  %v3125_v55 = vld [vmem:[%s3840_s0 + $0x1d0] sm:$0xff] }
 0x179   :  { %2962 = vmatmul.msk.bf16.gmra.mxu0 %vm918_vm2, %v3090_v50  ;;  %2994 = vmatmul.msk.bf16.gmra.mxu1 %vm918_vm2, %v3122_v52 }
 0x17a   :  { %3026 = vmatmul.msk.bf16.gmra.mxu2 %vm918_vm2, %v3154_v56  ;;  %3058 = vmatmul.msk.bf16.gmra.mxu3 %vm918_vm2, %v3186_v57  ;;  %v2184_v60 = vadd.f32 %v3376_v51, %v2116_v58 }
 0x17c   :  { %v2248_v61 = vmax.f32 %v2184_v60, 0.0  ;;  %v3189_v60 = vld [vmem:[%s3840_s0 + $0x3d0] sm:$0xff] }
 0x17d   :  { %v1714_v62 = vpop.f32.mrf.mxu2  ;;  %v1874_v63 = vpop.f32.mrf.mxu3 }
 0x17e   :  { %v2053_v0 = vmax.f32 %v1989_v59, %v1714_v62  ;;  %2328 = vxpose.xlu1.b32.cont [14/16] (narrow) %v2248_v61, 16  ;;  %v1396_v1 = vpop.f32.mrf.mxu0  ;;  %v1556_v2 = vpop.f32.mrf.mxu1  ;;  %v3157_v59 = vld [vmem:[%s3840_s0 + $0x2d0] sm:$0xff] }
 0x17f   :  { %v1990_v5 = vmax.f32 %v1396_v1, %v1556_v2 }
 0x180   :  { %v2117_v3 = vmax.f32 %v2053_v0, %v1874_v63 }
 0x182   :  { %v2185_v4 = vadd.f32 %v3376_v51, %v2117_v3 }
 0x184   :  { %v2249_v6 = vmax.f32 %v2185_v4, 0.0 }
 0x185   :  { %v1716_v7 = vpop.f32.mrf.mxu2  ;;  %v1876_v8 = vpop.f32.mrf.mxu3 }
 0x186   :  { %v2054_v11 = vmax.f32 %v1990_v5, %v1716_v7  ;;  %2329 = vxpose.xlu1.b32.cont [15/16] (narrow) %v2249_v6, 16  ;;  %v1399_v12 = vpop.f32.mrf.mxu0  ;;  %v1559_v13 = vpop.f32.mrf.mxu1 }
 0x187   :  { %v1991_v17 = vmax.f32 %v1399_v12, %v1559_v13  ;;  %v3094_v12 = vld [vmem:[%s3840_s0 + $0xd8] sm:$0xff] }
 0x188   :  { %v2118_v16 = vmax.f32 %v2054_v11, %v1876_v8  ;;  %v3126_v13 = vld [vmem:[%s3840_s0 + $0x1d8] sm:$0xff] }
 0x189   :  { %2963 = vmatmul.msk.bf16.gmra.mxu0 %vm918_vm2, %v3091_v9  ;;  %2995 = vmatmul.msk.bf16.gmra.mxu1 %vm918_vm2, %v3123_v10 }
 0x18a   :  { %3027 = vmatmul.msk.bf16.gmra.mxu2 %vm918_vm2, %v3155_v14  ;;  %3059 = vmatmul.msk.bf16.gmra.mxu3 %vm918_vm2, %v3187_v15  ;;  %v2186_v18 = vadd.f32 %v3376_v51, %v2118_v16 }
 0x18c   :  { %v2250_v19 = vmax.f32 %v2186_v18, 0.0 }
 0x18d   :  { %v1719_v20 = vpop.f32.mrf.mxu2  ;;  %v1879_v21 = vpop.f32.mrf.mxu3 }
 0x18e   :  { %v2055_v22 = vmax.f32 %v1991_v17, %v1719_v20  ;;  %2330 = vxpose.xlu1.b32.end [16/16] (narrow) %v2250_v19, 16  ;;  %v1401_v23 = vpop.f32.mrf.mxu0  ;;  %v1561_v24 = vpop.f32.mrf.mxu1  ;;  %v3190_v17 = vld [vmem:[%s3840_s0 + $0x3d8] sm:$0xff]  ;;  %v3722_v20 = vld [vmem:[%s3841_s2] ss:$0 sm:$0xff] }
 0x18f   :  { %v1992_v27 = vmax.f32 %v1401_v23, %v1561_v24 }
 0x190   :  { %v2119_v25 = vmax.f32 %v2055_v22, %v1879_v21 }
 0x192   :  { %v2187_v26 = vadd.f32 %v3376_v51, %v2119_v25 }
 0x194   :  { %v2251_v28 = vmax.f32 %v2187_v26, 0.0 }
 0x195   :  { %v1721_v29 = vpop.f32.mrf.mxu2  ;;  %v1881_v30 = vpop.f32.mrf.mxu3 }
 0x196   :  { %v2056_v33 = vmax.f32 %v1992_v27, %v1721_v29  ;;  %2347 = vxpose.xlu2.b32.start [1/16] (narrow) %v2251_v28, 16  ;;  %v1404_v34 = vpop.f32.mrf.mxu0  ;;  %v1564_v35 = vpop.f32.mrf.mxu1 }
 0x197   :  { %v1993_v39 = vmax.f32 %v1404_v34, %v1564_v35  ;;  %v3095_v34 = vld [vmem:[%s3840_s0 + $0xe0] sm:$0xff] }
 0x198   :  { %v2120_v38 = vmax.f32 %v2056_v33, %v1881_v30  ;;  %v3127_v35 = vld [vmem:[%s3840_s0 + $0x1e0] sm:$0xff] }
 0x199   :  { %2964 = vmatmul.msk.bf16.gmra.mxu0 %vm918_vm2, %v3092_v31  ;;  %2996 = vmatmul.msk.bf16.gmra.mxu1 %vm918_vm2, %v3124_v32 }
 0x19a   :  { %3028 = vmatmul.msk.bf16.gmra.mxu2 %vm918_vm2, %v3156_v36  ;;  %3060 = vmatmul.msk.bf16.gmra.mxu3 %vm918_vm2, %v3188_v37  ;;  %v2188_v40 = vadd.f32 %v3376_v51, %v2120_v38 }
 0x19c   :  { %v2252_v41 = vmax.f32 %v2188_v40, 0.0  ;;  %v3191_v40 = vld [vmem:[%s3840_s0 + $0x3e0] sm:$0xff] }
 0x19d   :  { %v1724_v42 = vpop.f32.mrf.mxu2  ;;  %v1884_v43 = vpop.f32.mrf.mxu3 }
 0x19e   :  { %v2057_v44 = vmax.f32 %v1993_v39, %v1724_v42  ;;  %2348 = vxpose.xlu2.b32.cont [2/16] (narrow) %v2252_v41, 16  ;;  %v1406_v45 = vpop.f32.mrf.mxu0  ;;  %v1566_v46 = vpop.f32.mrf.mxu1  ;;  %v3159_v39 = vld [vmem:[%s3840_s0 + $0x2e0] sm:$0xff] }
 0x19f   :  { %v1994_v49 = vmax.f32 %v1406_v45, %v1566_v46 }
 0x1a0   :  { %v2121_v47 = vmax.f32 %v2057_v44, %v1884_v43 }
 0x1a2   :  { %v2189_v48 = vadd.f32 %v3376_v51, %v2121_v47 }
 0x1a4   :  { %v2253_v50 = vmax.f32 %v2189_v48, 0.0 }
 0x1a5   :  { %v1726_v52 = vpop.f32.mrf.mxu2  ;;  %v1886_v53 = vpop.f32.mrf.mxu3 }
 0x1a6   :  { %v2058_v56 = vmax.f32 %v1994_v49, %v1726_v52  ;;  %2349 = vxpose.xlu2.b32.cont [3/16] (narrow) %v2253_v50, 16  ;;  %v1409_v57 = vpop.f32.mrf.mxu0  ;;  %v1569_v58 = vpop.f32.mrf.mxu1 }
 0x1a7   :  { %v1995_v62 = vmax.f32 %v1409_v57, %v1569_v58  ;;  %v3096_v57 = vld [vmem:[%s3840_s0 + $0xe8] sm:$0xff] }
 0x1a8   :  { %v2122_v61 = vmax.f32 %v2058_v56, %v1886_v53  ;;  %v3128_v58 = vld [vmem:[%s3840_s0 + $0x1e8] sm:$0xff] }
 0x1a9   :  { %2965 = vmatmul.msk.bf16.gmra.mxu0 %vm918_vm2, %v3093_v54  ;;  %2997 = vmatmul.msk.bf16.gmra.mxu1 %vm918_vm2, %v3125_v55 }
 0x1aa   :  { %3029 = vmatmul.msk.bf16.gmra.mxu2 %vm918_vm2, %v3157_v59  ;;  %3061 = vmatmul.msk.bf16.gmra.mxu3 %vm918_vm2, %v3189_v60  ;;  %v2190_v63 = vadd.f32 %v3376_v51, %v2122_v61 }
 0x1ac   :  { %v2254_v0 = vmax.f32 %v2190_v63, 0.0  ;;  %v3192_v63 = vld [vmem:[%s3840_s0 + $0x3e8] sm:$0xff] }
 0x1ad   :  { %v1729_v1 = vpop.f32.mrf.mxu2  ;;  %v1889_v2 = vpop.f32.mrf.mxu3 }
 0x1ae   :  { %v2059_v3 = vmax.f32 %v1995_v62, %v1729_v1  ;;  %2350 = vxpose.xlu2.b32.cont [4/16] (narrow) %v2254_v0, 16  ;;  %v1411_v4 = vpop.f32.mrf.mxu0  ;;  %v1571_v5 = vpop.f32.mrf.mxu1  ;;  %v3160_v62 = vld [vmem:[%s3840_s0 + $0x2e8] sm:$0xff] }
 0x1af   :  { %v1996_v8 = vmax.f32 %v1411_v4, %v1571_v5 }
 0x1b0   :  { %v2123_v6 = vmax.f32 %v2059_v3, %v1889_v2 }
 0x1b2   :  { %v2191_v7 = vadd.f32 %v3376_v51, %v2123_v6  ;;  %v3158_v51 = vld [vmem:[%s3840_s0 + $0x2d8] sm:$0xff] }
 0x1b4   :  { %v2255_v9 = vmax.f32 %v2191_v7, 0.0 }
 0x1b5   :  { %v1731_v10 = vpop.f32.mrf.mxu2  ;;  %v1891_v11 = vpop.f32.mrf.mxu3 }
 0x1b6   :  { %v2060_v14 = vmax.f32 %v1996_v8, %v1731_v10  ;;  %2351 = vxpose.xlu2.b32.cont [5/16] (narrow) %v2255_v9, 16  ;;  %v1414_v15 = vpop.f32.mrf.mxu0  ;;  %v1574_v16 = vpop.f32.mrf.mxu1 }
 0x1b7   :  { %v1997_v19 = vmax.f32 %v1414_v15, %v1574_v16  ;;  %v3097_v15 = vld [vmem:[%s3840_s0 + $0xf0] sm:$0xff] }
 0x1b8   :  { %v2124_v18 = vmax.f32 %v2060_v14, %v1891_v11  ;;  %v3129_v16 = vld [vmem:[%s3840_s0 + $0x1f0] sm:$0xff] }
 0x1b9   :  { %2966 = vmatmul.msk.bf16.gmra.mxu0 %vm918_vm2, %v3094_v12  ;;  %2998 = vmatmul.msk.bf16.gmra.mxu1 %vm918_vm2, %v3126_v13 }
 0x1ba   :  { %3030 = vmatmul.msk.bf16.gmra.mxu2 %vm918_vm2, %v3158_v51  ;;  %3062 = vmatmul.msk.bf16.gmra.mxu3 %vm918_vm2, %v3190_v17  ;;  %v2192_v21 = vadd.f32 %v3722_v20, %v2124_v18 }
 0x1bc   :  { %v2256_v22 = vmax.f32 %v2192_v21, 0.0  ;;  %v3193_v21 = vld [vmem:[%s3840_s0 + $0x3f0] sm:$0xff] }
 0x1bd   :  { %v1734_v23 = vpop.f32.mrf.mxu2  ;;  %v1894_v24 = vpop.f32.mrf.mxu3 }
 0x1be   :  { %v2061_v25 = vmax.f32 %v1997_v19, %v1734_v23  ;;  %2352 = vxpose.xlu2.b32.cont [6/16] (narrow) %v2256_v22, 16  ;;  %v1416_v26 = vpop.f32.mrf.mxu0  ;;  %v1576_v27 = vpop.f32.mrf.mxu1  ;;  %v3161_v19 = vld [vmem:[%s3840_s0 + $0x2f0] sm:$0xff] }
 0x1bf   :  { %v1998_v30 = vmax.f32 %v1416_v26, %v1576_v27 }
 0x1c0   :  { %v2125_v28 = vmax.f32 %v2061_v25, %v1894_v24 }
 0x1c2   :  { %v2193_v29 = vadd.f32 %v3722_v20, %v2125_v28 }
 0x1c4   :  { %v2257_v31 = vmax.f32 %v2193_v29, 0.0 }
 0x1c5   :  { %v1736_v32 = vpop.f32.mrf.mxu2  ;;  %v1896_v33 = vpop.f32.mrf.mxu3 }
 0x1c6   :  { %v2062_v36 = vmax.f32 %v1998_v30, %v1736_v32  ;;  %2353 = vxpose.xlu2.b32.cont [7/16] (narrow) %v2257_v31, 16  ;;  %v1419_v37 = vpop.f32.mrf.mxu0  ;;  %v1579_v38 = vpop.f32.mrf.mxu1 }
 0x1c7   :  { %v1999_v42 = vmax.f32 %v1419_v37, %v1579_v38  ;;  %v3098_v37 = vld [vmem:[%s3840_s0 + $0xf8] sm:$0xff] }
 0x1c8   :  { %v2126_v41 = vmax.f32 %v2062_v36, %v1896_v33  ;;  %v3130_v38 = vld [vmem:[%s3840_s0 + $0x1f8] sm:$0xff] }
 0x1c9   :  { %2967 = vmatmul.msk.bf16.gmra.mxu0 %vm918_vm2, %v3095_v34  ;;  %2999 = vmatmul.msk.bf16.gmra.mxu1 %vm918_vm2, %v3127_v35 }
 0x1ca   :  { %3031 = vmatmul.msk.bf16.gmra.mxu2 %vm918_vm2, %v3159_v39  ;;  %3063 = vmatmul.msk.bf16.gmra.mxu3 %vm918_vm2, %v3191_v40  ;;  %v2194_v43 = vadd.f32 %v3722_v20, %v2126_v41 }
 0x1cc   :  { %v2258_v44 = vmax.f32 %v2194_v43, 0.0  ;;  %v3194_v43 = vld [vmem:[%s3840_s0 + $0x3f8] sm:$0xff] }
 0x1cd   :  { %v1739_v45 = vpop.f32.mrf.mxu2  ;;  %v1899_v46 = vpop.f32.mrf.mxu3 }
 0x1ce   :  { %v2063_v47 = vmax.f32 %v1999_v42, %v1739_v45  ;;  %2354 = vxpose.xlu2.b32.cont [8/16] (narrow) %v2258_v44, 16  ;;  %v1421_v48 = vpop.f32.mrf.mxu0  ;;  %v1581_v49 = vpop.f32.mrf.mxu1  ;;  %v3162_v42 = vld [vmem:[%s3840_s0 + $0x2f8] sm:$0xff] }
 0x1cf   :  { %v2000_v53 = vmax.f32 %v1421_v48, %v1581_v49 }
 0x1d0   :  { %v2127_v50 = vmax.f32 %v2063_v47, %v1899_v46 }
 0x1d2   :  { %v2195_v52 = vadd.f32 %v3722_v20, %v2127_v50 }
 0x1d4   :  { %v2259_v54 = vmax.f32 %v2195_v52, 0.0 }
 0x1d5   :  { %v1741_v55 = vpop.f32.mrf.mxu2  ;;  %v1901_v56 = vpop.f32.mrf.mxu3 }
 0x1d6   :  { %v2064_v59 = vmax.f32 %v2000_v53, %v1741_v55  ;;  %2355 = vxpose.xlu2.b32.cont [9/16] (narrow) %v2259_v54, 16  ;;  %v1424_v60 = vpop.f32.mrf.mxu0  ;;  %v1584_v61 = vpop.f32.mrf.mxu1 }
 0x1d7   :  { %v2001_v1 = vmax.f32 %v1424_v60, %v1584_v61 }
 0x1d8   :  { %v2128_v0 = vmax.f32 %v2064_v59, %v1901_v56 }
 0x1d9   :  { %2968 = vmatmul.msk.bf16.gmra.mxu0 %vm918_vm2, %v3096_v57  ;;  %3000 = vmatmul.msk.bf16.gmra.mxu1 %vm918_vm2, %v3128_v58 }
 0x1da   :  { %3032 = vmatmul.msk.bf16.gmra.mxu2 %vm918_vm2, %v3160_v62  ;;  %3064 = vmatmul.msk.bf16.gmra.mxu3 %vm918_vm2, %v3192_v63  ;;  %v2196_v2 = vadd.f32 %v3722_v20, %v2128_v0 }
 0x1dc   :  { %v2260_v3 = vmax.f32 %v2196_v2, 0.0 }
 0x1dd   :  { %v1744_v4 = vpop.f32.mrf.mxu2  ;;  %v1904_v5 = vpop.f32.mrf.mxu3 }
 0x1de   :  { %v2065_v6 = vmax.f32 %v2001_v1, %v1744_v4  ;;  %2356 = vxpose.xlu2.b32.cont [10/16] (narrow) %v2260_v3, 16  ;;  %v1426_v7 = vpop.f32.mrf.mxu0  ;;  %v1586_v8 = vpop.f32.mrf.mxu1 }
 0x1df   :  { %v2002_v11 = vmax.f32 %v1426_v7, %v1586_v8 }
 0x1e0   :  { %v2129_v9 = vmax.f32 %v2065_v6, %v1904_v5 }
 0x1e2   :  { %v2197_v10 = vadd.f32 %v3722_v20, %v2129_v9 }
 0x1e4   :  { %v2261_v12 = vmax.f32 %v2197_v10, 0.0 }
 0x1e5   :  { %v1746_v13 = vpop.f32.mrf.mxu2  ;;  %v1906_v14 = vpop.f32.mrf.mxu3 }
 0x1e6   :  { %v2066_v51 = vmax.f32 %v2002_v11, %v1746_v13  ;;  %2357 = vxpose.xlu2.b32.cont [11/16] (narrow) %v2261_v12, 16  ;;  %v1429_v17 = vpop.f32.mrf.mxu0  ;;  %v1589_v18 = vpop.f32.mrf.mxu1 }
 0x1e7   :  { %v2003_v23 = vmax.f32 %v1429_v17, %v1589_v18 }
 0x1e8   :  { %v2130_v22 = vmax.f32 %v2066_v51, %v1906_v14 }
 0x1e9   :  { %2969 = vmatmul.msk.bf16.gmra.mxu0 %vm918_vm2, %v3097_v15  ;;  %3001 = vmatmul.msk.bf16.gmra.mxu1 %vm918_vm2, %v3129_v16 }
 0x1ea   :  { %3033 = vmatmul.msk.bf16.gmra.mxu2 %vm918_vm2, %v3161_v19  ;;  %3065 = vmatmul.msk.bf16.gmra.mxu3 %vm918_vm2, %v3193_v21  ;;  %v2198_v24 = vadd.f32 %v3722_v20, %v2130_v22 }
 0x1ec   :  { %v2262_v25 = vmax.f32 %v2198_v24, 0.0 }
 0x1ed   :  { %v1749_v26 = vpop.f32.mrf.mxu2  ;;  %v1909_v27 = vpop.f32.mrf.mxu3 }
 0x1ee   :  { %v2067_v28 = vmax.f32 %v2003_v23, %v1749_v26  ;;  %2358 = vxpose.xlu2.b32.cont [12/16] (narrow) %v2262_v25, 16  ;;  %v1431_v29 = vpop.f32.mrf.mxu0  ;;  %v1591_v30 = vpop.f32.mrf.mxu1 }
 0x1ef   :  { %v2004_v33 = vmax.f32 %v1431_v29, %v1591_v30 }
 0x1f0   :  { %v2131_v31 = vmax.f32 %v2067_v28, %v1909_v27 }
 0x1f2   :  { %v2199_v32 = vadd.f32 %v3722_v20, %v2131_v31 }
 0x1f4   :  { %v2263_v34 = vmax.f32 %v2199_v32, 0.0 }
 0x1f5   :  { %v1751_v35 = vpop.f32.mrf.mxu2  ;;  %v1911_v36 = vpop.f32.mrf.mxu3 }
 0x1f6   :  { %v2068_v39 = vmax.f32 %v2004_v33, %v1751_v35  ;;  %2359 = vxpose.xlu2.b32.cont [13/16] (narrow) %v2263_v34, 16  ;;  %v1434_v40 = vpop.f32.mrf.mxu0  ;;  %v1594_v41 = vpop.f32.mrf.mxu1 }
 0x1f7   :  { %v2005_v45 = vmax.f32 %v1434_v40, %v1594_v41 }
 0x1f8   :  { %v2132_v44 = vmax.f32 %v2068_v39, %v1911_v36 }
 0x1f9   :  { %2970 = vmatmul.msk.bf16.gmra.mxu0 %vm918_vm2, %v3098_v37  ;;  %3002 = vmatmul.msk.bf16.gmra.mxu1 %vm918_vm2, %v3130_v38 }
 0x1fa   :  { %3034 = vmatmul.msk.bf16.gmra.mxu2 %vm918_vm2, %v3162_v42  ;;  %3066 = vmatmul.msk.bf16.gmra.mxu3 %vm918_vm2, %v3194_v43  ;;  %v2200_v46 = vadd.f32 %v3722_v20, %v2132_v44 }
 0x1fc   :  { %v2264_v47 = vmax.f32 %v2200_v46, 0.0 }
 0x1fd   :  { %v1754_v48 = vpop.f32.mrf.mxu2  ;;  %v1914_v49 = vpop.f32.mrf.mxu3 }
 0x1fe   :  { %v2069_v50 = vmax.f32 %v2005_v45, %v1754_v48  ;;  %2360 = vxpose.xlu2.b32.cont [14/16] (narrow) %v2264_v47, 16  ;;  %v1436_v52 = vpop.f32.mrf.mxu0  ;;  %v1596_v53 = vpop.f32.mrf.mxu1 }
 0x1ff   :  { %v2006_v56 = vmax.f32 %v1436_v52, %v1596_v53 }
 0x200   :  { %v2133_v54 = vmax.f32 %v2069_v50, %v1914_v49 }
 0x202   :  { %v2201_v55 = vadd.f32 %v3722_v20, %v2133_v54 }
 0x204   :  { %v2265_v57 = vmax.f32 %v2201_v55, 0.0 }
 0x205   :  { %v1756_v58 = vpop.f32.mrf.mxu2  ;;  %v1916_v59 = vpop.f32.mrf.mxu3 }
 0x206   :  { %v2070_v60 = vmax.f32 %v2006_v56, %v1756_v58  ;;  %2361 = vxpose.xlu2.b32.cont [15/16] (narrow) %v2265_v57, 16  ;;  %v1439_v61 = vpop.f32.mrf.mxu0  ;;  %v1599_v62 = vpop.f32.mrf.mxu1 }
 0x207   :  { %v2007_v0 = vmax.f32 %v1439_v61, %v1599_v62 }
 0x208   :  { %v2134_v63 = vmax.f32 %v2070_v60, %v1916_v59 }
 0x20a   :  { %v2202_v1 = vadd.f32 %v3722_v20, %v2134_v63 }
 0x20c   :  { %v2266_v2 = vmax.f32 %v2202_v1, 0.0 }
 0x20d   :  { %v1759_v3 = vpop.f32.mrf.mxu2  ;;  %v1919_v4 = vpop.f32.mrf.mxu3 }
 0x20e   :  { %v2071_v5 = vmax.f32 %v2007_v0, %v1759_v3  ;;  %2362 = vxpose.xlu2.b32.end [16/16] (narrow) %v2266_v2, 16  ;;  %v1441_v6 = vpop.f32.mrf.mxu0  ;;  %v1601_v7 = vpop.f32.mrf.mxu1 }
 0x20f   :  { %v2008_v10 = vmax.f32 %v1441_v6, %v1601_v7 }
 0x210   :  { %v2135_v8 = vmax.f32 %v2071_v5, %v1919_v4 }
 0x212   :  { %v2203_v9 = vadd.f32 %v3722_v20, %v2135_v8 }
 0x214   :  { %v2267_v11 = vmax.f32 %v2203_v9, 0.0 }
 0x215   :  { %v1761_v12 = vpop.f32.mrf.mxu2  ;;  %v1921_v13 = vpop.f32.mrf.mxu3 }
 0x216   :  { %v2072_v14 = vmax.f32 %v2008_v10, %v1761_v12  ;;  %2379 = vxpose.xlu0.b32.start [1/16] (narrow) %v2267_v11, 16  ;;  %v1444_v15 = vpop.f32.mrf.mxu0  ;;  %v1604_v16 = vpop.f32.mrf.mxu1 }
 0x217   :  { %v2009_v18 = vmax.f32 %v1444_v15, %v1604_v16 }
 0x218   :  { %v2136_v51 = vmax.f32 %v2072_v14, %v1921_v13 }
 0x21a   :  { %v2204_v17 = vadd.f32 %v3722_v20, %v2136_v51 }
 0x21c   :  { %v2268_v19 = vmax.f32 %v2204_v17, 0.0 }
 0x21d   :  { %v1764_v21 = vpop.f32.mrf.mxu2  ;;  %v1924_v22 = vpop.f32.mrf.mxu3 }
 0x21e   :  { %v2073_v23 = vmax.f32 %v2009_v18, %v1764_v21  ;;  %2380 = vxpose.xlu0.b32.cont [2/16] (narrow) %v2268_v19, 16  ;;  %v1446_v24 = vpop.f32.mrf.mxu0  ;;  %v1606_v25 = vpop.f32.mrf.mxu1 }
 0x21f   :  { %v2010_v29 = vmax.f32 %v1446_v24, %v1606_v25 }
 0x220   :  { %v2137_v26 = vmax.f32 %v2073_v23, %v1924_v22 }
 0x222   :  { %v2205_v27 = vadd.f32 %v3722_v20, %v2137_v26 }
 0x224   :  { %v2269_v28 = vmax.f32 %v2205_v27, 0.0 }
 0x225   :  { %v1766_v30 = vpop.f32.mrf.mxu2  ;;  %v1926_v31 = vpop.f32.mrf.mxu3 }
 0x226   :  { %v2074_v32 = vmax.f32 %v2010_v29, %v1766_v30  ;;  %2381 = vxpose.xlu0.b32.cont [3/16] (narrow) %v2269_v28, 16  ;;  %v1449_v33 = vpop.f32.mrf.mxu0  ;;  %v1609_v34 = vpop.f32.mrf.mxu1 }
 0x227   :  { %v2011_v37 = vmax.f32 %v1449_v33, %v1609_v34 }
 0x228   :  { %v2138_v35 = vmax.f32 %v2074_v32, %v1926_v31 }
 0x22a   :  { %v2206_v36 = vadd.f32 %v3722_v20, %v2138_v35 }
 0x22c   :  { %v2270_v38 = vmax.f32 %v2206_v36, 0.0 }
 0x22d   :  { %v1769_v39 = vpop.f32.mrf.mxu2  ;;  %v1929_v40 = vpop.f32.mrf.mxu3 }
 0x22e   :  { %v2075_v41 = vmax.f32 %v2011_v37, %v1769_v39  ;;  %2382 = vxpose.xlu0.b32.cont [4/16] (narrow) %v2270_v38, 16  ;;  %v1451_v42 = vpop.f32.mrf.mxu0  ;;  %v1611_v43 = vpop.f32.mrf.mxu1 }
 0x22f   :  { %v2012_v47 = vmax.f32 %v1451_v42, %v1611_v43 }
 0x230   :  { %v2139_v44 = vmax.f32 %v2075_v41, %v1929_v40 }
 0x232   :  { %v2207_v45 = vadd.f32 %v3722_v20, %v2139_v44 }
 0x234   :  { %v2271_v46 = vmax.f32 %v2207_v45, 0.0 }
 0x235   :  { %v1771_v48 = vpop.f32.mrf.mxu2  ;;  %v1931_v49 = vpop.f32.mrf.mxu3 }
 0x236   :  { %v2076_v50 = vmax.f32 %v2012_v47, %v1771_v48  ;;  %2383 = vxpose.xlu0.b32.cont [5/16] (narrow) %v2271_v46, 16  ;;  %v1454_v52 = vpop.f32.mrf.mxu0  ;;  %v1614_v53 = vpop.f32.mrf.mxu1 }
 0x237   :  { %v2013_v56 = vmax.f32 %v1454_v52, %v1614_v53 }
 0x238   :  { %v2140_v54 = vmax.f32 %v2076_v50, %v1931_v49 }
 0x23a   :  { %v2208_v55 = vadd.f32 %v3722_v20, %v2140_v54  ;;  %v2299_v54 = vpop.trf.xlu0 }
 0x23b   :  { %2411 = vst [vmem:[%s3842_s3] sm:$0xff] %v2299_v54 }
 0x23c   :  { %v2272_v57 = vmax.f32 %v2208_v55, 0.0  ;;  %v2331_v55 = vpop.trf.xlu1 }
 0x23d   :  { %v1774_v58 = vpop.f32.mrf.mxu2  ;;  %v1934_v59 = vpop.f32.mrf.mxu3  ;;  %2412 = vst [vmem:[%s3842_s3 + $0x8] sm:$0xff] %v2331_v55 }
 0x23e   :  { %v2077_v60 = vmax.f32 %v2013_v56, %v1774_v58  ;;  %2384 = vxpose.xlu0.b32.cont [6/16] (narrow) %v2272_v57, 16  ;;  %v1456_v61 = vpop.f32.mrf.mxu0  ;;  %v1616_v62 = vpop.f32.mrf.mxu1 }
 0x23f   :  { %v2014_v2 = vmax.f32 %v1456_v61, %v1616_v62  ;;  %v2363_v57 = vpop.trf.xlu2 }
 0x240   :  { %v2141_v63 = vmax.f32 %v2077_v60, %v1934_v59  ;;  %2413 = vst [vmem:[%s3842_s3 + $0x10] sm:$0xff] %v2363_v57 }
 0x242   :  { %v2209_v0 = vadd.f32 %v3722_v20, %v2141_v63 }
 0x244   :  { %v2273_v1 = vmax.f32 %v2209_v0, 0.0 }
 0x245   :  { %v1776_v3 = vpop.f32.mrf.mxu2  ;;  %v1936_v4 = vpop.f32.mrf.mxu3 }
 0x246   :  { %v2078_v5 = vmax.f32 %v2014_v2, %v1776_v3  ;;  %2385 = vxpose.xlu0.b32.cont [7/16] (narrow) %v2273_v1, 16  ;;  %v1459_v6 = vpop.f32.mrf.mxu0  ;;  %v1619_v7 = vpop.f32.mrf.mxu1 }
 0x247   :  { %v2015_v10 = vmax.f32 %v1459_v6, %v1619_v7  ;;  %v2300_v2 = vpop.trf.xlu0 }
 0x248   :  { %v2142_v8 = vmax.f32 %v2078_v5, %v1936_v4  ;;  %2415 = vst [vmem:[%s3842_s3 + $0x20] sm:$0xff] %v2300_v2 }
 0x24a   :  { %v2210_v9 = vadd.f32 %v3722_v20, %v2142_v8 }
 0x24c   :  { %v2274_v11 = vmax.f32 %v2210_v9, 0.0 }
 0x24d   :  { %v1779_v12 = vpop.f32.mrf.mxu2  ;;  %v1939_v13 = vpop.f32.mrf.mxu3 }
 0x24e   :  { %v2079_v14 = vmax.f32 %v2015_v10, %v1779_v12  ;;  %2386 = vxpose.xlu0.b32.cont [8/16] (narrow) %v2274_v11, 16  ;;  %v1461_v15 = vpop.f32.mrf.mxu0  ;;  %v1621_v16 = vpop.f32.mrf.mxu1 }
 0x24f   :  { %v2016_v19 = vmax.f32 %v1461_v15, %v1621_v16 }
 0x250   :  { %v2143_v51 = vmax.f32 %v2079_v14, %v1939_v13 }
 0x252   :  { %v2211_v17 = vadd.f32 %v3722_v20, %v2143_v51 }
 0x254   :  { %v2275_v18 = vmax.f32 %v2211_v17, 0.0 }
 0x255   :  { %v1781_v21 = vpop.f32.mrf.mxu2  ;;  %v1941_v22 = vpop.f32.mrf.mxu3 }
 0x256   :  { %v2080_v23 = vmax.f32 %v2016_v19, %v1781_v21  ;;  %2387 = vxpose.xlu0.b32.cont [9/16] (narrow) %v2275_v18, 16  ;;  %v1464_v24 = vpop.f32.mrf.mxu0  ;;  %v1624_v25 = vpop.f32.mrf.mxu1 }
 0x257   :  { %v2017_v28 = vmax.f32 %v1464_v24, %v1624_v25 }
 0x258   :  { %v2144_v26 = vmax.f32 %v2080_v23, %v1941_v22  ;;  %v2332_v22 = vpop.trf.xlu1  ;;  %v2364_v23 = vpop.trf.xlu2 }
 0x259   :  { %2416 = vst [vmem:[%s3842_s3 + $0x28] sm:$0xff] %v2332_v22 }
 0x25a   :  { %v2212_v27 = vadd.f32 %v3722_v20, %v2144_v26  ;;  %2417 = vst [vmem:[%s3842_s3 + $0x30] sm:$0xff] %v2364_v23 }
 0x25c   :  { %v2276_v29 = vmax.f32 %v2212_v27, 0.0 }
 0x25d   :  { %v1784_v30 = vpop.f32.mrf.mxu2  ;;  %v1944_v31 = vpop.f32.mrf.mxu3 }
 0x25e   :  { %v2081_v32 = vmax.f32 %v2017_v28, %v1784_v30  ;;  %2388 = vxpose.xlu0.b32.cont [10/16] (narrow) %v2276_v29, 16  ;;  %v1466_v33 = vpop.f32.mrf.mxu0  ;;  %v1626_v34 = vpop.f32.mrf.mxu1 }
 0x25f   :  { %v2018_v38 = vmax.f32 %v1466_v33, %v1626_v34 }
 0x260   :  { %v2145_v35 = vmax.f32 %v2081_v32, %v1944_v31 }
 0x262   :  { %v2213_v36 = vadd.f32 %v3722_v20, %v2145_v35 }
 0x264   :  { %v2277_v37 = vmax.f32 %v2213_v36, 0.0 }
 0x265   :  { %v1786_v39 = vpop.f32.mrf.mxu2  ;;  %v1946_v40 = vpop.f32.mrf.mxu3 }
 0x266   :  { %v2082_v41 = vmax.f32 %v2018_v38, %v1786_v39  ;;  %2389 = vxpose.xlu0.b32.cont [11/16] (narrow) %v2277_v37, 16  ;;  %v1469_v42 = vpop.f32.mrf.mxu0  ;;  %v1629_v43 = vpop.f32.mrf.mxu1 }
 0x267   :  { %v2019_v46 = vmax.f32 %v1469_v42, %v1629_v43 }
 0x268   :  { %v2146_v44 = vmax.f32 %v2082_v41, %v1946_v40 }
 0x26a   :  { %v2214_v45 = vadd.f32 %v3722_v20, %v2146_v44 }
 0x26c   :  { %v2278_v47 = vmax.f32 %v2214_v45, 0.0 }
 0x26d   :  { %v1789_v48 = vpop.f32.mrf.mxu2  ;;  %v1949_v49 = vpop.f32.mrf.mxu3 }
 0x26e   :  { %v2083_v50 = vmax.f32 %v2019_v46, %v1789_v48  ;;  %2390 = vxpose.xlu0.b32.cont [12/16] (narrow) %v2278_v47, 16  ;;  %v1471_v52 = vpop.f32.mrf.mxu0  ;;  %v1631_v53 = vpop.f32.mrf.mxu1 }
 0x26f   :  { %v2020_v60 = vmax.f32 %v1471_v52, %v1631_v53 }
 0x270   :  { %v2147_v56 = vmax.f32 %v2083_v50, %v1949_v49 }
 0x272   :  { %v2215_v58 = vadd.f32 %v3722_v20, %v2147_v56 }
 0x274   :  { %v2279_v59 = vmax.f32 %v2215_v58, 0.0 }
 0x275   :  { %v1791_v61 = vpop.f32.mrf.mxu2  ;;  %v1951_v62 = vpop.f32.mrf.mxu3 }
 0x276   :  { %v2084_v63 = vmax.f32 %v2020_v60, %v1791_v61  ;;  %2391 = vxpose.xlu0.b32.cont [13/16] (narrow) %v2279_v59, 16  ;;  %v1474_v0 = vpop.f32.mrf.mxu0  ;;  %v1634_v1 = vpop.f32.mrf.mxu1 }
 0x277   :  { %v2021_v5 = vmax.f32 %v1474_v0, %v1634_v1 }
 0x278   :  { %v2148_v3 = vmax.f32 %v2084_v63, %v1951_v62 }
 0x27a   :  { %v2216_v4 = vadd.f32 %v3722_v20, %v2148_v3 }
 0x27c   :  { %v2280_v6 = vmax.f32 %v2216_v4, 0.0 }
 0x27d   :  { %v1794_v7 = vpop.f32.mrf.mxu2  ;;  %v1954_v8 = vpop.f32.mrf.mxu3 }
 0x27e   :  { %v2085_v9 = vmax.f32 %v2021_v5, %v1794_v7  ;;  %2392 = vxpose.xlu0.b32.cont [14/16] (narrow) %v2280_v6, 16  ;;  %v1476_v11 = vpop.f32.mrf.mxu0  ;;  %v1636_v12 = vpop.f32.mrf.mxu1 }
 0x27f   :  { %v2022_v15 = vmax.f32 %v1476_v11, %v1636_v12 }
 0x280   :  { %v2149_v10 = vmax.f32 %v2085_v9, %v1954_v8 }
 0x282   :  { %v2217_v13 = vadd.f32 %v3722_v20, %v2149_v10 }
 0x284   :  { %v2281_v14 = vmax.f32 %v2217_v13, 0.0 }
 0x285   :  { %v1796_v16 = vpop.f32.mrf.mxu2  ;;  %v1956_v17 = vpop.f32.mrf.mxu3 }
 0x286   :  { %v2086_v51 = vmax.f32 %v2022_v15, %v1796_v16  ;;  %2393 = vxpose.xlu0.b32.cont [15/16] (narrow) %v2281_v14, 16 }
 0x288   :  { %v2150_v18 = vmax.f32 %v2086_v51, %v1956_v17 }
 0x28a   :  { %v2218_v19 = vadd.f32 %v3722_v20, %v2150_v18 }
 0x28c   :  { %v2282_v21 = vmax.f32 %v2218_v19, 0.0 }
 0x28e   :  { %2394 = vxpose.xlu0.b32.end [16/16] (narrow) %v2282_v21, 16 }
 0x2ba   :  { %v2395_v24 = vpop.trf.xlu0 }
 0x2bb   :  { %2414 = vst [vmem:[%s3842_s3 + $0x18] sm:$0xff] %v2395_v24 }
 0x2c2   :  { %v2396_v25 = vpop.trf.xlu0 }
 0x2c3   :  { %2418 = vst [vmem:[%s3842_s3 + $0x38] sm:$0xff] %v2396_v25 }

// kernel: cnn_forward.4
= control target key start
LH: loop header
LB: loop body
LE: loop exit
PB: predicated region body
PF: predicated region fallthrough
CT: control target
= control target key end

     0   :  { %vm439_vm0 = vcmask 130048   ;;  %s2051_s1 = inlined_call_operand.vmem [shape: bf16[144,128], index: 1, kind: input, shape index: {}]   ;;  %s2052_s0 = inlined_call_operand.vmem [shape: bf16[4,128,144], index: 0, kind: input, shape index: {}]   ;;  %s2053_s2 = inlined_call_operand.vmem [shape: f32[1,128], index: 2, kind: input, shape index: {}]   ;;  %s2054_s3 = inlined_call_operand.vmem [shape: f32[32,128], index: 3, kind: output, shape index: {}]  }
   0x1   :  { %v1393_v0 = vld [vmem:[%s2051_s1 + $0x38] sm:$0xff]  ;;  %v1394_v1 = vld [vmem:[%s2051_s1 + $0x40] sm:$0xff]  ;;  %v1002_v3 = vld [vmem:[%s2052_s0 + $0x8] sm:$0xf0] }
   0x2   :  { %v1322_v2 = vld [vmem:[%s2052_s0 + $0x4] sm:$0xf]  ;;  %536 = vmatpush.bf16.msra.mxu0 %v1393_v0  ;;  %1395 = vmatpush.bf16.msra.mxu2 %v1393_v0  ;;  %v1392_v5 = vld [vmem:[%s2051_s1 + $0x30] sm:$0xff]  ;;  %v1391_v6 = vld [vmem:[%s2051_s1 + $0x28] sm:$0xff] }
   0x3   :  { %v1005_v4 = vor.u32 %v1322_v2, %v1002_v3  ;;  %712 = vmatpush.bf16.msra.mxu1 %v1394_v1  ;;  %1403 = vmatpush.bf16.msra.mxu3 %v1394_v1  ;;  %v1390_v7 = vld [vmem:[%s2051_s1 + $0x20] sm:$0xff]  ;;  %v1389_v8 = vld [vmem:[%s2051_s1 + $0x18] sm:$0xff]  ;;  %v1324_v9 = vld [vmem:[%s2052_s0 + $0x14] sm:$0xf] }
   0x4   :  { %v1010_v10 = vld [vmem:[%s2052_s0 + $0x18] sm:$0xf0]  ;;  %v1356_v11 = vld [vmem:[%s2052_s0 + $0x114] sm:$0xf]  ;;  %v1387_v16 = vld [vmem:[%s2051_s1 + $0x8] sm:$0xff] }
   0x5   :  { %v1138_v12 = vld [vmem:[%s2052_s0 + $0x118] sm:$0xf0]  ;;  %v1013_v14 = vor.u32 %v1324_v9, %v1010_v10  ;;  %v1388_v15 = vld [vmem:[%s2051_s1 + $0x10] sm:$0xff]  ;;  %v1386_v17 = vld [vmem:[%s2051_s1] sm:$0xff] }
   0x6   :  { %1290 = vmatmul.msk.bf16.vlgmr.msra.gmra.mxu1 %vm439_vm0, %v1005_v4  ;;  %537 = vmatpush.bf16.msra.mxu0 %v1392_v5  ;;  %v1141_v13 = vor.u32 %v1356_v11, %v1138_v12  ;;  %v1000_v18 = vld [vmem:[%s2052_s0] sm:$0xf]  ;;  %v1323_v19 = vld [vmem:[%s2052_s0 + $0x4] sm:$0xf0]  ;;  %v1326_v24 = vld [vmem:[%s2052_s0 + $0x24] sm:$0xf] }
   0x7   :  { %1396 = vmatpush.bf16.msra.mxu2 %v1392_v5  ;;  %v1128_v20 = vld [vmem:[%s2052_s0 + $0x100] sm:$0xf]  ;;  %v1355_v21 = vld [vmem:[%s2052_s0 + $0x104] sm:$0xf0]  ;;  %v1001_v22 = vor.u32 %v1323_v19, %v1000_v18  ;;  %v1018_v25 = vld [vmem:[%s2052_s0 + $0x28] sm:$0xf0] }
   0x8   :  { %1307 = vmatmul.msk.bf16.vlgmr.msra.gmra.mxu3 %vm439_vm0, %v1141_v13  ;;  %v1129_v23 = vor.u32 %v1355_v21, %v1128_v20  ;;  %v1358_v26 = vld [vmem:[%s2052_s0 + $0x124] sm:$0xf]  ;;  %v1146_v27 = vld [vmem:[%s2052_s0 + $0x128] sm:$0xf0]  ;;  %v1021_v29 = vor.u32 %v1326_v24, %v1018_v25  ;;  %v1008_v30 = vld [vmem:[%s2052_s0 + $0x10] sm:$0xf] }
   0x9   :  { %v1149_v28 = vor.u32 %v1358_v26, %v1146_v27  ;;  %v1325_v31 = vld [vmem:[%s2052_s0 + $0x14] sm:$0xf0]  ;;  %v1136_v32 = vld [vmem:[%s2052_s0 + $0x110] sm:$0xf]  ;;  %v1328_v36 = vld [vmem:[%s2052_s0 + $0x34] sm:$0xf] }
   0xa   :  { %538 = vmatpush.bf16.msra.mxu0 %v1391_v6  ;;  %v1357_v33 = vld [vmem:[%s2052_s0 + $0x114] sm:$0xf0]  ;;  %v1009_v34 = vor.u32 %v1325_v31, %v1008_v30  ;;  %v1026_v37 = vld [vmem:[%s2052_s0 + $0x38] sm:$0xf0]  ;;  %v1360_v38 = vld [vmem:[%s2052_s0 + $0x134] sm:$0xf] }
   0xb   :  { %1397 = vmatpush.bf16.msra.mxu2 %v1391_v6  ;;  %v1137_v35 = vor.u32 %v1357_v33, %v1136_v32  ;;  %v1154_v39 = vld [vmem:[%s2052_s0 + $0x138] sm:$0xf0]  ;;  %v1029_v41 = vor.u32 %v1328_v36, %v1026_v37  ;;  %v1016_v42 = vld [vmem:[%s2052_s0 + $0x20] sm:$0xf]  ;;  %v1327_v43 = vld [vmem:[%s2052_s0 + $0x24] sm:$0xf0] }
   0xc   :  { %v1157_v40 = vor.u32 %v1360_v38, %v1154_v39  ;;  %v1144_v44 = vld [vmem:[%s2052_s0 + $0x120] sm:$0xf]  ;;  %v1359_v45 = vld [vmem:[%s2052_s0 + $0x124] sm:$0xf0]  ;;  %v1017_v46 = vor.u32 %v1327_v43, %v1016_v42  ;;  %v1330_v48 = vld [vmem:[%s2052_s0 + $0x44] sm:$0xf] }
   0xd   :  { %v1145_v47 = vor.u32 %v1359_v45, %v1144_v44  ;;  %v1034_v49 = vld [vmem:[%s2052_s0 + $0x48] sm:$0xf0]  ;;  %v1362_v50 = vld [vmem:[%s2052_s0 + $0x144] sm:$0xf]  ;;  %v1024_v54 = vld [vmem:[%s2052_s0 + $0x30] sm:$0xf] }
   0xe   :  { %539 = vmatpush.bf16.msra.mxu0 %v1390_v7  ;;  %v1162_v51 = vld [vmem:[%s2052_s0 + $0x148] sm:$0xf0]  ;;  %v1037_v53 = vor.u32 %v1330_v48, %v1034_v49  ;;  %v1329_v55 = vld [vmem:[%s2052_s0 + $0x34] sm:$0xf0]  ;;  %v1152_v56 = vld [vmem:[%s2052_s0 + $0x130] sm:$0xf] }
   0xf   :  { %1398 = vmatpush.bf16.msra.mxu2 %v1390_v7  ;;  %v1165_v52 = vor.u32 %v1362_v50, %v1162_v51  ;;  %v1361_v57 = vld [vmem:[%s2052_s0 + $0x134] sm:$0xf0]  ;;  %v1025_v58 = vor.u32 %v1329_v55, %v1024_v54  ;;  %v1332_v60 = vld [vmem:[%s2052_s0 + $0x54] sm:$0xf]  ;;  %v1042_v61 = vld [vmem:[%s2052_s0 + $0x58] sm:$0xf0] }
  0x10   :  { %v1153_v59 = vor.u32 %v1361_v57, %v1152_v56  ;;  %v1364_v62 = vld [vmem:[%s2052_s0 + $0x154] sm:$0xf]  ;;  %v1170_v63 = vld [vmem:[%s2052_s0 + $0x158] sm:$0xf0]  ;;  %v1045_v1 = vor.u32 %v1332_v60, %v1042_v61  ;;  %v1032_v2 = vld [vmem:[%s2052_s0 + $0x40] sm:$0xf] }
  0x11   :  { %v1173_v0 = vor.u32 %v1364_v62, %v1170_v63  ;;  %v1331_v3 = vld [vmem:[%s2052_s0 + $0x44] sm:$0xf0]  ;;  %v1160_v4 = vld [vmem:[%s2052_s0 + $0x140] sm:$0xf]  ;;  %v1050_v9 = vld [vmem:[%s2052_s0 + $0x68] sm:$0xf0] }
  0x12   :  { %540 = vmatpush.bf16.msra.mxu0 %v1389_v8  ;;  %v1363_v5 = vld [vmem:[%s2052_s0 + $0x144] sm:$0xf0]  ;;  %v1033_v6 = vor.u32 %v1331_v3, %v1032_v2  ;;  %v1366_v10 = vld [vmem:[%s2052_s0 + $0x164] sm:$0xf]  ;;  %v1178_v11 = vld [vmem:[%s2052_s0 + $0x168] sm:$0xf0] }
  0x13   :  { %1399 = vmatpush.bf16.msra.mxu2 %v1389_v8  ;;  %v1161_v7 = vor.u32 %v1363_v5, %v1160_v4  ;;  %v1334_v8 = vld [vmem:[%s2052_s0 + $0x64] sm:$0xf]  ;;  %v1181_v12 = vor.u32 %v1366_v10, %v1178_v11  ;;  %v1336_v20 = vld [vmem:[%s2052_s0 + $0x74] sm:$0xf]  ;;  %v1058_v21 = vld [vmem:[%s2052_s0 + $0x78] sm:$0xf0] }
  0x14   :  { %v1053_v13 = vor.u32 %v1334_v8, %v1050_v9  ;;  %v1061_v25 = vor.u32 %v1336_v20, %v1058_v21  ;;  %v1048_v26 = vld [vmem:[%s2052_s0 + $0x60] sm:$0xf]  ;;  %v1335_v27 = vld [vmem:[%s2052_s0 + $0x64] sm:$0xf0]  ;;  %v1338_v32 = vld [vmem:[%s2052_s0 + $0x84] sm:$0xf] }
  0x15   :  { %v1049_v30 = vor.u32 %v1335_v27, %v1048_v26  ;;  %v1066_v33 = vld [vmem:[%s2052_s0 + $0x88] sm:$0xf0]  ;;  %v1056_v39 = vld [vmem:[%s2052_s0 + $0x70] sm:$0xf]  ;;  %v1369_v43 = vld [vmem:[%s2052_s0 + $0x174] sm:$0xf0] }
  0x16   :  { %1291 = vmatmul.msk.bf16.gmra.mxu1 %vm439_vm0, %v1013_v14  ;;  %541 = vmatpush.bf16.msra.mxu0 %v1388_v15  ;;  %v1040_v14 = vld [vmem:[%s2052_s0 + $0x50] sm:$0xf]  ;;  %v1069_v37 = vor.u32 %v1338_v32, %v1066_v33  ;;  %v1372_v48 = vld [vmem:[%s2052_s0 + $0x194] sm:$0xf]  ;;  %v1202_v49 = vld [vmem:[%s2052_s0 + $0x198] sm:$0xf0] }
  0x17   :  { %1400 = vmatpush.bf16.msra.mxu2 %v1388_v15  ;;  %v1333_v15 = vld [vmem:[%s2052_s0 + $0x54] sm:$0xf0]  ;;  %v1184_v42 = vld [vmem:[%s2052_s0 + $0x170] sm:$0xf]  ;;  %v1205_v50 = vor.u32 %v1372_v48, %v1202_v49  ;;  %v1339_v54 = vld [vmem:[%s2052_s0 + $0x84] sm:$0xf0] }
  0x18   :  { %1308 = vmatmul.msk.bf16.gmra.mxu3 %vm439_vm0, %v1149_v28  ;;  %v1041_v18 = vor.u32 %v1333_v15, %v1040_v14  ;;  %v1176_v28 = vld [vmem:[%s2052_s0 + $0x160] sm:$0xf]  ;;  %v1185_v45 = vor.u32 %v1369_v43, %v1184_v42  ;;  %v1371_v57 = vld [vmem:[%s2052_s0 + $0x184] sm:$0xf0]  ;;  %v1342_v63 = vld [vmem:[%s2052_s0 + $0xa4] sm:$0xf] }
  0x19   :  { %v1192_v56 = vld [vmem:[%s2052_s0 + $0x180] sm:$0xf]  ;;  %v1210_v2 = vld [vmem:[%s2052_s0 + $0x1a8] sm:$0xf0]  ;;  %v1072_v10 = vld [vmem:[%s2052_s0 + $0x90] sm:$0xf] }
  0x1a   :  { %542 = vmatpush.bf16.msra.mxu0 %v1387_v16  ;;  %v1193_v61 = vor.u32 %v1371_v57, %v1192_v56  ;;  %v1341_v11 = vld [vmem:[%s2052_s0 + $0x94] sm:$0xf0]  ;;  %v1344_v20 = vld [vmem:[%s2052_s0 + $0xb4] sm:$0xf]  ;;  %v1090_v21 = vld [vmem:[%s2052_s0 + $0xb8] sm:$0xf0] }
  0x1b   :  { %1401 = vmatpush.bf16.msra.mxu2 %v1387_v16  ;;  %v1168_v16 = vld [vmem:[%s2052_s0 + $0x150] sm:$0xf]  ;;  %v1373_v14 = vld [vmem:[%s2052_s0 + $0x194] sm:$0xf0]  ;;  %v1093_v26 = vor.u32 %v1344_v20, %v1090_v21  ;;  %v1080_v33 = vld [vmem:[%s2052_s0 + $0xa0] sm:$0xf] }
  0x1c   :  { %v1088_v56 = vld [vmem:[%s2052_s0 + $0xb0] sm:$0xf]  ;;  %v1345_v57 = vld [vmem:[%s2052_s0 + $0xb4] sm:$0xf0]  ;;  %v1096_v21 = vld [vmem:[%s2052_s0 + $0xc0] sm:$0xf] }
  0x1e   :  { %543 = vmatpush.bf16.msra.mxu0 %v1386_v17 }
  0x1f   :  { %1402 = vmatpush.bf16.msra.mxu2 %v1386_v17  ;;  %v1365_v17 = vld [vmem:[%s2052_s0 + $0x154] sm:$0xf0] }
  0x20   :  { %v1169_v19 = vor.u32 %v1365_v17, %v1168_v16  ;;  %v1073_v16 = vor.u32 %v1341_v11, %v1072_v10  ;;  %v1234_v10 = vld [vmem:[%s2052_s0 + $0x1d8] sm:$0xf0] }
  0x21   :  { %544 = vmatmul.bf16.vlgmr.msra.gmra.mxu0 %v1001_v22  ;;  %v1368_v22 = vld [vmem:[%s2052_s0 + $0x174] sm:$0xf] }
  0x22   :  { %624 = vmatmul.bf16.vlgmr.msra.gmra.mxu2 %v1129_v23  ;;  %v1186_v23 = vld [vmem:[%s2052_s0 + $0x178] sm:$0xf0] }
  0x23   :  { %v1189_v24 = vor.u32 %v1368_v22, %v1186_v23  ;;  %v1376_v23 = vld [vmem:[%s2052_s0 + $0x1b4] sm:$0xf] }
  0x26   :  { %1292 = vmatmul.msk.bf16.gmra.mxu1 %vm439_vm0, %v1021_v29  ;;  %v1367_v29 = vld [vmem:[%s2052_s0 + $0x164] sm:$0xf0] }
  0x27   :  { %v1177_v31 = vor.u32 %v1367_v29, %v1176_v28 }
  0x28   :  { %1309 = vmatmul.msk.bf16.gmra.mxu3 %vm439_vm0, %v1157_v40  ;;  %v1337_v40 = vld [vmem:[%s2052_s0 + $0x74] sm:$0xf0] }
  0x29   :  { %v1057_v44 = vor.u32 %v1337_v40, %v1056_v39 }
  0x31   :  { %549 = vmatmul.bf16.gmra.mxu0 %v1009_v34  ;;  %v1370_v34 = vld [vmem:[%s2052_s0 + $0x184] sm:$0xf] }
  0x32   :  { %629 = vmatmul.bf16.gmra.mxu2 %v1137_v35  ;;  %v1194_v35 = vld [vmem:[%s2052_s0 + $0x188] sm:$0xf0] }
  0x33   :  { %v1197_v36 = vor.u32 %v1370_v34, %v1194_v35  ;;  %v1343_v34 = vld [vmem:[%s2052_s0 + $0xa4] sm:$0xf0] }
  0x34   :  { %v1081_v39 = vor.u32 %v1343_v34, %v1080_v33  ;;  %v1350_v34 = vld [vmem:[%s2052_s0 + $0xe4] sm:$0xf] }
  0x36   :  { %1293 = vmatmul.msk.bf16.gmra.mxu1 %vm439_vm0, %v1029_v41 }
  0x38   :  { %1310 = vmatmul.msk.bf16.gmra.mxu3 %vm439_vm0, %v1165_v52 }
  0x41   :  { %554 = vmatmul.bf16.gmra.mxu0 %v1017_v46  ;;  %v1340_v46 = vld [vmem:[%s2052_s0 + $0x94] sm:$0xf] }
  0x42   :  { %634 = vmatmul.bf16.gmra.mxu2 %v1145_v47  ;;  %v1074_v47 = vld [vmem:[%s2052_s0 + $0x98] sm:$0xf0] }
  0x43   :  { %v1077_v51 = vor.u32 %v1340_v46, %v1074_v47  ;;  %v1378_v46 = vld [vmem:[%s2052_s0 + $0x1c4] sm:$0xf]  ;;  %v1226_v47 = vld [vmem:[%s2052_s0 + $0x1c8] sm:$0xf0] }
  0x44   :  { %v1229_v48 = vor.u32 %v1378_v46, %v1226_v47 }
  0x46   :  { %1294 = vmatmul.msk.bf16.gmra.mxu1 %vm439_vm0, %v1037_v53  ;;  %v1064_v53 = vld [vmem:[%s2052_s0 + $0x80] sm:$0xf] }
  0x48   :  { %1311 = vmatmul.msk.bf16.gmra.mxu3 %vm439_vm0, %v1173_v0  ;;  %v1082_v0 = vld [vmem:[%s2052_s0 + $0xa8] sm:$0xf0] }
  0x49   :  { %v1085_v4 = vor.u32 %v1342_v63, %v1082_v0  ;;  %v1089_v63 = vor.u32 %v1345_v57, %v1088_v56 }
  0x51   :  { %559 = vmatmul.bf16.gmra.mxu0 %v1025_v58 }
  0x52   :  { %639 = vmatmul.bf16.gmra.mxu2 %v1153_v59  ;;  %v1065_v59 = vor.u32 %v1339_v54, %v1064_v53 }
  0x56   :  { %1295 = vmatmul.msk.bf16.gmra.mxu1 %vm439_vm0, %v1045_v1  ;;  %v1374_v1 = vld [vmem:[%s2052_s0 + $0x1a4] sm:$0xf] }
  0x57   :  { %v1213_v3 = vor.u32 %v1374_v1, %v1210_v2 }
  0x58   :  { %1312 = vmatmul.msk.bf16.gmra.mxu3 %vm439_vm0, %v1181_v12 }
  0x61   :  { %564 = vmatmul.bf16.gmra.mxu0 %v1033_v6 }
  0x62   :  { %644 = vmatmul.bf16.gmra.mxu2 %v1161_v7 }
  0x66   :  { %1296 = vmatmul.msk.bf16.gmra.mxu1 %vm439_vm0, %v1053_v13  ;;  %v1200_v13 = vld [vmem:[%s2052_s0 + $0x190] sm:$0xf] }
  0x68   :  { %1313 = vmatmul.msk.bf16.gmra.mxu3 %vm439_vm0, %v1189_v24  ;;  %v1218_v24 = vld [vmem:[%s2052_s0 + $0x1b8] sm:$0xf0] }
  0x71   :  { %569 = vmatmul.bf16.gmra.mxu0 %v1041_v18  ;;  %v1201_v18 = vor.u32 %v1373_v14, %v1200_v13 }
  0x72   :  { %649 = vmatmul.bf16.gmra.mxu2 %v1169_v19 }
  0x76   :  { %1297 = vmatmul.msk.bf16.gmra.mxu1 %vm439_vm0, %v1061_v25  ;;  %v1221_v25 = vor.u32 %v1376_v23, %v1218_v24  ;;  %v1224_v24 = vld [vmem:[%s2052_s0 + $0x1c0] sm:$0xf] }
  0x78   :  { %1314 = vmatmul.msk.bf16.gmra.mxu3 %vm439_vm0, %v1197_v36  ;;  %v1208_v36 = vld [vmem:[%s2052_s0 + $0x1a0] sm:$0xf] }
  0x81   :  { %574 = vmatmul.bf16.gmra.mxu0 %v1049_v30 }
  0x82   :  { %654 = vmatmul.bf16.gmra.mxu2 %v1177_v31 }
  0x83   :  { %v714_v38 = vpop.f32.mrf.mxu1 }
  0x86   :  { %1298 = vmatmul.msk.bf16.gmra.mxu1 %vm439_vm0, %v1069_v37  ;;  %v1375_v37 = vld [vmem:[%s2052_s0 + $0x1a4] sm:$0xf0] }
  0x87   :  { %v1209_v42 = vor.u32 %v1375_v37, %v1208_v36  ;;  %v1382_v36 = vld [vmem:[%s2052_s0 + $0x1e4] sm:$0xf]  ;;  %v1242_v37 = vld [vmem:[%s2052_s0 + $0x1e8] sm:$0xf0] }
  0x88   :  { %1315 = vmatmul.msk.bf16.gmra.mxu3 %vm439_vm0, %v1205_v50 }
  0x8b   :  { %v716_v41 = vpop.f32.mrf.mxu1  ;;  %v799_v58 = vpop.f32.mrf.mxu3 }
  0x91   :  { %579 = vmatmul.bf16.gmra.mxu0 %v1057_v44  ;;  %v1346_v44 = vld [vmem:[%s2052_s0 + $0xc4] sm:$0xf] }
  0x92   :  { %659 = vmatmul.bf16.gmra.mxu2 %v1185_v45  ;;  %v1098_v45 = vld [vmem:[%s2052_s0 + $0xc8] sm:$0xf0] }
  0x93   :  { %v719_v52 = vpop.f32.mrf.mxu1  ;;  %v801_v7 = vpop.f32.mrf.mxu3  ;;  %v1101_v49 = vor.u32 %v1346_v44, %v1098_v45 }
  0x96   :  { %1299 = vmatmul.msk.bf16.gmra.mxu1 %vm439_vm0, %v1077_v51 }
  0x98   :  { %1316 = vmatmul.msk.bf16.gmra.mxu3 %vm439_vm0, %v1213_v3 }
  0x9b   :  { %v721_v55 = vpop.f32.mrf.mxu1  ;;  %v804_v22 = vpop.f32.mrf.mxu3 }
  0x9e   :  { %v545_v60 = vpop.f32.mrf.mxu0 }
  0x9f   :  { %v1693_v62 = vadd.f32 %v714_v38, %v545_v60  ;;  %v1377_v60 = vld [vmem:[%s2052_s0 + $0x1b4] sm:$0xf0] }
  0xa1   :  { %584 = vmatmul.bf16.gmra.mxu0 %v1065_v59  ;;  %v1216_v59 = vld [vmem:[%s2052_s0 + $0x1b0] sm:$0xf] }
  0xa2   :  { %664 = vmatmul.bf16.gmra.mxu2 %v1193_v61  ;;  %v1217_v3 = vor.u32 %v1377_v60, %v1216_v59 }
  0xa3   :  { %v724_v5 = vpop.f32.mrf.mxu1  ;;  %v806_v32 = vpop.f32.mrf.mxu3 }
  0xa5   :  { %v1708_v6 = vpop.f32.mrf.mxu2 }
  0xa6   :  { %1300 = vmatmul.msk.bf16.gmra.mxu1 %vm439_vm0, %v1085_v4  ;;  %v547_v8 = vpop.f32.mrf.mxu0 }
  0xa7   :  { %v1711_v9 = vadd.f32 %v716_v41, %v547_v8  ;;  %v1380_v8 = vld [vmem:[%s2052_s0 + $0x1d4] sm:$0xf] }
  0xa8   :  { %1317 = vmatmul.msk.bf16.gmra.mxu3 %vm439_vm0, %v1221_v25  ;;  %v1237_v11 = vor.u32 %v1380_v8, %v1234_v10  ;;  %v1379_v25 = vld [vmem:[%s2052_s0 + $0x1c4] sm:$0xf0] }
  0xab   :  { %v726_v12 = vpop.f32.mrf.mxu1  ;;  %v809_v51 = vpop.f32.mrf.mxu3 }
  0xad   :  { %v1725_v15 = vpop.f32.mrf.mxu2 }
  0xae   :  { %v550_v17 = vpop.f32.mrf.mxu0 }
  0xaf   :  { %v1727_v19 = vadd.f32 %v719_v52, %v550_v17 }
  0xb1   :  { %589 = vmatmul.bf16.gmra.mxu0 %v1073_v16 }
  0xb2   :  { %669 = vmatmul.bf16.gmra.mxu2 %v1201_v18 }
  0xb3   :  { %v729_v27 = vpop.f32.mrf.mxu1  ;;  %v811_v0 = vpop.f32.mrf.mxu3 }
  0xb5   :  { %v630_v28 = vpop.f32.mrf.mxu2 }
  0xb6   :  { %v1742_v29 = vadd.f32 %v799_v58, %v630_v28  ;;  %1301 = vmatmul.msk.bf16.gmra.mxu1 %vm439_vm0, %v1093_v26  ;;  %v552_v30 = vpop.f32.mrf.mxu0 }
  0xb7   :  { %v1745_v31 = vadd.f32 %v721_v55, %v552_v30 }
  0xb8   :  { %1318 = vmatmul.msk.bf16.gmra.mxu3 %vm439_vm0, %v1229_v48  ;;  %v1104_v48 = vld [vmem:[%s2052_s0 + $0xd0] sm:$0xf] }
  0xbb   :  { %v731_v35 = vpop.f32.mrf.mxu1  ;;  %v814_v20 = vpop.f32.mrf.mxu3 }
  0xbd   :  { %v632_v38 = vpop.f32.mrf.mxu2 }
  0xbe   :  { %v1759_v40 = vadd.f32 %v801_v7, %v632_v38  ;;  %v555_v41 = vpop.f32.mrf.mxu0  ;;  %v1106_v7 = vld [vmem:[%s2052_s0 + $0xd8] sm:$0xf0] }
  0xbf   :  { %v1761_v43 = vadd.f32 %v724_v5, %v555_v41  ;;  %v1348_v5 = vld [vmem:[%s2052_s0 + $0xd4] sm:$0xf] }
  0xc1   :  { %594 = vmatmul.bf16.gmra.mxu0 %v1081_v39  ;;  %v1245_v39 = vor.u32 %v1382_v36, %v1242_v37  ;;  %v1130_v36 = vld [vmem:[%s2052_s0 + $0x108] sm:$0xf0] }
  0xc2   :  { %674 = vmatmul.bf16.gmra.mxu2 %v1209_v42 }
  0xc3   :  { %v734_v50 = vpop.f32.mrf.mxu1  ;;  %v816_v38 = vpop.f32.mrf.mxu3 }
  0xc5   :  { %v635_v52 = vpop.f32.mrf.mxu2 }
  0xc6   :  { %v1776_v53 = vadd.f32 %v804_v22, %v635_v52  ;;  %1302 = vmatmul.msk.bf16.gmra.mxu1 %vm439_vm0, %v1101_v49  ;;  %v557_v54 = vpop.f32.mrf.mxu0  ;;  %v1347_v22 = vld [vmem:[%s2052_s0 + $0xc4] sm:$0xf0]  ;;  %v1349_v49 = vld [vmem:[%s2052_s0 + $0xd4] sm:$0xf0] }
  0xc7   :  { %v1779_v55 = vadd.f32 %v726_v12, %v557_v54  ;;  %v1109_v12 = vor.u32 %v1348_v5, %v1106_v7  ;;  %v1381_v52 = vld [vmem:[%s2052_s0 + $0x1d4] sm:$0xf0]  ;;  %v1105_v57 = vor.u32 %v1349_v49, %v1104_v48  ;;  %v1120_v48 = vld [vmem:[%s2052_s0 + $0xf0] sm:$0xf] }
  0xc8   :  { %1319 = vmatmul.msk.bf16.gmra.mxu3 %vm439_vm0, %v1237_v11  ;;  %v1353_v49 = vld [vmem:[%s2052_s0 + $0xf4] sm:$0xf0] }
  0xcb   :  { %v736_v58 = vpop.f32.mrf.mxu1  ;;  %v819_v54 = vpop.f32.mrf.mxu3 }
  0xcd   :  { %v637_v61 = vpop.f32.mrf.mxu2 }
  0xce   :  { %v1793_v1 = vadd.f32 %v806_v32, %v637_v61  ;;  %v560_v2 = vpop.f32.mrf.mxu0  ;;  %v1225_v32 = vor.u32 %v1379_v25, %v1224_v24  ;;  %v1383_v24 = vld [vmem:[%s2052_s0 + $0x1e4] sm:$0xf0] }
  0xcf   :  { %v1795_v4 = vadd.f32 %v729_v27, %v560_v2  ;;  %v1097_v27 = vor.u32 %v1347_v22, %v1096_v21  ;;  %v1384_v2 = vld [vmem:[%s2052_s0 + $0x1f4] sm:$0xf]  ;;  %v1240_v22 = vld [vmem:[%s2052_s0 + $0x1e0] sm:$0xf] }
  0xd1   :  { %599 = vmatmul.bf16.gmra.mxu0 %v1089_v63  ;;  %v1352_v63 = vld [vmem:[%s2052_s0 + $0xf4] sm:$0xf] }
  0xd2   :  { %679 = vmatmul.bf16.gmra.mxu2 %v1217_v3  ;;  %v1250_v3 = vld [vmem:[%s2052_s0 + $0x1f8] sm:$0xf0] }
  0xd3   :  { %v739_v13 = vpop.f32.mrf.mxu1  ;;  %v1253_v5 = vor.u32 %v1384_v2, %v1250_v3  ;;  %v821_v11 = vpop.f32.mrf.mxu3 }
  0xd5   :  { %v640_v14 = vpop.f32.mrf.mxu2 }
  0xd6   :  { %v1810_v16 = vadd.f32 %v809_v51, %v640_v14  ;;  %1303 = vmatmul.msk.bf16.gmra.mxu1 %vm439_vm0, %v1109_v12  ;;  %v562_v17 = vpop.f32.mrf.mxu0  ;;  %v1232_v51 = vld [vmem:[%s2052_s0 + $0x1d0] sm:$0xf] }
  0xd7   :  { %v1813_v18 = vadd.f32 %v731_v35, %v562_v17  ;;  %v1114_v35 = vld [vmem:[%s2052_s0 + $0xe8] sm:$0xf0]  ;;  %v1233_v60 = vor.u32 %v1381_v52, %v1232_v51  ;;  %v1112_v17 = vld [vmem:[%s2052_s0 + $0xe0] sm:$0xf]  ;;  %v1248_v52 = vld [vmem:[%s2052_s0 + $0x1f0] sm:$0xf] }
  0xd8   :  { %v1117_v41 = vor.u32 %v1350_v34, %v1114_v35  ;;  %1320 = vmatmul.msk.bf16.gmra.mxu3 %vm439_vm0, %v1245_v39  ;;  %v1354_v35 = vld [vmem:[%s2052_s0 + $0x104] sm:$0xf] }
  0xd9   :  { %v1133_v37 = vor.u32 %v1354_v35, %v1130_v36 }
  0xdb   :  { %v741_v23 = vpop.f32.mrf.mxu1  ;;  %v824_v34 = vpop.f32.mrf.mxu3 }
  0xdd   :  { %v642_v26 = vpop.f32.mrf.mxu2 }
  0xde   :  { %v1827_v28 = vadd.f32 %v811_v0, %v642_v26  ;;  %v565_v30 = vpop.f32.mrf.mxu0  ;;  %v1122_v0 = vld [vmem:[%s2052_s0 + $0xf8] sm:$0xf0] }
  0xdf   :  { %v1829_v33 = vadd.f32 %v734_v50, %v565_v30  ;;  %v1125_v7 = vor.u32 %v1352_v63, %v1122_v0  ;;  %v1241_v30 = vor.u32 %v1383_v24, %v1240_v22 }
  0xe1   :  { %604 = vmatmul.bf16.gmra.mxu0 %v1097_v27 }
  0xe2   :  { %684 = vmatmul.bf16.gmra.mxu2 %v1225_v32 }
  0xe3   :  { %v744_v42 = vpop.f32.mrf.mxu1 }
  0xe5   :  { %v645_v44 = vpop.f32.mrf.mxu2 }
  0xe6   :  { %v1844_v45 = vadd.f32 %v814_v20, %v645_v44  ;;  %1304 = vmatmul.msk.bf16.gmra.mxu1 %vm439_vm0, %v1117_v41  ;;  %v567_v46 = vpop.f32.mrf.mxu0  ;;  %v1351_v20 = vld [vmem:[%s2052_s0 + $0xe4] sm:$0xf0] }
  0xe7   :  { %v1847_v47 = vadd.f32 %v736_v58, %v567_v46  ;;  %v826_v46 = vpop.f32.mrf.mxu3 }
  0xe8   :  { %1321 = vmatmul.msk.bf16.gmra.mxu3 %vm439_vm0, %v1253_v5 }
  0xeb   :  { %v746_v50 = vpop.f32.mrf.mxu1 }
  0xed   :  { %v647_v56 = vpop.f32.mrf.mxu2 }
  0xee   :  { %v1861_v58 = vadd.f32 %v816_v38, %v647_v56  ;;  %v570_v59 = vpop.f32.mrf.mxu0  ;;  %v1121_v56 = vor.u32 %v1353_v49, %v1120_v48 }
  0xef   :  { %v1863_v61 = vadd.f32 %v739_v13, %v570_v59  ;;  %v829_v2 = vpop.f32.mrf.mxu3 }
  0xf1   :  { %609 = vmatmul.bf16.gmra.mxu0 %v1105_v57 }
  0xf2   :  { %689 = vmatmul.bf16.gmra.mxu2 %v1233_v60 }
  0xf3   :  { %v749_v8 = vpop.f32.mrf.mxu1 }
  0xf5   :  { %v650_v10 = vpop.f32.mrf.mxu2 }
  0xf6   :  { %v1878_v12 = vadd.f32 %v819_v54, %v650_v10  ;;  %1305 = vmatmul.msk.bf16.gmra.mxu1 %vm439_vm0, %v1125_v7  ;;  %v572_v13 = vpop.f32.mrf.mxu0  ;;  %v1385_v54 = vld [vmem:[%s2052_s0 + $0x1f4] sm:$0xf0] }
  0xf7   :  { %v1881_v14 = vadd.f32 %v741_v23, %v572_v13  ;;  %v1113_v23 = vor.u32 %v1351_v20, %v1112_v17  ;;  %v1249_v60 = vor.u32 %v1385_v54, %v1248_v52  ;;  %v831_v17 = vpop.f32.mrf.mxu3 }
  0xfb   :  { %v751_v21 = vpop.f32.mrf.mxu1 }
  0xfd   :  { %v652_v25 = vpop.f32.mrf.mxu2 }
  0xfe   :  { %v1895_v26 = vadd.f32 %v821_v11, %v652_v25  ;;  %v575_v27 = vpop.f32.mrf.mxu0 }
  0xff   :  { %v1897_v32 = vadd.f32 %v744_v42, %v575_v27 }
 0x101   :  { %614 = vmatmul.bf16.gmra.mxu0 %v1113_v23 }
 0x102   :  { %694 = vmatmul.bf16.gmra.mxu2 %v1241_v30 }
 0x103   :  { %v754_v38 = vpop.f32.mrf.mxu1 }
 0x105   :  { %v655_v39 = vpop.f32.mrf.mxu2 }
 0x106   :  { %v1905_v41 = vadd.f32 %v824_v34, %v655_v39  ;;  %1306 = vmatmul.msk.bf16.gmra.mxu1 %vm439_vm0, %v1133_v37  ;;  %v577_v42 = vpop.f32.mrf.mxu0 }
 0x107   :  { %v1908_v44 = vadd.f32 %v746_v50, %v577_v42 }
 0x10b   :  { %v756_v51 = vpop.f32.mrf.mxu1 }
 0x10d   :  { %v657_v50 = vpop.f32.mrf.mxu2 }
 0x10e   :  { %v1922_v57 = vadd.f32 %v826_v46, %v657_v50  ;;  %v580_v59 = vpop.f32.mrf.mxu0 }
 0x10f   :  { %v1924_v63 = vadd.f32 %v749_v8, %v580_v59 }
 0x111   :  { %619 = vmatmul.bf16.gmra.mxu0 %v1121_v56 }
 0x112   :  { %699 = vmatmul.bf16.gmra.mxu2 %v1249_v60 }
 0x113   :  { %v759_v0 = vpop.f32.mrf.mxu1 }
 0x115   :  { %v660_v3 = vpop.f32.mrf.mxu2 }
 0x116   :  { %v1926_v5 = vadd.f32 %v829_v2, %v660_v3  ;;  %v582_v7 = vpop.f32.mrf.mxu0 }
 0x117   :  { %v1928_v10 = vadd.f32 %v751_v21, %v582_v7 }
 0x11b   :  { %v761_v11 = vpop.f32.mrf.mxu1 }
 0x11d   :  { %v662_v13 = vpop.f32.mrf.mxu2 }
 0x11e   :  { %v1930_v20 = vadd.f32 %v831_v17, %v662_v13  ;;  %v585_v22 = vpop.f32.mrf.mxu0 }
 0x11f   :  { %v1932_v24 = vadd.f32 %v754_v38, %v585_v22 }
 0x121   :  { %v874_v8 = vmax.f32 %v1693_v62, %v1932_v24 }
 0x123   :  { %v764_v25 = vpop.f32.mrf.mxu1 }
 0x126   :  { %v587_v23 = vpop.f32.mrf.mxu0 }
 0x127   :  { %v1936_v27 = vadd.f32 %v756_v51, %v587_v23 }
 0x129   :  { %v875_v30 = vmax.f32 %v1711_v9, %v1936_v27 }
 0x12b   :  { %v766_v21 = vpop.f32.mrf.mxu1 }
 0x12e   :  { %v590_v34 = vpop.f32.mrf.mxu0 }
 0x12f   :  { %v760_v35 = vadd.f32 %v759_v0, %v590_v34 }
 0x131   :  { %v876_v36 = vmax.f32 %v1727_v19, %v760_v35 }
 0x133   :  { %v769_v37 = vpop.f32.mrf.mxu1  ;;  %v1942_v39 = vmax.f32 %v876_v36, %v1742_v29 }
 0x136   :  { %v592_v38 = vpop.f32.mrf.mxu0 }
 0x137   :  { %v762_v42 = vadd.f32 %v761_v11, %v592_v38 }
 0x139   :  { %v877_v46 = vmax.f32 %v1745_v31, %v762_v42 }
 0x13b   :  { %v771_v48 = vpop.f32.mrf.mxu1  ;;  %v1946_v49 = vmax.f32 %v877_v46, %v1759_v40 }
 0x13e   :  { %v595_v51 = vpop.f32.mrf.mxu0 }
 0x13f   :  { %v765_v52 = vadd.f32 %v764_v25, %v595_v51 }
 0x141   :  { %v878_v54 = vmax.f32 %v1761_v43, %v765_v52 }
 0x143   :  { %v774_v50 = vpop.f32.mrf.mxu1  ;;  %v1950_v56 = vmax.f32 %v878_v54, %v1776_v53 }
 0x146   :  { %v597_v19 = vpop.f32.mrf.mxu0 }
 0x147   :  { %v767_v59 = vadd.f32 %v766_v21, %v597_v19 }
 0x149   :  { %v879_v29 = vmax.f32 %v1779_v55, %v767_v59  ;;  %v834_v55 = vpop.f32.mrf.mxu3 }
 0x14b   :  { %v776_v60 = vpop.f32.mrf.mxu1  ;;  %v1954_v0 = vmax.f32 %v879_v29, %v1793_v1  ;;  %v665_v1 = vpop.f32.mrf.mxu2 }
 0x14e   :  { %v600_v31 = vpop.f32.mrf.mxu0 }
 0x14f   :  { %v770_v2 = vadd.f32 %v769_v37, %v600_v31 }
 0x151   :  { %v880_v40 = vmax.f32 %v1795_v4, %v770_v2  ;;  %v836_v35 = vpop.f32.mrf.mxu3 }
 0x153   :  { %v779_v3 = vpop.f32.mrf.mxu1  ;;  %v1958_v7 = vmax.f32 %v880_v40, %v1810_v16  ;;  %v667_v36 = vpop.f32.mrf.mxu2 }
 0x156   :  { %v602_v43 = vpop.f32.mrf.mxu0 }
 0x157   :  { %v772_v11 = vadd.f32 %v771_v48, %v602_v43 }
 0x159   :  { %v881_v53 = vmax.f32 %v1813_v18, %v772_v11  ;;  %v839_v48 = vpop.f32.mrf.mxu3 }
 0x15b   :  { %v781_v13 = vpop.f32.mrf.mxu1  ;;  %v1962_v17 = vmax.f32 %v881_v53, %v1827_v28 }
 0x15e   :  { %v605_v22 = vpop.f32.mrf.mxu0 }
 0x15f   :  { %v775_v25 = vadd.f32 %v774_v50, %v605_v22 }
 0x161   :  { %v882_v23 = vmax.f32 %v1829_v33, %v775_v25  ;;  %v670_v33 = vpop.f32.mrf.mxu2  ;;  %v841_v59 = vpop.f32.mrf.mxu3 }
 0x163   :  { %v784_v21 = vpop.f32.mrf.mxu1  ;;  %v1966_v4 = vmax.f32 %v882_v23, %v1844_v45  ;;  %v840_v23 = vadd.f32 %v839_v48, %v670_v33 }
 0x166   :  { %v607_v16 = vpop.f32.mrf.mxu0 }
 0x167   :  { %v777_v34 = vadd.f32 %v776_v60, %v607_v16 }
 0x169   :  { %v883_v18 = vmax.f32 %v1847_v47, %v777_v34  ;;  %v844_v43 = vpop.f32.mrf.mxu3 }
 0x16b   :  { %v786_v37 = vpop.f32.mrf.mxu1  ;;  %v1970_v28 = vmax.f32 %v883_v18, %v1861_v58  ;;  %v672_v58 = vpop.f32.mrf.mxu2 }
 0x16e   :  { %v610_v38 = vpop.f32.mrf.mxu0 }
 0x16f   :  { %v780_v42 = vadd.f32 %v779_v3, %v610_v38 }
 0x171   :  { %v884_v46 = vmax.f32 %v1863_v61, %v780_v42  ;;  %v846_v16 = vpop.f32.mrf.mxu3 }
 0x173   :  { %v789_v51 = vpop.f32.mrf.mxu1  ;;  %v1974_v45 = vmax.f32 %v884_v46, %v1878_v12  ;;  %v835_v12 = vadd.f32 %v834_v55, %v665_v1 }
 0x176   :  { %v612_v52 = vpop.f32.mrf.mxu0 }
 0x177   :  { %v782_v54 = vadd.f32 %v781_v13, %v612_v52 }
 0x179   :  { %v885_v50 = vmax.f32 %v1881_v14, %v782_v54  ;;  %v849_v42 = vpop.f32.mrf.mxu3 }
 0x17b   :  { %v791_v19 = vpop.f32.mrf.mxu1  ;;  %v1978_v47 = vmax.f32 %v885_v50, %v1895_v26  ;;  %v675_v26 = vpop.f32.mrf.mxu2 }
 0x17c   :  { %v845_v48 = vadd.f32 %v844_v43, %v675_v26 }
 0x17e   :  { %v615_v29 = vpop.f32.mrf.mxu0  ;;  %v910_v33 = vmax.f32 %v1950_v56, %v845_v48 }
 0x17f   :  { %v785_v60 = vadd.f32 %v784_v21, %v615_v29 }
 0x181   :  { %v886_v61 = vmax.f32 %v1897_v32, %v785_v60  ;;  %v1991_v32 = vld [vmem:[%s2053_s2] ss:$0 sm:$0xff]  ;;  %v851_v54 = vpop.f32.mrf.mxu3 }
 0x183   :  { %v794_v31 = vpop.f32.mrf.mxu1  ;;  %v1982_v2 = vmax.f32 %v886_v61, %v1905_v41 }
 0x184   :  { %v795_v40 = vadd.f32 %v794_v31, %v1708_v6 }
 0x186   :  { %v890_v14 = vmax.f32 %v874_v8, %v795_v40  ;;  %v617_v3 = vpop.f32.mrf.mxu0  ;;  %v837_v8 = vadd.f32 %v836_v35, %v667_v36 }
 0x187   :  { %v787_v11 = vadd.f32 %v786_v37, %v617_v3 }
 0x188   :  { %v906_v53 = vmax.f32 %v890_v14, %v835_v12 }
 0x189   :  { %v887_v41 = vmax.f32 %v1908_v44, %v787_v11  ;;  %v677_v44 = vpop.f32.mrf.mxu2 }
 0x18a   :  { %v926_v13 = vadd.f32 %v1991_v32, %v906_v53  ;;  %v847_v50 = vadd.f32 %v846_v16, %v677_v44 }
 0x18b   :  { %v796_v55 = vpop.f32.mrf.mxu1  ;;  %v1996_v6 = vmax.f32 %v887_v41, %v1922_v57 }
 0x18c   :  { %v797_v62 = vadd.f32 %v796_v55, %v1725_v15  ;;  %v942_v24 = vmax.f32 %v926_v13, 0.0  ;;  %v908_v15 = vmax.f32 %v1942_v39, %v840_v23 }
 0x18e   :  { %v891_v22 = vmax.f32 %v875_v30, %v797_v62  ;;  %958 = vxpose.xlu0.b32.start [1/16] (narrow) %v942_v24, 32  ;;  %v620_v1 = vpop.f32.mrf.mxu0  ;;  %v842_v30 = vadd.f32 %v841_v59, %v672_v58  ;;  %v928_v36 = vadd.f32 %v1991_v32, %v908_v15 }
 0x18f   :  { %v790_v25 = vadd.f32 %v789_v51, %v620_v1 }
 0x190   :  { %v907_v21 = vmax.f32 %v891_v22, %v837_v8  ;;  %v909_v46 = vmax.f32 %v1946_v49, %v842_v30  ;;  %v854_v49 = vpop.f32.mrf.mxu3 }
 0x191   :  { %v888_v34 = vmax.f32 %v1924_v63, %v790_v25  ;;  %v680_v38 = vpop.f32.mrf.mxu2 }
 0x192   :  { %v927_v57 = vadd.f32 %v1991_v32, %v907_v21  ;;  %v929_v39 = vadd.f32 %v1991_v32, %v909_v46  ;;  %v850_v59 = vadd.f32 %v849_v42, %v680_v38 }
 0x193   :  { %v2005_v18 = vmax.f32 %v888_v34, %v1926_v5  ;;  %v944_v5 = vmax.f32 %v928_v36, 0.0 }
 0x194   :  { %v943_v35 = vmax.f32 %v927_v57, 0.0  ;;  %v945_v51 = vmax.f32 %v929_v39, 0.0  ;;  %v912_v60 = vmax.f32 %v1958_v7, %v850_v59 }
 0x196   :  { %959 = vxpose.xlu0.b32.cont [2/16] (narrow) %v943_v35, 32  ;;  %v622_v9 = vpop.f32.mrf.mxu0  ;;  %v932_v31 = vadd.f32 %v1991_v32, %v912_v60 }
 0x197   :  { %v792_v27 = vadd.f32 %v791_v19, %v622_v9  ;;  %v911_v19 = vmax.f32 %v1954_v0, %v847_v50 }
 0x198   :  { %v856_v40 = vpop.f32.mrf.mxu3  ;;  %v948_v3 = vmax.f32 %v932_v31, 0.0 }
 0x199   :  { %v889_v37 = vmax.f32 %v1928_v10, %v792_v27  ;;  %v682_v52 = vpop.f32.mrf.mxu2  ;;  %v930_v10 = vadd.f32 %v1991_v32, %v910_v33  ;;  %v931_v29 = vadd.f32 %v1991_v32, %v911_v19 }
 0x19a   :  { %v852_v56 = vadd.f32 %v851_v54, %v682_v52 }
 0x19b   :  { %v2011_v63 = vmax.f32 %v889_v37, %v1930_v20  ;;  %v946_v20 = vmax.f32 %v930_v10, 0.0  ;;  %v947_v61 = vmax.f32 %v931_v29, 0.0 }
 0x19c   :  { %v913_v14 = vmax.f32 %v1962_v17, %v852_v56 }
 0x19e   :  { %960 = vxpose.xlu0.b32.cont [3/16] (narrow) %v944_v5, 32  ;;  %v933_v26 = vadd.f32 %v1991_v32, %v913_v14 }
 0x1a0   :  { %v859_v11 = vpop.f32.mrf.mxu3  ;;  %v949_v41 = vmax.f32 %v933_v26, 0.0 }
 0x1a1   :  { %v685_v58 = vpop.f32.mrf.mxu2 }
 0x1a2   :  { %v855_v0 = vadd.f32 %v854_v49, %v685_v58 }
 0x1a4   :  { %v914_v53 = vmax.f32 %v1966_v4, %v855_v0 }
 0x1a6   :  { %961 = vxpose.xlu0.b32.cont [4/16] (narrow) %v945_v51, 32  ;;  %v934_v13 = vadd.f32 %v1991_v32, %v914_v53 }
 0x1a8   :  { %v950_v62 = vmax.f32 %v934_v13, 0.0  ;;  %v861_v8 = vpop.f32.mrf.mxu3 }
 0x1a9   :  { %v687_v12 = vpop.f32.mrf.mxu2 }
 0x1aa   :  { %v857_v7 = vadd.f32 %v856_v40, %v687_v12 }
 0x1ac   :  { %v915_v55 = vmax.f32 %v1970_v28, %v857_v7 }
 0x1ae   :  { %962 = vxpose.xlu0.b32.cont [5/16] (narrow) %v946_v20, 32  ;;  %v935_v22 = vadd.f32 %v1991_v32, %v915_v55 }
 0x1b0   :  { %v951_v25 = vmax.f32 %v935_v22, 0.0  ;;  %v864_v4 = vpop.f32.mrf.mxu3 }
 0x1b1   :  { %v690_v43 = vpop.f32.mrf.mxu2 }
 0x1b2   :  { %v860_v17 = vadd.f32 %v859_v11, %v690_v43 }
 0x1b4   :  { %v916_v1 = vmax.f32 %v1974_v45, %v860_v17 }
 0x1b6   :  { %963 = vxpose.xlu0.b32.cont [6/16] (narrow) %v947_v61, 32  ;;  %v936_v44 = vadd.f32 %v1991_v32, %v916_v1 }
 0x1b8   :  { %v952_v34 = vmax.f32 %v936_v44, 0.0  ;;  %v866_v35 = vpop.f32.mrf.mxu3 }
 0x1b9   :  { %v692_v24 = vpop.f32.mrf.mxu2 }
 0x1ba   :  { %v862_v21 = vadd.f32 %v861_v8, %v692_v24 }
 0x1bc   :  { %v917_v16 = vmax.f32 %v1978_v47, %v862_v21 }
 0x1be   :  { %964 = vxpose.xlu0.b32.cont [7/16] (narrow) %v948_v3, 32  ;;  %v937_v57 = vadd.f32 %v1991_v32, %v917_v16 }
 0x1c0   :  { %v953_v27 = vmax.f32 %v937_v57, 0.0  ;;  %v869_v37 = vpop.f32.mrf.mxu3 }
 0x1c1   :  { %v695_v23 = vpop.f32.mrf.mxu2 }
 0x1c2   :  { %v865_v28 = vadd.f32 %v864_v4, %v695_v23 }
 0x1c4   :  { %v918_v9 = vmax.f32 %v1982_v2, %v865_v28 }
 0x1c6   :  { %965 = vxpose.xlu0.b32.cont [8/16] (narrow) %v949_v41, 32  ;;  %v938_v30 = vadd.f32 %v1991_v32, %v918_v9 }
 0x1c8   :  { %v954_v42 = vmax.f32 %v938_v30, 0.0  ;;  %v871_v33 = vpop.f32.mrf.mxu3 }
 0x1c9   :  { %v697_v15 = vpop.f32.mrf.mxu2 }
 0x1ca   :  { %v867_v45 = vadd.f32 %v866_v35, %v697_v15 }
 0x1cc   :  { %v919_v38 = vmax.f32 %v1996_v6, %v867_v45 }
 0x1ce   :  { %966 = vxpose.xlu0.b32.cont [9/16] (narrow) %v950_v62, 32  ;;  %v939_v46 = vadd.f32 %v1991_v32, %v919_v38 }
 0x1d0   :  { %v955_v48 = vmax.f32 %v939_v46, 0.0 }
 0x1d1   :  { %v700_v36 = vpop.f32.mrf.mxu2 }
 0x1d2   :  { %v870_v47 = vadd.f32 %v869_v37, %v700_v36 }
 0x1d4   :  { %v920_v5 = vmax.f32 %v2005_v18, %v870_v47 }
 0x1d6   :  { %967 = vxpose.xlu0.b32.cont [10/16] (narrow) %v951_v25, 32  ;;  %v940_v51 = vadd.f32 %v1991_v32, %v920_v5 }
 0x1d8   :  { %v956_v54 = vmax.f32 %v940_v51, 0.0 }
 0x1d9   :  { %v702_v39 = vpop.f32.mrf.mxu2 }
 0x1da   :  { %v872_v2 = vadd.f32 %v871_v33, %v702_v39 }
 0x1dc   :  { %v921_v52 = vmax.f32 %v2011_v63, %v872_v2 }
 0x1de   :  { %968 = vxpose.xlu0.b32.cont [11/16] (narrow) %v952_v34, 32  ;;  %v941_v6 = vadd.f32 %v1991_v32, %v921_v52 }
 0x1e0   :  { %v957_v50 = vmax.f32 %v941_v6, 0.0 }
 0x1e6   :  { %969 = vxpose.xlu0.b32.cont [12/16] (narrow) %v953_v27, 32 }
 0x1ee   :  { %970 = vxpose.xlu0.b32.cont [13/16] (narrow) %v954_v42, 32 }
 0x1f6   :  { %971 = vxpose.xlu0.b32.cont [14/16] (narrow) %v955_v48, 32 }
 0x1fe   :  { %972 = vxpose.xlu0.b32.cont [15/16] (narrow) %v956_v54, 32 }
 0x206   :  { %973 = vxpose.xlu0.b32.end [16/16] (narrow) %v957_v50, 32 }
 0x232   :  { %v974_v10 = vpop.trf.xlu0 }
 0x233   :  { %990 = vst [vmem:[%s2054_s3] sm:$0xff] %v974_v10 }
 0x23a   :  { %v975_v18 = vpop.trf.xlu0 }
 0x23b   :  { %991 = vst [vmem:[%s2054_s3 + $0x8] sm:$0xff] %v975_v18 }
 0x242   :  { %v976_v19 = vpop.trf.xlu0 }
 0x243   :  { %992 = vst [vmem:[%s2054_s3 + $0x10] sm:$0xff] %v976_v19 }
 0x24a   :  { %v977_v63 = vpop.trf.xlu0 }
 0x24b   :  { %993 = vst [vmem:[%s2054_s3 + $0x18] sm:$0xff] %v977_v63 }

// kernel: cnn_forward.5
= control target key start
LH: loop header
LB: loop body
LE: loop exit
PB: predicated region body
PF: predicated region fallthrough
CT: control target
= control target key end

     0   :  { %vm1435_vm0 = vcmask 261120   ;;  %s4295_s1 = inlined_call_operand.vmem [shape: bf16[1568,128], index: 1, kind: input, shape index: {}]   ;;  %s4296_s2 = inlined_call_operand.vmem [shape: f32[1,128], index: 2, kind: input, shape index: {}]   ;;  %s4297_s0 = inlined_call_operand.vmem [shape: bf16[128,1568], index: 0, kind: input, shape index: {}]   ;;  %s4298_s3 = inlined_call_operand.vmem [shape: f32[10,128], index: 3, kind: output, shape index: {}]  }
   0x1   :  { %v3062_v0 = vld [vmem:[%s4295_s1 + $0x38] sm:$0xff]  ;;  %v3061_v1 = vld [vmem:[%s4295_s1 + $0x30] sm:$0xff]  ;;  %v3060_v2 = vld [vmem:[%s4295_s1 + $0x28] sm:$0xff] }
   0x2   :  { %3153 = vmatpush.bf16.msra.mxu1 %v3062_v0  ;;  %3154 = vmatpush.bf16.msra.mxu2 %v3062_v0  ;;  %v3059_v3 = vld [vmem:[%s4295_s1 + $0x20] sm:$0xff]  ;;  %v3058_v4 = vld [vmem:[%s4295_s1 + $0x18] sm:$0xff]  ;;  %v3057_v5 = vld [vmem:[%s4295_s1 + $0x10] sm:$0xff] }
   0x3   :  { %3155 = vmatpush.bf16.msra.mxu3 %v3062_v0  ;;  %1460 = vmatpush.bf16.msra.mxu0 %v3062_v0  ;;  %v3056_v6 = vld [vmem:[%s4295_s1 + $0x8] sm:$0xff]  ;;  %v3055_v7 = vld [vmem:[%s4295_s1] sm:$0xff]  ;;  %v2241_v8 = vld [vmem:[%s4297_s0 + $0xd0] sm:$0xf] }
   0x4   :  { %v2983_v9 = vld [vmem:[%s4297_s0 + $0x100] sm:$0xf0]  ;;  %v2345_v10 = vld [vmem:[%s4297_s0 + $0x1a0] sm:$0xf]  ;;  %v3009_v11 = vld [vmem:[%s4297_s0 + $0x1d0] sm:$0xf0] }
   0x5   :  { %v2449_v12 = vld [vmem:[%s4297_s0 + $0x270] sm:$0xf]  ;;  %v3035_v13 = vld [vmem:[%s4297_s0 + $0x2a0] sm:$0xf0]  ;;  %v2137_v14 = vld [vmem:[%s4297_s0] sm:$0xf]  ;;  %v2242_v18 = vor.u32 %v2983_v9, %v2241_v8  ;;  %v2346_v19 = vor.u32 %v3009_v11, %v2345_v10 }
   0x6   :  { %3156 = vmatpush.bf16.msra.mxu1 %v3061_v1  ;;  %3157 = vmatpush.bf16.msra.mxu2 %v3061_v1  ;;  %v2957_v15 = vld [vmem:[%s4297_s0 + $0x30] sm:$0xf0]  ;;  %v3078_v16 = vld [vmem:[%s4295_s1 + $0xb8] sm:$0xff]  ;;  %v2450_v20 = vor.u32 %v3035_v13, %v2449_v12  ;;  %v3076_v28 = vld [vmem:[%s4295_s1 + $0xa8] sm:$0xff] }
   0x7   :  { %3158 = vmatpush.bf16.msra.mxu3 %v3061_v1  ;;  %1461 = vmatpush.bf16.msra.mxu0 %v3061_v1  ;;  %v3070_v17 = vld [vmem:[%s4295_s1 + $0x78] sm:$0xff]  ;;  %v2138_v21 = vor.u32 %v2957_v15, %v2137_v14  ;;  %v3077_v24 = vld [vmem:[%s4295_s1 + $0xb0] sm:$0xff]  ;;  %v3068_v29 = vld [vmem:[%s4295_s1 + $0x68] sm:$0xff] }
   0x8   :  { %v3086_v22 = vld [vmem:[%s4295_s1 + $0xf8] sm:$0xff]  ;;  %v3069_v25 = vld [vmem:[%s4295_s1 + $0x70] sm:$0xff]  ;;  %v3084_v30 = vld [vmem:[%s4295_s1 + $0xe8] sm:$0xff] }
   0x9   :  { %v3094_v23 = vld [vmem:[%s4295_s1 + $0x138] sm:$0xff]  ;;  %v3085_v26 = vld [vmem:[%s4295_s1 + $0xf0] sm:$0xff]  ;;  %v3092_v31 = vld [vmem:[%s4295_s1 + $0x128] sm:$0xff] }
   0xa   :  { %3159 = vmatpush.bf16.msra.mxu1 %v3060_v2  ;;  %3160 = vmatpush.bf16.msra.mxu2 %v3060_v2  ;;  %v3093_v27 = vld [vmem:[%s4295_s1 + $0x130] sm:$0xff]  ;;  %v3075_v32 = vld [vmem:[%s4295_s1 + $0xa0] sm:$0xff]  ;;  %v2293_v36 = vld [vmem:[%s4297_s0 + $0x138] sm:$0xf] }
   0xb   :  { %3161 = vmatpush.bf16.msra.mxu3 %v3060_v2  ;;  %1462 = vmatpush.bf16.msra.mxu0 %v3060_v2  ;;  %v3067_v33 = vld [vmem:[%s4295_s1 + $0x60] sm:$0xff]  ;;  %v2996_v37 = vld [vmem:[%s4297_s0 + $0x168] sm:$0xf0]  ;;  %v2397_v38 = vld [vmem:[%s4297_s0 + $0x208] sm:$0xf] }
   0xc   :  { %v3083_v34 = vld [vmem:[%s4295_s1 + $0xe0] sm:$0xff]  ;;  %v3022_v39 = vld [vmem:[%s4297_s0 + $0x238] sm:$0xf0]  ;;  %v2501_v40 = vld [vmem:[%s4297_s0 + $0x2d8] sm:$0xf]  ;;  %v2294_v46 = vor.u32 %v2996_v37, %v2293_v36 }
   0xd   :  { %v3091_v35 = vld [vmem:[%s4295_s1 + $0x120] sm:$0xff]  ;;  %v3048_v41 = vld [vmem:[%s4297_s0 + $0x308] sm:$0xf0]  ;;  %v2189_v42 = vld [vmem:[%s4297_s0 + $0x68] sm:$0xf]  ;;  %v2398_v47 = vor.u32 %v3022_v39, %v2397_v38 }
   0xe   :  { %3162 = vmatpush.bf16.msra.mxu1 %v3059_v3  ;;  %3163 = vmatpush.bf16.msra.mxu2 %v3059_v3  ;;  %v2970_v43 = vld [vmem:[%s4297_s0 + $0x98] sm:$0xf0]  ;;  %v2502_v48 = vor.u32 %v3048_v41, %v2501_v40  ;;  %v3073_v52 = vld [vmem:[%s4295_s1 + $0x90] sm:$0xff]  ;;  %v3072_v56 = vld [vmem:[%s4295_s1 + $0x88] sm:$0xff] }
   0xf   :  { %3164 = vmatpush.bf16.msra.mxu3 %v3059_v3  ;;  %1463 = vmatpush.bf16.msra.mxu0 %v3059_v3  ;;  %v3074_v44 = vld [vmem:[%s4295_s1 + $0x98] sm:$0xff]  ;;  %v2190_v49 = vor.u32 %v2970_v43, %v2189_v42  ;;  %v3065_v53 = vld [vmem:[%s4295_s1 + $0x50] sm:$0xff]  ;;  %v3064_v57 = vld [vmem:[%s4295_s1 + $0x48] sm:$0xff] }
  0x10   :  { %v3066_v45 = vld [vmem:[%s4295_s1 + $0x58] sm:$0xff]  ;;  %v3081_v54 = vld [vmem:[%s4295_s1 + $0xd0] sm:$0xff]  ;;  %v3080_v58 = vld [vmem:[%s4295_s1 + $0xc8] sm:$0xff] }
  0x11   :  { %v3082_v50 = vld [vmem:[%s4295_s1 + $0xd8] sm:$0xff]  ;;  %v3089_v55 = vld [vmem:[%s4295_s1 + $0x110] sm:$0xff]  ;;  %v3088_v59 = vld [vmem:[%s4295_s1 + $0x108] sm:$0xff] }
  0x12   :  { %3165 = vmatpush.bf16.msra.mxu1 %v3058_v4  ;;  %3166 = vmatpush.bf16.msra.mxu2 %v3058_v4  ;;  %v3090_v51 = vld [vmem:[%s4295_s1 + $0x118] sm:$0xff]  ;;  %v3071_v60 = vld [vmem:[%s4295_s1 + $0x80] sm:$0xff]  ;;  %v2153_v8 = vld [vmem:[%s4297_s0 + $0x10] sm:$0xf] }
  0x13   :  { %3167 = vmatpush.bf16.msra.mxu3 %v3058_v4  ;;  %1464 = vmatpush.bf16.msra.mxu0 %v3058_v4  ;;  %v3063_v61 = vld [vmem:[%s4295_s1 + $0x40] sm:$0xff]  ;;  %v2139_v1 = vld [vmem:[%s4297_s0 + $0x34] sm:$0xf0]  ;;  %v2145_v4 = vld [vmem:[%s4297_s0 + $0x8] sm:$0xf] }
  0x14   :  { %v2951_v62 = vld [vmem:[%s4297_s0 + $0x4] sm:$0xf]  ;;  %v3110_v2 = vld [vmem:[%s4295_s1 + $0x1b8] sm:$0xff]  ;;  %v2977_v40 = vld [vmem:[%s4297_s0 + $0xd4] sm:$0xf] }
  0x15   :  { %v3079_v63 = vld [vmem:[%s4295_s1 + $0xc0] sm:$0xff]  ;;  %v3102_v3 = vld [vmem:[%s4295_s1 + $0x178] sm:$0xff]  ;;  %v2142_v12 = vor.u32 %v2951_v62, %v2139_v1  ;;  %v2243_v41 = vld [vmem:[%s4297_s0 + $0x104] sm:$0xf0] }
  0x16   :  { %3168 = vmatpush.bf16.msra.mxu1 %v3057_v5  ;;  %3169 = vmatpush.bf16.msra.mxu2 %v3057_v5  ;;  %v3087_v0 = vld [vmem:[%s4295_s1 + $0x100] sm:$0xff]  ;;  %v3118_v10 = vld [vmem:[%s4295_s1 + $0x1f8] sm:$0xff]  ;;  %v2984_v43 = vld [vmem:[%s4297_s0 + $0x108] sm:$0xf0] }
  0x17   :  { %3170 = vmatpush.bf16.msra.mxu3 %v3057_v5  ;;  %1465 = vmatpush.bf16.msra.mxu0 %v3057_v5  ;;  %v2958_v5 = vld [vmem:[%s4297_s0 + $0x38] sm:$0xf0]  ;;  %v2959_v9 = vld [vmem:[%s4297_s0 + $0x40] sm:$0xf0]  ;;  %v2249_v42 = vld [vmem:[%s4297_s0 + $0xd8] sm:$0xf] }
  0x18   :  { %v3126_v11 = vld [vmem:[%s4295_s1 + $0x238] sm:$0xff]  ;;  %v2146_v13 = vor.u32 %v2958_v5, %v2145_v4  ;;  %v2154_v15 = vor.u32 %v2959_v9, %v2153_v8  ;;  %v3107_v36 = vld [vmem:[%s4295_s1 + $0x1a0] sm:$0xff]  ;;  %v2309_v62 = vld [vmem:[%s4297_s0 + $0x148] sm:$0xf] }
  0x19   :  { %v3115_v37 = vld [vmem:[%s4295_s1 + $0x1e0] sm:$0xff]  ;;  %v3105_v4 = vld [vmem:[%s4295_s1 + $0x190] sm:$0xff]  ;;  %v2347_v9 = vld [vmem:[%s4297_s0 + $0x1d4] sm:$0xf0] }
  0x1a   :  { %3171 = vmatpush.bf16.msra.mxu1 %v3056_v6  ;;  %3172 = vmatpush.bf16.msra.mxu2 %v3056_v6  ;;  %v3099_v38 = vld [vmem:[%s4295_s1 + $0x160] sm:$0xff]  ;;  %v3113_v5 = vld [vmem:[%s4295_s1 + $0x1d0] sm:$0xff] }
  0x1b   :  { %3173 = vmatpush.bf16.msra.mxu3 %v3056_v6  ;;  %1466 = vmatpush.bf16.msra.mxu0 %v3056_v6  ;;  %v2952_v6 = vld [vmem:[%s4297_s0 + $0xc] sm:$0xf]  ;;  %v3123_v39 = vld [vmem:[%s4295_s1 + $0x220] sm:$0xff] }
  0x1c   :  { %v3003_v8 = vld [vmem:[%s4297_s0 + $0x1a4] sm:$0xf] }
  0x1e   :  { %3174 = vmatpush.bf16.msra.mxu1 %v3055_v7  ;;  %3175 = vmatpush.bf16.msra.mxu2 %v3055_v7 }
  0x1f   :  { %3176 = vmatpush.bf16.msra.mxu3 %v3055_v7  ;;  %1467 = vmatpush.bf16.msra.mxu0 %v3055_v7  ;;  %v2147_v7 = vld [vmem:[%s4297_s0 + $0x3c] sm:$0xf0] }
  0x20   :  { %v2150_v14 = vor.u32 %v2952_v6, %v2147_v7  ;;  %v3097_v6 = vld [vmem:[%s4295_s1 + $0x150] sm:$0xff] }
  0x21   :  { %1478 = vmatmul.bf16.vlgmr.msra.gmra.mxu1 %v2242_v18  ;;  %1488 = vmatmul.bf16.vlgmr.msra.gmra.mxu2 %v2346_v19  ;;  %v3117_v18 = vld [vmem:[%s4295_s1 + $0x1f0] sm:$0xff] }
  0x22   :  { %1558 = vmatpush.bf16.msrb.mxu2 %v3078_v16  ;;  %1509 = vmatpush.bf16.msrb.mxu1 %v3070_v17  ;;  %v3109_v16 = vld [vmem:[%s4295_s1 + $0x1b0] sm:$0xff] }
  0x23   :  { %1498 = vmatmul.bf16.vlgmr.msra.gmra.mxu3 %v2450_v20  ;;  %1468 = vmatmul.bf16.vlgmr.msra.gmra.mxu0 %v2138_v21  ;;  %v3101_v17 = vld [vmem:[%s4295_s1 + $0x170] sm:$0xff]  ;;  %v3108_v20 = vld [vmem:[%s4295_s1 + $0x1a8] sm:$0xff] }
  0x24   :  { %1607 = vmatpush.bf16.msrb.mxu3 %v3086_v22  ;;  %1656 = vmatpush.bf16.msrb.mxu0 %v3094_v23  ;;  %v3125_v19 = vld [vmem:[%s4295_s1 + $0x230] sm:$0xff]  ;;  %v3100_v21 = vld [vmem:[%s4295_s1 + $0x168] sm:$0xff] }
  0x25   :  { %v3116_v22 = vld [vmem:[%s4295_s1 + $0x1e8] sm:$0xff]  ;;  %v3121_v7 = vld [vmem:[%s4295_s1 + $0x210] sm:$0xff] }
  0x26   :  { %1559 = vmatpush.bf16.msrb.mxu2 %v3077_v24  ;;  %1510 = vmatpush.bf16.msrb.mxu1 %v3069_v25  ;;  %v3124_v23 = vld [vmem:[%s4295_s1 + $0x228] sm:$0xff]  ;;  %v2191_v25 = vld [vmem:[%s4297_s0 + $0x9c] sm:$0xf0] }
  0x27   :  { %v2964_v24 = vld [vmem:[%s4297_s0 + $0x6c] sm:$0xf] }
  0x28   :  { %1608 = vmatpush.bf16.msrb.mxu3 %v3085_v26  ;;  %1657 = vmatpush.bf16.msrb.mxu0 %v3093_v27  ;;  %v2197_v26 = vld [vmem:[%s4297_s0 + $0x70] sm:$0xf]  ;;  %v2971_v27 = vld [vmem:[%s4297_s0 + $0xa0] sm:$0xf0] }
  0x2a   :  { %1560 = vmatpush.bf16.msrb.mxu2 %v3076_v28  ;;  %1511 = vmatpush.bf16.msrb.mxu1 %v3068_v29  ;;  %v2965_v28 = vld [vmem:[%s4297_s0 + $0x74] sm:$0xf]  ;;  %v2199_v29 = vld [vmem:[%s4297_s0 + $0xa4] sm:$0xf0] }
  0x2c   :  { %1609 = vmatpush.bf16.msrb.mxu3 %v3084_v30  ;;  %1658 = vmatpush.bf16.msrb.mxu0 %v3092_v31  ;;  %v2205_v30 = vld [vmem:[%s4297_s0 + $0x78] sm:$0xf]  ;;  %v2972_v31 = vld [vmem:[%s4297_s0 + $0xa8] sm:$0xf0] }
  0x2e   :  { %1561 = vmatpush.bf16.msrb.mxu2 %v3075_v32  ;;  %1512 = vmatpush.bf16.msrb.mxu1 %v3067_v33  ;;  %v2194_v32 = vor.u32 %v2964_v24, %v2191_v25  ;;  %v2198_v33 = vor.u32 %v2971_v27, %v2197_v26  ;;  %v3016_v24 = vld [vmem:[%s4297_s0 + $0x20c] sm:$0xf]  ;;  %v2399_v25 = vld [vmem:[%s4297_s0 + $0x23c] sm:$0xf0]  ;;  %v2405_v26 = vld [vmem:[%s4297_s0 + $0x210] sm:$0xf] }
  0x2f   :  { %v3023_v27 = vld [vmem:[%s4297_s0 + $0x240] sm:$0xf0] }
  0x30   :  { %1610 = vmatpush.bf16.msrb.mxu3 %v3083_v34  ;;  %1659 = vmatpush.bf16.msrb.mxu0 %v3091_v35  ;;  %v2202_v34 = vor.u32 %v2965_v28, %v2199_v29  ;;  %v2206_v35 = vor.u32 %v2972_v31, %v2205_v30  ;;  %v3017_v28 = vld [vmem:[%s4297_s0 + $0x214] sm:$0xf]  ;;  %v2407_v29 = vld [vmem:[%s4297_s0 + $0x244] sm:$0xf0]  ;;  %v2413_v30 = vld [vmem:[%s4297_s0 + $0x218] sm:$0xf] }
  0x31   :  { %1483 = vmatmul.bf16.gmra.mxu1 %v2294_v46  ;;  %1493 = vmatmul.bf16.gmra.mxu2 %v2398_v47  ;;  %v2257_v46 = vld [vmem:[%s4297_s0 + $0xe0] sm:$0xf]  ;;  %v2985_v47 = vld [vmem:[%s4297_s0 + $0x110] sm:$0xf0]  ;;  %v3024_v31 = vld [vmem:[%s4297_s0 + $0x248] sm:$0xf0] }
  0x32   :  { %1562 = vmatpush.bf16.msrb.mxu2 %v3074_v44  ;;  %1513 = vmatpush.bf16.msrb.mxu1 %v3066_v45  ;;  %v2978_v44 = vld [vmem:[%s4297_s0 + $0xdc] sm:$0xf]  ;;  %v2251_v45 = vld [vmem:[%s4297_s0 + $0x10c] sm:$0xf0] }
  0x33   :  { %1503 = vmatmul.bf16.gmra.mxu3 %v2502_v48  ;;  %1473 = vmatmul.bf16.gmra.mxu0 %v2190_v49  ;;  %v2246_v48 = vor.u32 %v2977_v40, %v2243_v41  ;;  %v2250_v49 = vor.u32 %v2984_v43, %v2249_v42  ;;  %v3029_v40 = vld [vmem:[%s4297_s0 + $0x274] sm:$0xf]  ;;  %v2451_v41 = vld [vmem:[%s4297_s0 + $0x2a4] sm:$0xf0]  ;;  %v2457_v42 = vld [vmem:[%s4297_s0 + $0x278] sm:$0xf] }
  0x34   :  { %1611 = vmatpush.bf16.msrb.mxu3 %v3082_v50  ;;  %1660 = vmatpush.bf16.msrb.mxu0 %v3090_v51  ;;  %v2254_v50 = vor.u32 %v2978_v44, %v2251_v45  ;;  %v2258_v51 = vor.u32 %v2985_v47, %v2257_v46  ;;  %v3036_v43 = vld [vmem:[%s4297_s0 + $0x2a8] sm:$0xf0]  ;;  %v3030_v44 = vld [vmem:[%s4297_s0 + $0x27c] sm:$0xf]  ;;  %v2459_v45 = vld [vmem:[%s4297_s0 + $0x2ac] sm:$0xf0] }
  0x35   :  { %v2465_v46 = vld [vmem:[%s4297_s0 + $0x280] sm:$0xf]  ;;  %v3037_v47 = vld [vmem:[%s4297_s0 + $0x2b0] sm:$0xf0] }
  0x36   :  { %1563 = vmatpush.bf16.msrb.mxu2 %v3073_v52  ;;  %1514 = vmatpush.bf16.msrb.mxu1 %v3065_v53  ;;  %v3106_v52 = vld [vmem:[%s4295_s1 + $0x198] sm:$0xff] }
  0x37   :  { %v3114_v53 = vld [vmem:[%s4295_s1 + $0x1d8] sm:$0xff] }
  0x38   :  { %1612 = vmatpush.bf16.msrb.mxu3 %v3081_v54  ;;  %1661 = vmatpush.bf16.msrb.mxu0 %v3089_v55  ;;  %v3098_v54 = vld [vmem:[%s4295_s1 + $0x158] sm:$0xff] }
  0x39   :  { %v3122_v55 = vld [vmem:[%s4295_s1 + $0x218] sm:$0xff] }
  0x3a   :  { %1564 = vmatpush.bf16.msrb.mxu2 %v3072_v56  ;;  %1515 = vmatpush.bf16.msrb.mxu1 %v3064_v57  ;;  %v2990_v56 = vld [vmem:[%s4297_s0 + $0x13c] sm:$0xf]  ;;  %v2295_v57 = vld [vmem:[%s4297_s0 + $0x16c] sm:$0xf0] }
  0x3c   :  { %1613 = vmatpush.bf16.msrb.mxu3 %v3080_v58  ;;  %1662 = vmatpush.bf16.msrb.mxu0 %v3088_v59  ;;  %v2301_v58 = vld [vmem:[%s4297_s0 + $0x140] sm:$0xf]  ;;  %v2997_v59 = vld [vmem:[%s4297_s0 + $0x170] sm:$0xf0] }
  0x3d   :  { %v2302_v1 = vor.u32 %v2997_v59, %v2301_v58 }
  0x3e   :  { %1565 = vmatpush.bf16.msrb.mxu2 %v3071_v60  ;;  %1516 = vmatpush.bf16.msrb.mxu1 %v3063_v61  ;;  %v2991_v60 = vld [vmem:[%s4297_s0 + $0x144] sm:$0xf]  ;;  %v2303_v61 = vld [vmem:[%s4297_s0 + $0x174] sm:$0xf0] }
  0x40   :  { %1614 = vmatpush.bf16.msrb.mxu3 %v3079_v63  ;;  %1663 = vmatpush.bf16.msrb.mxu0 %v3087_v0  ;;  %v2998_v63 = vld [vmem:[%s4297_s0 + $0x178] sm:$0xf0]  ;;  %v2298_v0 = vor.u32 %v2990_v56, %v2295_v57  ;;  %v3643_v56 = vld [vmem:[%s4296_s2] ss:$0 sm:$0xff] }
  0x41   :  { %1517 = vmatmul.bf16.vlgmr.msrb.gmra.mxu1 %v2142_v12  ;;  %1566 = vmatmul.bf16.vlgmr.msrb.gmra.mxu2 %v2146_v13  ;;  %v3004_v12 = vld [vmem:[%s4297_s0 + $0x1ac] sm:$0xf]  ;;  %v2355_v13 = vld [vmem:[%s4297_s0 + $0x1dc] sm:$0xf0] }
  0x42   :  { %1754 = vmatpush.bf16.msra.mxu2 %v3110_v2  ;;  %1705 = vmatpush.bf16.msra.mxu1 %v3102_v3  ;;  %v2306_v2 = vor.u32 %v2991_v60, %v2303_v61  ;;  %v2310_v3 = vor.u32 %v2998_v63, %v2309_v62  ;;  %v3134_v63 = vld [vmem:[%s4295_s1 + $0x278] sm:$0xff] }
  0x43   :  { %1615 = vmatmul.bf16.vlgmr.msrb.gmra.mxu3 %v2150_v14  ;;  %1664 = vmatmul.bf16.vlgmr.msrb.gmra.mxu0 %v2154_v15  ;;  %v2361_v14 = vld [vmem:[%s4297_s0 + $0x1b0] sm:$0xf]  ;;  %v3011_v15 = vld [vmem:[%s4297_s0 + $0x1e0] sm:$0xf0] }
  0x44   :  { %1803 = vmatpush.bf16.msra.mxu3 %v3118_v10  ;;  %1852 = vmatpush.bf16.msra.mxu0 %v3126_v11  ;;  %v2353_v10 = vld [vmem:[%s4297_s0 + $0x1a8] sm:$0xf]  ;;  %v3010_v11 = vld [vmem:[%s4297_s0 + $0x1d8] sm:$0xf0] }
  0x46   :  { %1755 = vmatpush.bf16.msra.mxu2 %v3109_v16  ;;  %1706 = vmatpush.bf16.msra.mxu1 %v3101_v17  ;;  %v2350_v16 = vor.u32 %v3003_v8, %v2347_v9  ;;  %v2354_v17 = vor.u32 %v3010_v11, %v2353_v10  ;;  %v3050_v8 = vld [vmem:[%s4297_s0 + $0x318] sm:$0xf0] }
  0x48   :  { %1804 = vmatpush.bf16.msra.mxu3 %v3117_v18  ;;  %1853 = vmatpush.bf16.msra.mxu0 %v3125_v19  ;;  %v2358_v18 = vor.u32 %v3004_v12, %v2355_v13  ;;  %v2362_v19 = vor.u32 %v3011_v15, %v2361_v14 }
  0x4a   :  { %1756 = vmatpush.bf16.msra.mxu2 %v3108_v20  ;;  %1707 = vmatpush.bf16.msra.mxu1 %v3100_v21  ;;  %v3104_v20 = vld [vmem:[%s4295_s1 + $0x188] sm:$0xff] }
  0x4b   :  { %v3112_v21 = vld [vmem:[%s4295_s1 + $0x1c8] sm:$0xff] }
  0x4c   :  { %1805 = vmatpush.bf16.msra.mxu3 %v3116_v22  ;;  %1854 = vmatpush.bf16.msra.mxu0 %v3124_v23  ;;  %v3096_v22 = vld [vmem:[%s4295_s1 + $0x148] sm:$0xff] }
  0x4d   :  { %v3120_v23 = vld [vmem:[%s4295_s1 + $0x208] sm:$0xff] }
  0x4e   :  { %1757 = vmatpush.bf16.msra.mxu2 %v3107_v36  ;;  %1708 = vmatpush.bf16.msra.mxu1 %v3099_v38  ;;  %v3103_v36 = vld [vmem:[%s4295_s1 + $0x180] sm:$0xff] }
  0x4f   :  { %v3095_v38 = vld [vmem:[%s4295_s1 + $0x140] sm:$0xff] }
  0x50   :  { %1806 = vmatpush.bf16.msra.mxu3 %v3115_v37  ;;  %1855 = vmatpush.bf16.msra.mxu0 %v3123_v39  ;;  %v3111_v37 = vld [vmem:[%s4295_s1 + $0x1c0] sm:$0xff] }
  0x51   :  { %1522 = vmatmul.bf16.gmra.mxu1 %v2194_v32  ;;  %1571 = vmatmul.bf16.gmra.mxu2 %v2198_v33  ;;  %v2402_v32 = vor.u32 %v3016_v24, %v2399_v25  ;;  %v2406_v33 = vor.u32 %v3023_v27, %v2405_v26  ;;  %v3119_v39 = vld [vmem:[%s4295_s1 + $0x200] sm:$0xff]  ;;  %v3133_v27 = vld [vmem:[%s4295_s1 + $0x270] sm:$0xff] }
  0x52   :  { %1758 = vmatpush.bf16.msra.mxu2 %v3106_v52  ;;  %1709 = vmatpush.bf16.msra.mxu1 %v3098_v54  ;;  %v2466_v52 = vor.u32 %v3037_v47, %v2465_v46  ;;  %v3142_v54 = vld [vmem:[%s4295_s1 + $0x2b8] sm:$0xff] }
  0x53   :  { %1620 = vmatmul.bf16.gmra.mxu3 %v2202_v34  ;;  %1669 = vmatmul.bf16.gmra.mxu0 %v2206_v35  ;;  %v2410_v34 = vor.u32 %v3017_v28, %v2407_v29  ;;  %v2414_v35 = vor.u32 %v3024_v31, %v2413_v30  ;;  %v2953_v28 = vld [vmem:[%s4297_s0 + $0x14] sm:$0xf]  ;;  %v2155_v29 = vld [vmem:[%s4297_s0 + $0x44] sm:$0xf0]  ;;  %v2161_v30 = vld [vmem:[%s4297_s0 + $0x18] sm:$0xf] }
  0x54   :  { %1807 = vmatpush.bf16.msra.mxu3 %v3114_v53  ;;  %1856 = vmatpush.bf16.msra.mxu0 %v3122_v55  ;;  %v3150_v55 = vld [vmem:[%s4295_s1 + $0x2f8] sm:$0xff]  ;;  %v2960_v31 = vld [vmem:[%s4297_s0 + $0x48] sm:$0xf0] }
  0x56   :  { %1759 = vmatpush.bf16.msra.mxu2 %v3105_v4  ;;  %1710 = vmatpush.bf16.msra.mxu1 %v3097_v6  ;;  %v3049_v4 = vld [vmem:[%s4297_s0 + $0x310] sm:$0xf0]  ;;  %v2511_v6 = vld [vmem:[%s4297_s0 + $0x314] sm:$0xf0] }
  0x58   :  { %1808 = vmatpush.bf16.msra.mxu3 %v3113_v5  ;;  %1857 = vmatpush.bf16.msra.mxu0 %v3121_v7  ;;  %v3043_v5 = vld [vmem:[%s4297_s0 + $0x2e4] sm:$0xf]  ;;  %v2517_v7 = vld [vmem:[%s4297_s0 + $0x2e8] sm:$0xf] }
  0x5a   :  { %1760 = vmatpush.bf16.msra.mxu2 %v3104_v20  ;;  %1711 = vmatpush.bf16.msra.mxu1 %v3096_v22  ;;  %v3149_v20 = vld [vmem:[%s4295_s1 + $0x2f0] sm:$0xff] }
  0x5c   :  { %1809 = vmatpush.bf16.msra.mxu3 %v3112_v21  ;;  %1858 = vmatpush.bf16.msra.mxu0 %v3120_v23 }
  0x5e   :  { %1761 = vmatpush.bf16.msra.mxu2 %v3103_v36  ;;  %1712 = vmatpush.bf16.msra.mxu1 %v3095_v38 }
  0x60   :  { %1810 = vmatpush.bf16.msra.mxu3 %v3111_v37  ;;  %1859 = vmatpush.bf16.msra.mxu0 %v3119_v39 }
  0x61   :  { %1527 = vmatmul.bf16.gmra.mxu1 %v2246_v48  ;;  %1576 = vmatmul.bf16.gmra.mxu2 %v2250_v49  ;;  %v2454_v48 = vor.u32 %v3029_v40, %v2451_v41  ;;  %v2458_v49 = vor.u32 %v3036_v43, %v2457_v42  ;;  %v2158_v40 = vor.u32 %v2953_v28, %v2155_v29 }
  0x62   :  { %1950 = vmatpush.bf16.msrb.mxu2 %v3142_v54  ;;  %1901 = vmatpush.bf16.msrb.mxu1 %v3134_v63  ;;  %v2162_v41 = vor.u32 %v2960_v31, %v2161_v30  ;;  %v3147_v30 = vld [vmem:[%s4295_s1 + $0x2e0] sm:$0xff] }
  0x63   :  { %1625 = vmatmul.bf16.gmra.mxu3 %v2254_v50  ;;  %1674 = vmatmul.bf16.gmra.mxu0 %v2258_v51  ;;  %v2462_v51 = vor.u32 %v3030_v44, %v2459_v45 }
  0x64   :  { %1999 = vmatpush.bf16.msrb.mxu3 %v3150_v55 }
  0x66   :  { %1902 = vmatpush.bf16.msrb.mxu1 %v3133_v27 }
  0x68   :  { %2000 = vmatpush.bf16.msrb.mxu3 %v3149_v20 }
  0x71   :  { %1532 = vmatmul.bf16.gmra.mxu1 %v2298_v0  ;;  %1581 = vmatmul.bf16.gmra.mxu2 %v2302_v1  ;;  %v3152_v0 = vld [vmem:[%s4295_s1 + $0x308] sm:$0xff]  ;;  %v3042_v1 = vld [vmem:[%s4297_s0 + $0x2dc] sm:$0xf] }
  0x72   :  { %2054 = vmatpush.bf16.msrb.mxu0 %v3152_v0  ;;  %v3132_v0 = vld [vmem:[%s4295_s1 + $0x268] sm:$0xff] }
  0x73   :  { %1630 = vmatmul.bf16.gmra.mxu3 %v2306_v2  ;;  %1679 = vmatmul.bf16.gmra.mxu0 %v2310_v3  ;;  %v2503_v2 = vld [vmem:[%s4297_s0 + $0x30c] sm:$0xf0]  ;;  %v2509_v3 = vld [vmem:[%s4297_s0 + $0x2e0] sm:$0xf] }
  0x74   :  { %v2506_v12 = vor.u32 %v3042_v1, %v2503_v2  ;;  %v2510_v13 = vor.u32 %v3049_v4, %v2509_v3  ;;  %v2966_v1 = vld [vmem:[%s4297_s0 + $0x7c] sm:$0xf]  ;;  %v2207_v2 = vld [vmem:[%s4297_s0 + $0xac] sm:$0xf0]  ;;  %1903 = vmatpush.bf16.msrb.mxu1 %v3132_v0  ;;  %v2213_v3 = vld [vmem:[%s4297_s0 + $0x80] sm:$0xf] }
  0x75   :  { %v2973_v4 = vld [vmem:[%s4297_s0 + $0xb0] sm:$0xf0] }
  0x81   :  { %1537 = vmatmul.bf16.gmra.mxu1 %v2350_v16  ;;  %1586 = vmatmul.bf16.gmra.mxu2 %v2354_v17  ;;  %v2514_v16 = vor.u32 %v3043_v5, %v2511_v6  ;;  %v2518_v17 = vor.u32 %v3050_v8, %v2517_v7  ;;  %v2967_v5 = vld [vmem:[%s4297_s0 + $0x84] sm:$0xf]  ;;  %v2215_v6 = vld [vmem:[%s4297_s0 + $0xb4] sm:$0xf0]  ;;  %v2221_v7 = vld [vmem:[%s4297_s0 + $0x88] sm:$0xf] }
  0x82   :  { %v2974_v8 = vld [vmem:[%s4297_s0 + $0xb8] sm:$0xf0]  ;;  %v2218_v20 = vor.u32 %v2967_v5, %v2215_v6 }
  0x83   :  { %1635 = vmatmul.bf16.gmra.mxu3 %v2358_v18  ;;  %1684 = vmatmul.bf16.gmra.mxu0 %v2362_v19  ;;  %v3141_v19 = vld [vmem:[%s4295_s1 + $0x2b0] sm:$0xff]  ;;  %v3146_v5 = vld [vmem:[%s4295_s1 + $0x2d8] sm:$0xff] }
  0x84   :  { %1951 = vmatpush.bf16.msrb.mxu2 %v3141_v19 }
  0x91   :  { %1542 = vmatmul.bf16.gmra.mxu1 %v2402_v32  ;;  %1591 = vmatmul.bf16.gmra.mxu2 %v2406_v33  ;;  %v2954_v32 = vld [vmem:[%s4297_s0 + $0x1c] sm:$0xf]  ;;  %v2163_v33 = vld [vmem:[%s4297_s0 + $0x4c] sm:$0xf0] }
  0x92   :  { %v2166_v44 = vor.u32 %v2954_v32, %v2163_v33 }
  0x93   :  { %1640 = vmatmul.bf16.gmra.mxu3 %v2410_v34  ;;  %1689 = vmatmul.bf16.gmra.mxu0 %v2414_v35  ;;  %v2169_v34 = vld [vmem:[%s4297_s0 + $0x20] sm:$0xf]  ;;  %v2961_v35 = vld [vmem:[%s4297_s0 + $0x50] sm:$0xf0] }
  0x94   :  { %v2170_v45 = vor.u32 %v2961_v35, %v2169_v34 }
  0x9e   :  { %v3630_v50 = vpop.f32.mrf.mxu1 }
  0xa0   :  { %v3632_v53 = vpop.f32.mrf.mxu0 }
  0xa1   :  { %1547 = vmatmul.bf16.gmra.mxu1 %v2454_v48  ;;  %1596 = vmatmul.bf16.gmra.mxu2 %v2458_v49  ;;  %v1470_v37 = vadd.f32 %v3643_v56, %v3632_v53  ;;  %v3140_v48 = vld [vmem:[%s4295_s1 + $0x2a8] sm:$0xff] }
  0xa2   :  { %v3148_v49 = vld [vmem:[%s4295_s1 + $0x2e8] sm:$0xff]  ;;  %1952 = vmatpush.bf16.msrb.mxu2 %v3140_v48  ;;  %v2273_v48 = vld [vmem:[%s4297_s0 + $0xf0] sm:$0xf] }
  0xa3   :  { %1645 = vmatmul.bf16.gmra.mxu3 %v2462_v51  ;;  %1694 = vmatmul.bf16.gmra.mxu0 %v2466_v52 }
  0xa4   :  { %v1489_v57 = vpop.f32.mrf.mxu2  ;;  %2001 = vmatpush.bf16.msrb.mxu3 %v3148_v49  ;;  %v2987_v49 = vld [vmem:[%s4297_s0 + $0x120] sm:$0xf0] }
  0xa5   :  { %v3646_v58 = vadd.f32 %v3643_v56, %v1489_v57  ;;  %v2274_v0 = vor.u32 %v2987_v49, %v2273_v48 }
  0xa6   :  { %v1499_v59 = vpop.f32.mrf.mxu3  ;;  %v3651_v61 = vpop.f32.mrf.mxu1 }
  0xa7   :  { %v3649_v60 = vadd.f32 %v3643_v56, %v1499_v59 }
  0xa8   :  { %v3653_v62 = vpop.f32.mrf.mxu0  ;;  %2002 = vmatpush.bf16.msrb.mxu3 %v3147_v30  ;;  %v2325_v30 = vld [vmem:[%s4297_s0 + $0x158] sm:$0xf] }
  0xa9   :  { %v1472_v52 = vadd.f32 %v3643_v56, %v3653_v62 }
  0xac   :  { %v1491_v9 = vpop.f32.mrf.mxu2  ;;  %2003 = vmatpush.bf16.msrb.mxu3 %v3146_v5  ;;  %v3013_v5 = vld [vmem:[%s4297_s0 + $0x1f0] sm:$0xf0] }
  0xad   :  { %v3686_v10 = vadd.f32 %v3643_v56, %v1491_v9 }
  0xae   :  { %v1501_v11 = vpop.f32.mrf.mxu3  ;;  %v3691_v15 = vpop.f32.mrf.mxu1 }
  0xaf   :  { %v3689_v14 = vadd.f32 %v3643_v56, %v1501_v11 }
  0xb0   :  { %v3693_v18 = vpop.f32.mrf.mxu0 }
  0xb1   :  { %1552 = vmatmul.bf16.gmra.mxu1 %v2506_v12  ;;  %1601 = vmatmul.bf16.gmra.mxu2 %v2510_v13  ;;  %v1475_v11 = vadd.f32 %v3643_v56, %v3693_v18  ;;  %v3139_v18 = vld [vmem:[%s4295_s1 + $0x2a0] sm:$0xff] }
  0xb2   :  { %1953 = vmatpush.bf16.msrb.mxu2 %v3139_v18  ;;  %v2319_v18 = vld [vmem:[%s4297_s0 + $0x184] sm:$0xf0] }
  0xb3   :  { %1650 = vmatmul.bf16.gmra.mxu3 %v2514_v16  ;;  %1699 = vmatmul.bf16.gmra.mxu0 %v2518_v17  ;;  %v2210_v16 = vor.u32 %v2966_v1, %v2207_v2  ;;  %v2214_v17 = vor.u32 %v2973_v4, %v2213_v3 }
  0xb4   :  { %v1494_v21 = vpop.f32.mrf.mxu2 }
  0xb5   :  { %v3702_v22 = vadd.f32 %v3643_v56, %v1494_v21  ;;  %v2222_v21 = vor.u32 %v2974_v8, %v2221_v7  ;;  %v1482_v7 = vadd.f32 %v3643_v56, %v3651_v61  ;;  %v2311_v61 = vld [vmem:[%s4297_s0 + $0x17c] sm:$0xf0] }
  0xb6   :  { %v1504_v23 = vpop.f32.mrf.mxu3  ;;  %v3707_v25 = vpop.f32.mrf.mxu1 }
  0xb7   :  { %v3705_v24 = vadd.f32 %v3643_v56, %v1504_v23  ;;  %v1487_v49 = vadd.f32 %v3643_v56, %v3707_v25  ;;  %v2369_v25 = vld [vmem:[%s4297_s0 + $0x1b8] sm:$0xf] }
  0xb8   :  { %v3709_v26 = vpop.f32.mrf.mxu0 }
  0xb9   :  { %v1477_v32 = vadd.f32 %v3643_v56, %v3709_v26 }
  0xbc   :  { %v1496_v36 = vpop.f32.mrf.mxu2 }
  0xbd   :  { %v3741_v38 = vadd.f32 %v3643_v56, %v1496_v36 }
  0xbe   :  { %v1506_v39 = vpop.f32.mrf.mxu3  ;;  %v1518_v43 = vpop.f32.mrf.mxu1 }
  0xbf   :  { %v3744_v42 = vadd.f32 %v3643_v56, %v1506_v39  ;;  %v1519_v46 = vadd.f32 %v1518_v43, %v1470_v37  ;;  %v2259_v43 = vld [vmem:[%s4297_s0 + $0x114] sm:$0xf0] }
  0xc0   :  { %v1665_v47 = vpop.f32.mrf.mxu0 }
  0xc1   :  { %1713 = vmatmul.bf16.vlgmr.msra.gmra.mxu1 %v2158_v40  ;;  %1762 = vmatmul.bf16.vlgmr.msra.gmra.mxu2 %v2162_v41  ;;  %v3131_v40 = vld [vmem:[%s4295_s1 + $0x260] sm:$0xff] }
  0xc2   :  { %v2979_v41 = vld [vmem:[%s4297_s0 + $0xe4] sm:$0xf]  ;;  %1904 = vmatpush.bf16.msrb.mxu1 %v3131_v40 }
  0xc3   :  { %1811 = vmatmul.bf16.vlgmr.msra.gmra.mxu3 %v2166_v44  ;;  %1860 = vmatmul.bf16.vlgmr.msra.gmra.mxu0 %v2170_v45  ;;  %v2265_v44 = vld [vmem:[%s4297_s0 + $0xe8] sm:$0xf]  ;;  %v2986_v45 = vld [vmem:[%s4297_s0 + $0x118] sm:$0xf0] }
  0xc4   :  { %v1567_v51 = vpop.f32.mrf.mxu2 }
  0xc5   :  { %v1568_v53 = vadd.f32 %v1567_v51, %v1519_v46  ;;  %v2980_v46 = vld [vmem:[%s4297_s0 + $0xec] sm:$0xf] }
  0xc6   :  { %v1616_v54 = vpop.f32.mrf.mxu3  ;;  %v1520_v55 = vpop.f32.mrf.mxu1 }
  0xc7   :  { %v1617_v57 = vadd.f32 %v1616_v54, %v1568_v53  ;;  %v1521_v59 = vadd.f32 %v1520_v55, %v1472_v52  ;;  %v1480_v52 = vadd.f32 %v3643_v56, %v3630_v50  ;;  %v2262_v55 = vor.u32 %v2979_v41, %v2259_v43  ;;  %v3138_v50 = vld [vmem:[%s4295_s1 + $0x298] sm:$0xff] }
  0xc8   :  { %v1667_v63 = vpop.f32.mrf.mxu0  ;;  %1954 = vmatpush.bf16.msrb.mxu2 %v3138_v50  ;;  %v2377_v50 = vld [vmem:[%s4297_s0 + $0x1c0] sm:$0xf] }
  0xc9   :  { %v3763_v62 = vadd.f32 %v1665_v47, %v1617_v57  ;;  %v2267_v47 = vld [vmem:[%s4297_s0 + $0x11c] sm:$0xf0]  ;;  %v2266_v57 = vor.u32 %v2986_v45, %v2265_v44 }
  0xcc   :  { %v1569_v9 = vpop.f32.mrf.mxu2 }
  0xcd   :  { %v1570_v12 = vadd.f32 %v1569_v9, %v1521_v59 }
  0xce   :  { %v1618_v13 = vpop.f32.mrf.mxu3  ;;  %v1523_v19 = vpop.f32.mrf.mxu1 }
  0xcf   :  { %v1619_v23 = vadd.f32 %v1618_v13, %v1570_v12  ;;  %v1524_v27 = vadd.f32 %v1523_v19, %v1475_v11  ;;  %v3151_v19 = vld [vmem:[%s4295_s1 + $0x300] sm:$0xff] }
  0xd0   :  { %v1670_v28 = vpop.f32.mrf.mxu0  ;;  %2055 = vmatpush.bf16.msrb.mxu0 %v3151_v19 }
  0xd1   :  { %1718 = vmatmul.bf16.gmra.mxu1 %v2210_v16  ;;  %1767 = vmatmul.bf16.gmra.mxu2 %v2214_v17  ;;  %v3785_v29 = vadd.f32 %v1667_v63, %v1619_v23  ;;  %v2270_v63 = vor.u32 %v2980_v46, %v2267_v47  ;;  %v3130_v17 = vld [vmem:[%s4295_s1 + $0x258] sm:$0xff]  ;;  %v2317_v23 = vld [vmem:[%s4297_s0 + $0x150] sm:$0xf] }
  0xd2   :  { %1905 = vmatpush.bf16.msrb.mxu1 %v3130_v17  ;;  %v3145_v47 = vld [vmem:[%s4295_s1 + $0x2d0] sm:$0xff] }
  0xd3   :  { %1816 = vmatmul.bf16.gmra.mxu3 %v2218_v20  ;;  %1865 = vmatmul.bf16.gmra.mxu0 %v2222_v21  ;;  %v2992_v20 = vld [vmem:[%s4297_s0 + $0x14c] sm:$0xf] }
  0xd4   :  { %v1572_v31 = vpop.f32.mrf.mxu2  ;;  %2004 = vmatpush.bf16.msrb.mxu3 %v3145_v47 }
  0xd5   :  { %v1573_v33 = vadd.f32 %v1572_v31, %v1524_v27  ;;  %v2999_v27 = vld [vmem:[%s4297_s0 + $0x180] sm:$0xf0]  ;;  %v3000_v31 = vld [vmem:[%s4297_s0 + $0x188] sm:$0xf0] }
  0xd6   :  { %v1621_v34 = vpop.f32.mrf.mxu3  ;;  %v1525_v35 = vpop.f32.mrf.mxu1  ;;  %v2326_v41 = vor.u32 %v3000_v31, %v2325_v30 }
  0xd7   :  { %v1622_v36 = vadd.f32 %v1621_v34, %v1573_v33  ;;  %v1526_v37 = vadd.f32 %v1525_v35, %v1477_v32  ;;  %v1485_v33 = vadd.f32 %v3643_v56, %v3691_v15  ;;  %v3137_v15 = vld [vmem:[%s4295_s1 + $0x290] sm:$0xff] }
  0xd8   :  { %v1672_v39 = vpop.f32.mrf.mxu0  ;;  %1955 = vmatpush.bf16.msrb.mxu2 %v3137_v15 }
  0xd9   :  { %v3804_v26 = vadd.f32 %v1670_v28, %v1622_v36  ;;  %v2993_v28 = vld [vmem:[%s4297_s0 + $0x154] sm:$0xf]  ;;  %v2314_v36 = vor.u32 %v2992_v20, %v2311_v61 }
  0xda   :  { %v2322_v40 = vor.u32 %v2993_v28, %v2319_v18 }
  0xdc   :  { %v1574_v51 = vpop.f32.mrf.mxu2 }
  0xdd   :  { %v1575_v53 = vadd.f32 %v1574_v51, %v1526_v37  ;;  %v2318_v37 = vor.u32 %v2999_v27, %v2317_v23  ;;  %v3136_v23 = vld [vmem:[%s4295_s1 + $0x288] sm:$0xff] }
  0xde   :  { %v1623_v54 = vpop.f32.mrf.mxu3  ;;  %v1528_v59 = vpop.f32.mrf.mxu1  ;;  %v3144_v27 = vld [vmem:[%s4295_s1 + $0x2c8] sm:$0xff]  ;;  %1956 = vmatpush.bf16.msrb.mxu2 %v3136_v23 }
  0xdf   :  { %v1624_v1 = vadd.f32 %v1623_v54, %v1575_v53  ;;  %v1529_v2 = vadd.f32 %v1528_v59, %v1480_v52  ;;  %v3129_v59 = vld [vmem:[%s4295_s1 + $0x250] sm:$0xff]  ;;  %2005 = vmatpush.bf16.msrb.mxu3 %v3144_v27 }
  0xe0   :  { %v1675_v3 = vpop.f32.mrf.mxu0  ;;  %1906 = vmatpush.bf16.msrb.mxu1 %v3129_v59 }
  0xe1   :  { %1723 = vmatmul.bf16.gmra.mxu1 %v2262_v55  ;;  %1772 = vmatmul.bf16.gmra.mxu2 %v2266_v57  ;;  %v3826_v4 = vadd.f32 %v1672_v39, %v1624_v1  ;;  %v3012_v1 = vld [vmem:[%s4297_s0 + $0x1e8] sm:$0xf0] }
  0xe3   :  { %1821 = vmatmul.bf16.gmra.mxu3 %v2270_v63  ;;  %1870 = vmatmul.bf16.gmra.mxu0 %v2274_v0  ;;  %v3005_v63 = vld [vmem:[%s4297_s0 + $0x1b4] sm:$0xf]  ;;  %v2363_v0 = vld [vmem:[%s4297_s0 + $0x1e4] sm:$0xf0] }
  0xe4   :  { %v1577_v6 = vpop.f32.mrf.mxu2 }
  0xe5   :  { %v1578_v8 = vadd.f32 %v1577_v6, %v1529_v2  ;;  %v3006_v2 = vld [vmem:[%s4297_s0 + $0x1bc] sm:$0xf] }
  0xe6   :  { %v1626_v9 = vpop.f32.mrf.mxu3  ;;  %v1530_v11 = vpop.f32.mrf.mxu1 }
  0xe7   :  { %v1627_v12 = vadd.f32 %v1626_v9, %v1578_v8  ;;  %v1531_v13 = vadd.f32 %v1530_v11, %v1482_v7  ;;  %v2366_v9 = vor.u32 %v3005_v63, %v2363_v0  ;;  %v2370_v11 = vor.u32 %v3012_v1, %v2369_v25  ;;  %v3135_v63 = vld [vmem:[%s4295_s1 + $0x280] sm:$0xff] }
  0xe8   :  { %v1677_v16 = vpop.f32.mrf.mxu0  ;;  %v3143_v0 = vld [vmem:[%s4295_s1 + $0x2c0] sm:$0xff]  ;;  %1957 = vmatpush.bf16.msrb.mxu2 %v3135_v63 }
  0xe9   :  { %v3848_v21 = vadd.f32 %v1675_v3, %v1627_v12  ;;  %v2371_v3 = vld [vmem:[%s4297_s0 + $0x1ec] sm:$0xf0]  ;;  %2006 = vmatpush.bf16.msrb.mxu3 %v3143_v0 }
  0xec   :  { %v1579_v32 = vpop.f32.mrf.mxu2 }
  0xed   :  { %v1580_v34 = vadd.f32 %v1579_v32, %v1531_v13  ;;  %v2374_v13 = vor.u32 %v3006_v2, %v2371_v3 }
  0xee   :  { %v1628_v35 = vpop.f32.mrf.mxu3  ;;  %v1533_v39 = vpop.f32.mrf.mxu1 }
  0xef   :  { %v1629_v43 = vadd.f32 %v1628_v35, %v1580_v34  ;;  %v1534_v44 = vadd.f32 %v1533_v39, %v1485_v33  ;;  %v3128_v34 = vld [vmem:[%s4295_s1 + $0x248] sm:$0xff]  ;;  %v3018_v35 = vld [vmem:[%s4297_s0 + $0x21c] sm:$0xf]  ;;  %v3025_v39 = vld [vmem:[%s4297_s0 + $0x250] sm:$0xf0] }
  0xf0   :  { %v1680_v45 = vpop.f32.mrf.mxu0  ;;  %1907 = vmatpush.bf16.msrb.mxu1 %v3128_v34 }
  0xf1   :  { %1728 = vmatmul.bf16.gmra.mxu1 %v2314_v36  ;;  %1777 = vmatmul.bf16.gmra.mxu2 %v2318_v37  ;;  %v3870_v46 = vadd.f32 %v1677_v16, %v1629_v43  ;;  %v2378_v16 = vor.u32 %v3013_v5, %v2377_v50  ;;  %v2415_v36 = vld [vmem:[%s4297_s0 + $0x24c] sm:$0xf0]  ;;  %v2429_v43 = vld [vmem:[%s4297_s0 + $0x228] sm:$0xf] }
  0xf3   :  { %1826 = vmatmul.bf16.gmra.mxu3 %v2322_v40  ;;  %1875 = vmatmul.bf16.gmra.mxu0 %v2326_v41  ;;  %v3019_v40 = vld [vmem:[%s4297_s0 + $0x224] sm:$0xf]  ;;  %v2423_v41 = vld [vmem:[%s4297_s0 + $0x254] sm:$0xf0] }
  0xf4   :  { %v1582_v48 = vpop.f32.mrf.mxu2 }
  0xf5   :  { %v1583_v51 = vadd.f32 %v1582_v48, %v1534_v44  ;;  %v3026_v44 = vld [vmem:[%s4297_s0 + $0x258] sm:$0xf0]  ;;  %v2418_v48 = vor.u32 %v3018_v35, %v2415_v36 }
  0xf6   :  { %v1631_v52 = vpop.f32.mrf.mxu3  ;;  %v1535_v53 = vpop.f32.mrf.mxu1 }
  0xf7   :  { %v1632_v54 = vadd.f32 %v1631_v52, %v1583_v51  ;;  %v1536_v55 = vadd.f32 %v1535_v53, %v1487_v49  ;;  %v2426_v52 = vor.u32 %v3019_v40, %v2423_v41  ;;  %v2430_v53 = vor.u32 %v3026_v44, %v2429_v43  ;;  %v3044_v44 = vld [vmem:[%s4297_s0 + $0x2ec] sm:$0xf] }
  0xf8   :  { %v1682_v57 = vpop.f32.mrf.mxu0 }
  0xf9   :  { %v3889_v56 = vadd.f32 %v1680_v45, %v1632_v54 }
  0xfc   :  { %v1584_v6 = vpop.f32.mrf.mxu2 }
  0xfd   :  { %v1585_v7 = vadd.f32 %v1584_v6, %v1536_v55  ;;  %v3127_v6 = vld [vmem:[%s4295_s1 + $0x240] sm:$0xff] }
  0xfe   :  { %v1633_v8 = vpop.f32.mrf.mxu3  ;;  %v1538_v12 = vpop.f32.mrf.mxu1  ;;  %1908 = vmatpush.bf16.msrb.mxu1 %v3127_v6 }
  0xff   :  { %v1634_v17 = vadd.f32 %v1633_v8, %v1585_v7  ;;  %v1539_v19 = vadd.f32 %v1538_v12, %v3646_v58  ;;  %v3031_v7 = vld [vmem:[%s4297_s0 + $0x284] sm:$0xf]  ;;  %v2467_v8 = vld [vmem:[%s4297_s0 + $0x2b4] sm:$0xf0]  ;;  %v3032_v12 = vld [vmem:[%s4297_s0 + $0x28c] sm:$0xf] }
 0x100   :  { %v1685_v20 = vpop.f32.mrf.mxu0  ;;  %v2470_v27 = vor.u32 %v3031_v7, %v2467_v8 }
 0x101   :  { %1733 = vmatmul.bf16.gmra.mxu1 %v2366_v9  ;;  %1782 = vmatmul.bf16.gmra.mxu2 %v2370_v11  ;;  %v3910_v61 = vadd.f32 %v1682_v57, %v1634_v17  ;;  %v3038_v11 = vld [vmem:[%s4297_s0 + $0x2b8] sm:$0xf0]  ;;  %v3039_v17 = vld [vmem:[%s4297_s0 + $0x2c0] sm:$0xf0] }
 0x103   :  { %1831 = vmatmul.bf16.gmra.mxu3 %v2374_v13  ;;  %1880 = vmatmul.bf16.gmra.mxu0 %v2378_v16  ;;  %v2475_v13 = vld [vmem:[%s4297_s0 + $0x2bc] sm:$0xf0]  ;;  %v2481_v16 = vld [vmem:[%s4297_s0 + $0x290] sm:$0xf] }
 0x104   :  { %v1587_v28 = vpop.f32.mrf.mxu2 }
 0x105   :  { %v1588_v18 = vadd.f32 %v1587_v28, %v1539_v19 }
 0x106   :  { %v1636_v58 = vpop.f32.mrf.mxu3  ;;  %v1540_v30 = vpop.f32.mrf.mxu1 }
 0x107   :  { %v1637_v31 = vadd.f32 %v1636_v58, %v1588_v18  ;;  %v1541_v32 = vadd.f32 %v1540_v30, %v3686_v10  ;;  %v2421_v10 = vld [vmem:[%s4297_s0 + $0x220] sm:$0xf]  ;;  %v2478_v58 = vor.u32 %v3032_v12, %v2475_v13  ;;  %v2482_v30 = vor.u32 %v3039_v17, %v2481_v16  ;;  %v2955_v12 = vld [vmem:[%s4297_s0 + $0x24] sm:$0xf]  ;;  %v2177_v16 = vld [vmem:[%s4297_s0 + $0x28] sm:$0xf] }
 0x108   :  { %v1687_v33 = vpop.f32.mrf.mxu0  ;;  %v2422_v49 = vor.u32 %v3025_v39, %v2421_v10  ;;  %v2962_v17 = vld [vmem:[%s4297_s0 + $0x58] sm:$0xf0] }
 0x109   :  { %v3928_v37 = vadd.f32 %v1685_v20, %v1637_v31 }
 0x10c   :  { %v1589_v45 = vpop.f32.mrf.mxu2 }
 0x10d   :  { %v1590_v15 = vadd.f32 %v1589_v45, %v1541_v32 }
 0x10e   :  { %v1638_v47 = vpop.f32.mrf.mxu3  ;;  %v1543_v51 = vpop.f32.mrf.mxu1 }
 0x10f   :  { %v1639_v54 = vadd.f32 %v1638_v47, %v1590_v15  ;;  %v1544_v55 = vadd.f32 %v1543_v51, %v3702_v22  ;;  %v2525_v15 = vld [vmem:[%s4297_s0 + $0x2f0] sm:$0xf]  ;;  %v3051_v47 = vld [vmem:[%s4297_s0 + $0x320] sm:$0xf0]  ;;  %v3052_v51 = vld [vmem:[%s4297_s0 + $0x328] sm:$0xf0] }
 0x110   :  { %v1690_v57 = vpop.f32.mrf.mxu0 }
 0x111   :  { %1738 = vmatmul.bf16.gmra.mxu1 %v2418_v48  ;;  %1787 = vmatmul.bf16.gmra.mxu2 %v2422_v49  ;;  %v3949_v59 = vadd.f32 %v1687_v33, %v1639_v54  ;;  %v2527_v48 = vld [vmem:[%s4297_s0 + $0x324] sm:$0xf0]  ;;  %v2533_v49 = vld [vmem:[%s4297_s0 + $0x2f8] sm:$0xf] }
 0x113   :  { %1836 = vmatmul.bf16.gmra.mxu3 %v2426_v52  ;;  %1885 = vmatmul.bf16.gmra.mxu0 %v2430_v53 }
 0x114   :  { %v1592_v25 = vpop.f32.mrf.mxu2 }
 0x115   :  { %v1593_v1 = vadd.f32 %v1592_v25, %v1544_v55  ;;  %v2534_v25 = vor.u32 %v3052_v51, %v2533_v49  ;;  %v2229_v49 = vld [vmem:[%s4297_s0 + $0x90] sm:$0xf]  ;;  %v2975_v51 = vld [vmem:[%s4297_s0 + $0xc0] sm:$0xf0] }
 0x116   :  { %v1641_v22 = vpop.f32.mrf.mxu3  ;;  %v1545_v2 = vpop.f32.mrf.mxu1 }
 0x117   :  { %v1642_v3 = vadd.f32 %v1641_v22, %v1593_v1  ;;  %v1546_v50 = vadd.f32 %v1545_v2, %v3741_v38  ;;  %v2473_v38 = vld [vmem:[%s4297_s0 + $0x288] sm:$0xf] }
 0x118   :  { %v1692_v5 = vpop.f32.mrf.mxu0  ;;  %v2474_v28 = vor.u32 %v3038_v11, %v2473_v38 }
 0x119   :  { %v3967_v9 = vadd.f32 %v1690_v57, %v1642_v3  ;;  %v2526_v57 = vor.u32 %v3051_v47, %v2525_v15 }
 0x11c   :  { %v1594_v19 = vpop.f32.mrf.mxu2 }
 0x11d   :  { %v1595_v20 = vadd.f32 %v1594_v19, %v1546_v50  ;;  %v2179_v19 = vld [vmem:[%s4297_s0 + $0x5c] sm:$0xf0] }
 0x11e   :  { %v1643_v23 = vpop.f32.mrf.mxu3  ;;  %v1548_v18 = vpop.f32.mrf.mxu1 }
 0x11f   :  { %v1644_v31 = vadd.f32 %v1643_v23, %v1595_v20  ;;  %v1549_v32 = vadd.f32 %v1548_v18, %v3649_v60  ;;  %v2519_v60 = vld [vmem:[%s4297_s0 + $0x31c] sm:$0xf0]  ;;  %v2185_v20 = vld [vmem:[%s4297_s0 + $0x30] sm:$0xf]  ;;  %v2963_v23 = vld [vmem:[%s4297_s0 + $0x60] sm:$0xf0] }
 0x120   :  { %v1695_v33 = vpop.f32.mrf.mxu0  ;;  %v2522_v55 = vor.u32 %v3044_v44, %v2519_v60 }
 0x121   :  { %1743 = vmatmul.bf16.gmra.mxu1 %v2470_v27  ;;  %1792 = vmatmul.bf16.gmra.mxu2 %v2474_v28  ;;  %v3988_v34 = vadd.f32 %v1692_v5, %v1644_v31 }
 0x123   :  { %1841 = vmatmul.bf16.gmra.mxu3 %v2478_v58  ;;  %1890 = vmatmul.bf16.gmra.mxu0 %v2482_v30  ;;  %v2178_v30 = vor.u32 %v2962_v17, %v2177_v16 }
 0x124   :  { %v1597_v35 = vpop.f32.mrf.mxu2 }
 0x125   :  { %v1598_v36 = vadd.f32 %v1597_v35, %v1549_v32 }
 0x126   :  { %v1646_v10 = vpop.f32.mrf.mxu3  ;;  %v1550_v39 = vpop.f32.mrf.mxu1 }
 0x127   :  { %v1647_v40 = vadd.f32 %v1646_v10, %v1598_v36  ;;  %v1551_v41 = vadd.f32 %v1550_v39, %v3689_v14  ;;  %v3045_v14 = vld [vmem:[%s4297_s0 + $0x2f4] sm:$0xf] }
 0x128   :  { %v1697_v43 = vpop.f32.mrf.mxu0  ;;  %v2530_v0 = vor.u32 %v3045_v14, %v2527_v48  ;;  %v2223_v14 = vld [vmem:[%s4297_s0 + $0xbc] sm:$0xf0] }
 0x129   :  { %v3997_v45 = vadd.f32 %v1695_v33, %v1647_v40  ;;  %v2186_v33 = vor.u32 %v2963_v23, %v2185_v20  ;;  %v2281_v20 = vld [vmem:[%s4297_s0 + $0xf8] sm:$0xf]  ;;  %v2988_v23 = vld [vmem:[%s4297_s0 + $0x128] sm:$0xf0] }
 0x12c   :  { %v1599_v52 = vpop.f32.mrf.mxu2 }
 0x12d   :  { %v1600_v53 = vadd.f32 %v1599_v52, %v1551_v41  ;;  %v2231_v52 = vld [vmem:[%s4297_s0 + $0xc4] sm:$0xf0] }
 0x12e   :  { %v1648_v54 = vpop.f32.mrf.mxu3  ;;  %v1553_v63 = vpop.f32.mrf.mxu1 }
 0x12f   :  { %v1649_v1 = vadd.f32 %v1648_v54, %v1600_v53  ;;  %v1554_v22 = vadd.f32 %v1553_v63, %v3705_v24  ;;  %v2171_v24 = vld [vmem:[%s4297_s0 + $0x54] sm:$0xf0]  ;;  %v2976_v54 = vld [vmem:[%s4297_s0 + $0xc8] sm:$0xf0] }
 0x130   :  { %v1700_v2 = vpop.f32.mrf.mxu0  ;;  %v2174_v58 = vor.u32 %v2955_v12, %v2171_v24  ;;  %v2237_v53 = vld [vmem:[%s4297_s0 + $0x98] sm:$0xf] }
 0x131   :  { %1748 = vmatmul.bf16.gmra.mxu1 %v2522_v55  ;;  %1797 = vmatmul.bf16.gmra.mxu2 %v2526_v57  ;;  %v4018_v3 = vadd.f32 %v1697_v43, %v1649_v1 }
 0x133   :  { %1846 = vmatmul.bf16.gmra.mxu3 %v2530_v0  ;;  %1895 = vmatmul.bf16.gmra.mxu0 %v2534_v25  ;;  %v2230_v25 = vor.u32 %v2975_v51, %v2229_v49 }
 0x134   :  { %v1602_v50 = vpop.f32.mrf.mxu2 }
 0x135   :  { %v1603_v5 = vadd.f32 %v1602_v50, %v1554_v22 }
 0x136   :  { %v1651_v6 = vpop.f32.mrf.mxu3  ;;  %v1555_v7 = vpop.f32.mrf.mxu1 }
 0x137   :  { %v1652_v8 = vadd.f32 %v1651_v6, %v1603_v5  ;;  %v1556_v38 = vadd.f32 %v1555_v7, %v3744_v42  ;;  %v2956_v42 = vld [vmem:[%s4297_s0 + $0x2c] sm:$0xf] }
 0x138   :  { %v1702_v11 = vpop.f32.mrf.mxu0  ;;  %v2182_v32 = vor.u32 %v2956_v42, %v2179_v19  ;;  %v2275_v42 = vld [vmem:[%s4297_s0 + $0x124] sm:$0xf0] }
 0x139   :  { %v4027_v13 = vadd.f32 %v1700_v2, %v1652_v8  ;;  %v2238_v2 = vor.u32 %v2976_v54, %v2237_v53  ;;  %v2333_v53 = vld [vmem:[%s4297_s0 + $0x160] sm:$0xf]  ;;  %v3001_v54 = vld [vmem:[%s4297_s0 + $0x190] sm:$0xf0] }
 0x13c   :  { %v1604_v27 = vpop.f32.mrf.mxu2 }
 0x13d   :  { %v1605_v28 = vadd.f32 %v1604_v27, %v1556_v38  ;;  %v2283_v27 = vld [vmem:[%s4297_s0 + $0x12c] sm:$0xf0] }
 0x13e   :  { %v1653_v18 = vpop.f32.mrf.mxu3  ;;  %v1714_v31 = vpop.f32.mrf.mxu1 }
 0x13f   :  { %v1654_v35 = vadd.f32 %v1653_v18, %v1605_v28  ;;  %v1715_v36 = vadd.f32 %v1714_v31, %v3763_v62  ;;  %v2968_v62 = vld [vmem:[%s4297_s0 + $0x8c] sm:$0xf]  ;;  %v2289_v28 = vld [vmem:[%s4297_s0 + $0x100] sm:$0xf]  ;;  %v2989_v18 = vld [vmem:[%s4297_s0 + $0x130] sm:$0xf0] }
 0x140   :  { %v1861_v10 = vpop.f32.mrf.mxu0  ;;  %v2226_v0 = vor.u32 %v2968_v62, %v2223_v14 }
 0x141   :  { %1909 = vmatmul.bf16.vlgmr.msrb.gmra.mxu1 %v2174_v58  ;;  %1958 = vmatmul.bf16.vlgmr.msrb.gmra.mxu2 %v2178_v30  ;;  %v4048_v39 = vadd.f32 %v1702_v11, %v1654_v35 }
 0x143   :  { %2007 = vmatmul.bf16.vlgmr.msrb.gmra.mxu3 %v2182_v32  ;;  %2943 = vmatmul.msk.bf16.vlgmr.msrb.gmra.mxu0 %vm1435_vm0, %v2186_v33  ;;  %v2282_v33 = vor.u32 %v2988_v23, %v2281_v20 }
 0x144   :  { %v1763_v40 = vpop.f32.mrf.mxu2 }
 0x145   :  { %v1764_v41 = vadd.f32 %v1763_v40, %v1715_v36 }
 0x146   :  { %v1812_v43 = vpop.f32.mrf.mxu3  ;;  %v1716_v44 = vpop.f32.mrf.mxu1 }
 0x147   :  { %v1813_v60 = vadd.f32 %v1812_v43, %v1764_v41  ;;  %v1717_v15 = vadd.f32 %v1716_v44, %v3785_v29  ;;  %v2969_v29 = vld [vmem:[%s4297_s0 + $0x94] sm:$0xf] }
 0x148   :  { %v1863_v47 = vpop.f32.mrf.mxu0  ;;  %v2234_v22 = vor.u32 %v2969_v29, %v2231_v52  ;;  %v2327_v29 = vld [vmem:[%s4297_s0 + $0x18c] sm:$0xf0] }
 0x149   :  { %v4058_v48 = vadd.f32 %v1861_v10, %v1813_v60  ;;  %v2290_v10 = vor.u32 %v2989_v18, %v2289_v28  ;;  %v2385_v28 = vld [vmem:[%s4297_s0 + $0x1c8] sm:$0xf]  ;;  %v3014_v18 = vld [vmem:[%s4297_s0 + $0x1f8] sm:$0xf0] }
 0x14c   :  { %v1765_v55 = vpop.f32.mrf.mxu2 }
 0x14d   :  { %v1766_v57 = vadd.f32 %v1765_v55, %v1717_v15  ;;  %v2335_v55 = vld [vmem:[%s4297_s0 + $0x194] sm:$0xf0] }
 0x14e   :  { %v1814_v63 = vpop.f32.mrf.mxu3  ;;  %v1719_v1 = vpop.f32.mrf.mxu1 }
 0x14f   :  { %v1815_v50 = vadd.f32 %v1814_v63, %v1766_v57  ;;  %v1720_v5 = vadd.f32 %v1719_v1, %v3804_v26  ;;  %v2981_v26 = vld [vmem:[%s4297_s0 + $0xf4] sm:$0xf]  ;;  %v2341_v57 = vld [vmem:[%s4297_s0 + $0x168] sm:$0xf]  ;;  %v3002_v63 = vld [vmem:[%s4297_s0 + $0x198] sm:$0xf0] }
 0x150   :  { %v1866_v6 = vpop.f32.mrf.mxu0  ;;  %v2278_v32 = vor.u32 %v2981_v26, %v2275_v42 }
 0x151   :  { %1914 = vmatmul.bf16.gmra.mxu1 %v2226_v0  ;;  %1963 = vmatmul.bf16.gmra.mxu2 %v2230_v25  ;;  %v4079_v7 = vadd.f32 %v1863_v47, %v1815_v50 }
 0x153   :  { %2012 = vmatmul.bf16.gmra.mxu3 %v2234_v22  ;;  %2944 = vmatmul.msk.bf16.gmra.mxu0 %vm1435_vm0, %v2238_v2  ;;  %v2334_v2 = vor.u32 %v3001_v54, %v2333_v53 }
 0x154   :  { %v1768_v8 = vpop.f32.mrf.mxu2 }
 0x155   :  { %v1769_v38 = vadd.f32 %v1768_v8, %v1720_v5 }
 0x156   :  { %v1817_v11 = vpop.f32.mrf.mxu3  ;;  %v1721_v12 = vpop.f32.mrf.mxu1 }
 0x157   :  { %v1818_v24 = vadd.f32 %v1817_v11, %v1769_v38  ;;  %v1722_v16 = vadd.f32 %v1721_v12, %v3826_v4  ;;  %v2982_v4 = vld [vmem:[%s4297_s0 + $0xfc] sm:$0xf] }
 0x158   :  { %v1868_v17 = vpop.f32.mrf.mxu0  ;;  %v2286_v36 = vor.u32 %v2982_v4, %v2283_v27  ;;  %v2379_v4 = vld [vmem:[%s4297_s0 + $0x1f4] sm:$0xf0] }
 0x159   :  { %v4089_v19 = vadd.f32 %v1866_v6, %v1818_v24  ;;  %v2342_v6 = vor.u32 %v3002_v63, %v2341_v57  ;;  %v2437_v57 = vld [vmem:[%s4297_s0 + $0x230] sm:$0xf]  ;;  %v3027_v63 = vld [vmem:[%s4297_s0 + $0x260] sm:$0xf0] }
 0x15c   :  { %v1770_v58 = vpop.f32.mrf.mxu2 }
 0x15d   :  { %v1771_v30 = vadd.f32 %v1770_v58, %v1722_v16  ;;  %v2387_v58 = vld [vmem:[%s4297_s0 + $0x1fc] sm:$0xf0] }
 0x15e   :  { %v1819_v31 = vpop.f32.mrf.mxu3  ;;  %v1724_v35 = vpop.f32.mrf.mxu1 }
 0x15f   :  { %v1820_v40 = vadd.f32 %v1819_v31, %v1771_v30  ;;  %v1725_v41 = vadd.f32 %v1724_v35, %v3848_v21  ;;  %v2994_v21 = vld [vmem:[%s4297_s0 + $0x15c] sm:$0xf]  ;;  %v2393_v30 = vld [vmem:[%s4297_s0 + $0x1d0] sm:$0xf]  ;;  %v3015_v31 = vld [vmem:[%s4297_s0 + $0x200] sm:$0xf0] }
 0x160   :  { %v1871_v43 = vpop.f32.mrf.mxu0  ;;  %v2330_v22 = vor.u32 %v2994_v21, %v2327_v29 }
 0x161   :  { %1919 = vmatmul.bf16.gmra.mxu1 %v2278_v32  ;;  %1968 = vmatmul.bf16.gmra.mxu2 %v2282_v33  ;;  %v4110_v44 = vadd.f32 %v1868_v17, %v1820_v40 }
 0x163   :  { %2017 = vmatmul.bf16.gmra.mxu3 %v2286_v36  ;;  %2945 = vmatmul.msk.bf16.gmra.mxu0 %vm1435_vm0, %v2290_v10  ;;  %v2386_v10 = vor.u32 %v3014_v18, %v2385_v28 }
 0x164   :  { %v1773_v60 = vpop.f32.mrf.mxu2 }
 0x165   :  { %v1774_v15 = vadd.f32 %v1773_v60, %v1725_v41 }
 0x166   :  { %v1822_v47 = vpop.f32.mrf.mxu3  ;;  %v1726_v62 = vpop.f32.mrf.mxu1 }
 0x167   :  { %v1823_v14 = vadd.f32 %v1822_v47, %v1774_v15  ;;  %v1727_v49 = vadd.f32 %v1726_v62, %v3870_v46  ;;  %v2995_v46 = vld [vmem:[%s4297_s0 + $0x164] sm:$0xf] }
 0x168   :  { %v1873_v51 = vpop.f32.mrf.mxu0  ;;  %v2338_v5 = vor.u32 %v2995_v46, %v2335_v55  ;;  %v2431_v46 = vld [vmem:[%s4297_s0 + $0x25c] sm:$0xf0] }
 0x169   :  { %v4120_v52 = vadd.f32 %v1871_v43, %v1823_v14  ;;  %v2394_v43 = vor.u32 %v3015_v31, %v2393_v30  ;;  %v2489_v30 = vld [vmem:[%s4297_s0 + $0x298] sm:$0xf]  ;;  %v3040_v31 = vld [vmem:[%s4297_s0 + $0x2c8] sm:$0xf0] }
 0x16c   :  { %v1775_v0 = vpop.f32.mrf.mxu2 }
 0x16d   :  { %v1776_v25 = vadd.f32 %v1775_v0, %v1727_v49  ;;  %v2439_v0 = vld [vmem:[%s4297_s0 + $0x264] sm:$0xf0] }
 0x16e   :  { %v1824_v1 = vpop.f32.mrf.mxu3  ;;  %v1729_v50 = vpop.f32.mrf.mxu1 }
 0x16f   :  { %v1825_v8 = vadd.f32 %v1824_v1, %v1776_v25  ;;  %v1730_v38 = vadd.f32 %v1729_v50, %v3889_v56  ;;  %v3007_v56 = vld [vmem:[%s4297_s0 + $0x1c4] sm:$0xf]  ;;  %v2445_v25 = vld [vmem:[%s4297_s0 + $0x238] sm:$0xf]  ;;  %v3028_v1 = vld [vmem:[%s4297_s0 + $0x268] sm:$0xf0] }
 0x170   :  { %v1876_v11 = vpop.f32.mrf.mxu0  ;;  %v2382_v36 = vor.u32 %v3007_v56, %v2379_v4 }
 0x171   :  { %1924 = vmatmul.bf16.gmra.mxu1 %v2330_v22  ;;  %1973 = vmatmul.bf16.gmra.mxu2 %v2334_v2  ;;  %v4141_v12 = vadd.f32 %v1873_v51, %v1825_v8 }
 0x173   :  { %2022 = vmatmul.bf16.gmra.mxu3 %v2338_v5  ;;  %2946 = vmatmul.msk.bf16.gmra.mxu0 %vm1435_vm0, %v2342_v6  ;;  %v2438_v6 = vor.u32 %v3027_v63, %v2437_v57 }
 0x174   :  { %v1778_v24 = vpop.f32.mrf.mxu2 }
 0x175   :  { %v1779_v16 = vadd.f32 %v1778_v24, %v1730_v38 }
 0x176   :  { %v1827_v17 = vpop.f32.mrf.mxu3  ;;  %v1731_v26 = vpop.f32.mrf.mxu1 }
 0x177   :  { %v1828_v42 = vadd.f32 %v1827_v17, %v1779_v16  ;;  %v1732_v20 = vadd.f32 %v1731_v26, %v3910_v61  ;;  %v3008_v61 = vld [vmem:[%s4297_s0 + $0x1cc] sm:$0xf] }
 0x178   :  { %v1878_v23 = vpop.f32.mrf.mxu0  ;;  %v2390_v41 = vor.u32 %v3008_v61, %v2387_v58  ;;  %v2483_v61 = vld [vmem:[%s4297_s0 + $0x2c4] sm:$0xf0] }
 0x179   :  { %v4151_v27 = vadd.f32 %v1876_v11, %v1828_v42  ;;  %v2446_v11 = vor.u32 %v3028_v1, %v2445_v25  ;;  %v2541_v25 = vld [vmem:[%s4297_s0 + $0x300] sm:$0xf]  ;;  %v3053_v1 = vld [vmem:[%s4297_s0 + $0x330] sm:$0xf0] }
 0x17c   :  { %v1780_v32 = vpop.f32.mrf.mxu2 }
 0x17d   :  { %v1781_v33 = vadd.f32 %v1780_v32, %v1732_v20  ;;  %v2491_v32 = vld [vmem:[%s4297_s0 + $0x2cc] sm:$0xf0] }
 0x17e   :  { %v1829_v35 = vpop.f32.mrf.mxu3  ;;  %v1734_v40 = vpop.f32.mrf.mxu1 }
 0x17f   :  { %v1830_v60 = vadd.f32 %v1829_v35, %v1781_v33  ;;  %v1735_v15 = vadd.f32 %v1734_v40, %v3928_v37  ;;  %v3020_v37 = vld [vmem:[%s4297_s0 + $0x22c] sm:$0xf]  ;;  %v2497_v33 = vld [vmem:[%s4297_s0 + $0x2a0] sm:$0xf]  ;;  %v3041_v35 = vld [vmem:[%s4297_s0 + $0x2d0] sm:$0xf0] }
 0x180   :  { %v1881_v47 = vpop.f32.mrf.mxu0  ;;  %v2434_v5 = vor.u32 %v3020_v37, %v2431_v46 }
 0x181   :  { %1929 = vmatmul.bf16.gmra.mxu1 %v2382_v36  ;;  %1978 = vmatmul.bf16.gmra.mxu2 %v2386_v10  ;;  %v4172_v62 = vadd.f32 %v1878_v23, %v1830_v60 }
 0x183   :  { %2027 = vmatmul.bf16.gmra.mxu3 %v2390_v41  ;;  %2947 = vmatmul.msk.bf16.gmra.mxu0 %vm1435_vm0, %v2394_v43  ;;  %v2490_v43 = vor.u32 %v3040_v31, %v2489_v30 }
 0x184   :  { %v1783_v14 = vpop.f32.mrf.mxu2 }
 0x185   :  { %v1784_v49 = vadd.f32 %v1783_v14, %v1735_v15 }
 0x186   :  { %v1832_v51 = vpop.f32.mrf.mxu3  ;;  %v1736_v21 = vpop.f32.mrf.mxu1 }
 0x187   :  { %v1833_v29 = vadd.f32 %v1832_v51, %v1784_v49  ;;  %v1737_v53 = vadd.f32 %v1736_v21, %v3949_v59  ;;  %v3021_v59 = vld [vmem:[%s4297_s0 + $0x234] sm:$0xf] }
 0x188   :  { %v1883_v54 = vpop.f32.mrf.mxu0  ;;  %v2442_v38 = vor.u32 %v3021_v59, %v2439_v0  ;;  %v2535_v59 = vld [vmem:[%s4297_s0 + $0x32c] sm:$0xf0] }
 0x189   :  { %v4182_v55 = vadd.f32 %v1881_v47, %v1833_v29  ;;  %v2498_v47 = vor.u32 %v3041_v35, %v2497_v33 }
 0x18c   :  { %v1785_v22 = vpop.f32.mrf.mxu2 }
 0x18d   :  { %v1786_v2 = vadd.f32 %v1785_v22, %v1737_v53  ;;  %v2543_v22 = vld [vmem:[%s4297_s0 + $0x334] sm:$0xf0] }
 0x18e   :  { %v1834_v50 = vpop.f32.mrf.mxu3  ;;  %v1739_v8 = vpop.f32.mrf.mxu1 }
 0x18f   :  { %v1835_v24 = vadd.f32 %v1834_v50, %v1786_v2  ;;  %v1740_v16 = vadd.f32 %v1739_v8, %v3967_v9  ;;  %v3033_v9 = vld [vmem:[%s4297_s0 + $0x294] sm:$0xf]  ;;  %v2549_v2 = vld [vmem:[%s4297_s0 + $0x308] sm:$0xf]  ;;  %v3054_v50 = vld [vmem:[%s4297_s0 + $0x338] sm:$0xf0] }
 0x190   :  { %v1886_v17 = vpop.f32.mrf.mxu0  ;;  %v2486_v41 = vor.u32 %v3033_v9, %v2483_v61 }
 0x191   :  { %1934 = vmatmul.bf16.gmra.mxu1 %v2434_v5  ;;  %1983 = vmatmul.bf16.gmra.mxu2 %v2438_v6  ;;  %v4203_v26 = vadd.f32 %v1883_v54, %v1835_v24 }
 0x193   :  { %2032 = vmatmul.bf16.gmra.mxu3 %v2442_v38  ;;  %2948 = vmatmul.msk.bf16.gmra.mxu0 %vm1435_vm0, %v2446_v11  ;;  %v2542_v11 = vor.u32 %v3053_v1, %v2541_v25 }
 0x194   :  { %v1788_v42 = vpop.f32.mrf.mxu2 }
 0x195   :  { %v1789_v20 = vadd.f32 %v1788_v42, %v1740_v16 }
 0x196   :  { %v1837_v23 = vpop.f32.mrf.mxu3  ;;  %v1741_v56 = vpop.f32.mrf.mxu1 }
 0x197   :  { %v1838_v4 = vadd.f32 %v1837_v23, %v1789_v20  ;;  %v1742_v28 = vadd.f32 %v1741_v56, %v3988_v34  ;;  %v3034_v34 = vld [vmem:[%s4297_s0 + $0x29c] sm:$0xf] }
 0x198   :  { %v1888_v18 = vpop.f32.mrf.mxu0  ;;  %v2494_v15 = vor.u32 %v3034_v34, %v2491_v32 }
 0x199   :  { %v4213_v58 = vadd.f32 %v1886_v17, %v1838_v4  ;;  %v2550_v17 = vor.u32 %v3054_v50, %v2549_v2 }
 0x19c   :  { %v1790_v36 = vpop.f32.mrf.mxu2 }
 0x19d   :  { %v1791_v10 = vadd.f32 %v1790_v36, %v1742_v28 }
 0x19e   :  { %v1839_v40 = vpop.f32.mrf.mxu3  ;;  %v1744_v60 = vpop.f32.mrf.mxu1 }
 0x19f   :  { %v1840_v14 = vadd.f32 %v1839_v40, %v1791_v10  ;;  %v1745_v49 = vadd.f32 %v1744_v60, %v3997_v45  ;;  %v3046_v45 = vld [vmem:[%s4297_s0 + $0x2fc] sm:$0xf] }
 0x1a0   :  { %v1891_v51 = vpop.f32.mrf.mxu0  ;;  %v2538_v38 = vor.u32 %v3046_v45, %v2535_v59 }
 0x1a1   :  { %1939 = vmatmul.bf16.gmra.mxu1 %v2486_v41  ;;  %1988 = vmatmul.bf16.gmra.mxu2 %v2490_v43  ;;  %v4234_v21 = vadd.f32 %v1888_v18, %v1840_v14 }
 0x1a3   :  { %2037 = vmatmul.bf16.gmra.mxu3 %v2494_v15  ;;  %2949 = vmatmul.msk.bf16.gmra.mxu0 %vm1435_vm0, %v2498_v47 }
 0x1a4   :  { %v1793_v29 = vpop.f32.mrf.mxu2 }
 0x1a5   :  { %v1794_v53 = vadd.f32 %v1793_v29, %v1745_v49 }
 0x1a6   :  { %v1842_v54 = vpop.f32.mrf.mxu3  ;;  %v1746_v37 = vpop.f32.mrf.mxu1 }
 0x1a7   :  { %v1843_v46 = vadd.f32 %v1842_v54, %v1794_v53  ;;  %v1747_v57 = vadd.f32 %v1746_v37, %v4018_v3  ;;  %v3047_v3 = vld [vmem:[%s4297_s0 + $0x304] sm:$0xf] }
 0x1a8   :  { %v1893_v63 = vpop.f32.mrf.mxu0  ;;  %v2546_v16 = vor.u32 %v3047_v3, %v2543_v22 }
 0x1a9   :  { %v4244_v0 = vadd.f32 %v1891_v51, %v1843_v46 }
 0x1ac   :  { %v1795_v5 = vpop.f32.mrf.mxu2 }
 0x1ad   :  { %v1796_v6 = vadd.f32 %v1795_v5, %v1747_v57 }
 0x1ae   :  { %v1844_v8 = vpop.f32.mrf.mxu3  ;;  %v1749_v24 = vpop.f32.mrf.mxu1 }
 0x1af   :  { %v1845_v42 = vadd.f32 %v1844_v8, %v1796_v6  ;;  %v1750_v20 = vadd.f32 %v1749_v24, %v4027_v13 }
 0x1b0   :  { %v1896_v23 = vpop.f32.mrf.mxu0 }
 0x1b1   :  { %1944 = vmatmul.bf16.gmra.mxu1 %v2538_v38  ;;  %1993 = vmatmul.bf16.gmra.mxu2 %v2542_v11  ;;  %v4265_v56 = vadd.f32 %v1893_v63, %v1845_v42 }
 0x1b3   :  { %2042 = vmatmul.bf16.gmra.mxu3 %v2546_v16  ;;  %2950 = vmatmul.msk.bf16.gmra.mxu0 %vm1435_vm0, %v2550_v17 }
 0x1b4   :  { %v1798_v4 = vpop.f32.mrf.mxu2 }
 0x1b5   :  { %v1799_v28 = vadd.f32 %v1798_v4, %v1750_v20 }
 0x1b6   :  { %v1847_v18 = vpop.f32.mrf.mxu3  ;;  %v1751_v9 = vpop.f32.mrf.mxu1 }
 0x1b7   :  { %v1848_v61 = vadd.f32 %v1847_v18, %v1799_v28  ;;  %v1752_v30 = vadd.f32 %v1751_v9, %v4048_v39 }
 0x1b8   :  { %v1898_v31 = vpop.f32.mrf.mxu0 }
 0x1b9   :  { %v4269_v34 = vadd.f32 %v1896_v23, %v1848_v61 }
 0x1bc   :  { %v1800_v32 = vpop.f32.mrf.mxu2 }
 0x1bd   :  { %v1801_v13 = vadd.f32 %v1800_v32, %v1752_v30 }
 0x1be   :  { %v1849_v33 = vpop.f32.mrf.mxu3  ;;  %v1910_v35 = vpop.f32.mrf.mxu1 }
 0x1bf   :  { %v1850_v36 = vadd.f32 %v1849_v33, %v1801_v13  ;;  %v1911_v41 = vadd.f32 %v1910_v35, %v4058_v48 }
 0x1c0   :  { %v2057_v10 = vpop.f32.mrf.mxu0 }
 0x1c1   :  { %v4271_v40 = vadd.f32 %v1898_v31, %v1850_v36 }
 0x1c4   :  { %v1959_v43 = vpop.f32.mrf.mxu2 }
 0x1c5   :  { %v1960_v60 = vadd.f32 %v1959_v43, %v1911_v41 }
 0x1c6   :  { %v2008_v15 = vpop.f32.mrf.mxu3  ;;  %v1912_v47 = vpop.f32.mrf.mxu1 }
 0x1c7   :  { %v2009_v14 = vadd.f32 %v2008_v15, %v1960_v60  ;;  %v1913_v51 = vadd.f32 %v1912_v47, %v4079_v7 }
 0x1c8   :  { %v2059_v49 = vpop.f32.mrf.mxu0 }
 0x1c9   :  { %v2058_v39 = vadd.f32 %v2057_v10, %v2009_v14 }
 0x1cb   :  { %2097 = vxpose.xlu0.b32.start [1/16] (narrow) %v2058_v39, 16 }
 0x1cc   :  { %v1961_v29 = vpop.f32.mrf.mxu2 }
 0x1cd   :  { %v1962_v53 = vadd.f32 %v1961_v29, %v1913_v51 }
 0x1ce   :  { %v2010_v54 = vpop.f32.mrf.mxu3  ;;  %v1915_v37 = vpop.f32.mrf.mxu1 }
 0x1cf   :  { %v2011_v46 = vadd.f32 %v2010_v54, %v1962_v53  ;;  %v1916_v45 = vadd.f32 %v1915_v37, %v4089_v19 }
 0x1d0   :  { %v2062_v57 = vpop.f32.mrf.mxu0 }
 0x1d1   :  { %v2060_v63 = vadd.f32 %v2059_v49, %v2011_v46 }
 0x1d3   :  { %2098 = vxpose.xlu0.b32.cont [2/16] (narrow) %v2060_v63, 16 }
 0x1d4   :  { %v1964_v48 = vpop.f32.mrf.mxu2 }
 0x1d5   :  { %v1965_v59 = vadd.f32 %v1964_v48, %v1916_v45 }
 0x1d6   :  { %v2013_v25 = vpop.f32.mrf.mxu3  ;;  %v1917_v1 = vpop.f32.mrf.mxu1 }
 0x1d7   :  { %v2014_v3 = vadd.f32 %v2013_v25, %v1965_v59  ;;  %v1918_v7 = vadd.f32 %v1917_v1, %v4110_v44 }
 0x1d8   :  { %v2064_v22 = vpop.f32.mrf.mxu0 }
 0x1d9   :  { %v2063_v2 = vadd.f32 %v2062_v57, %v2014_v3 }
 0x1db   :  { %2099 = vxpose.xlu0.b32.cont [3/16] (narrow) %v2063_v2, 16 }
 0x1dc   :  { %v1966_v50 = vpop.f32.mrf.mxu2 }
 0x1dd   :  { %v1967_v5 = vadd.f32 %v1966_v50, %v1918_v7 }
 0x1de   :  { %v2015_v6 = vpop.f32.mrf.mxu3  ;;  %v1920_v8 = vpop.f32.mrf.mxu1 }
 0x1df   :  { %v2016_v38 = vadd.f32 %v2015_v6, %v1967_v5  ;;  %v1921_v19 = vadd.f32 %v1920_v8, %v4120_v52 }
 0x1e0   :  { %v2067_v11 = vpop.f32.mrf.mxu0 }
 0x1e1   :  { %v2065_v24 = vadd.f32 %v2064_v22, %v2016_v38 }
 0x1e3   :  { %2100 = vxpose.xlu0.b32.cont [4/16] (narrow) %v2065_v24, 16 }
 0x1e4   :  { %v1969_v16 = vpop.f32.mrf.mxu2 }
 0x1e5   :  { %v1970_v17 = vadd.f32 %v1969_v16, %v1921_v19 }
 0x1e6   :  { %v2018_v42 = vpop.f32.mrf.mxu3  ;;  %v1922_v20 = vpop.f32.mrf.mxu1 }
 0x1e7   :  { %v2019_v23 = vadd.f32 %v2018_v42, %v1970_v17  ;;  %v1923_v44 = vadd.f32 %v1922_v20, %v4141_v12 }
 0x1e8   :  { %v2069_v4 = vpop.f32.mrf.mxu0 }
 0x1e9   :  { %v2068_v28 = vadd.f32 %v2067_v11, %v2019_v23 }
 0x1eb   :  { %2101 = vxpose.xlu0.b32.cont [5/16] (narrow) %v2068_v28, 16 }
 0x1ec   :  { %v1971_v18 = vpop.f32.mrf.mxu2 }
 0x1ed   :  { %v1972_v9 = vadd.f32 %v1971_v18, %v1923_v44 }
 0x1ee   :  { %v2020_v61 = vpop.f32.mrf.mxu3  ;;  %v1925_v30 = vpop.f32.mrf.mxu1 }
 0x1ef   :  { %v2021_v31 = vadd.f32 %v2020_v61, %v1972_v9  ;;  %v1926_v52 = vadd.f32 %v1925_v30, %v4151_v27 }
 0x1f0   :  { %v2072_v32 = vpop.f32.mrf.mxu0 }
 0x1f1   :  { %v2070_v13 = vadd.f32 %v2069_v4, %v2021_v31 }
 0x1f3   :  { %2102 = vxpose.xlu0.b32.cont [6/16] (narrow) %v2070_v13, 16 }
 0x1f4   :  { %v1974_v33 = vpop.f32.mrf.mxu2 }
 0x1f5   :  { %v1975_v35 = vadd.f32 %v1974_v33, %v1926_v52 }
 0x1f6   :  { %v2023_v36 = vpop.f32.mrf.mxu3  ;;  %v1927_v10 = vpop.f32.mrf.mxu1 }
 0x1f7   :  { %v2024_v41 = vadd.f32 %v2023_v36, %v1975_v35  ;;  %v1928_v12 = vadd.f32 %v1927_v10, %v4172_v62 }
 0x1f8   :  { %v2074_v43 = vpop.f32.mrf.mxu0 }
 0x1f9   :  { %v2073_v60 = vadd.f32 %v2072_v32, %v2024_v41 }
 0x1fb   :  { %2103 = vxpose.xlu0.b32.cont [7/16] (narrow) %v2073_v60, 16 }
 0x1fc   :  { %v1976_v15 = vpop.f32.mrf.mxu2 }
 0x1fd   :  { %v1977_v47 = vadd.f32 %v1976_v15, %v1928_v12 }
 0x1fe   :  { %v2025_v14 = vpop.f32.mrf.mxu3  ;;  %v1930_v49 = vpop.f32.mrf.mxu1 }
 0x1ff   :  { %v2026_v39 = vadd.f32 %v2025_v14, %v1977_v47  ;;  %v1931_v27 = vadd.f32 %v1930_v49, %v4182_v55 }
 0x200   :  { %v2077_v51 = vpop.f32.mrf.mxu0 }
 0x201   :  { %v2075_v29 = vadd.f32 %v2074_v43, %v2026_v39 }
 0x203   :  { %2104 = vxpose.xlu0.b32.cont [8/16] (narrow) %v2075_v29, 16 }
 0x204   :  { %v1979_v53 = vpop.f32.mrf.mxu2 }
 0x205   :  { %v1980_v54 = vadd.f32 %v1979_v53, %v1931_v27 }
 0x206   :  { %v2028_v37 = vpop.f32.mrf.mxu3  ;;  %v1932_v46 = vpop.f32.mrf.mxu1 }
 0x207   :  { %v2029_v57 = vadd.f32 %v2028_v37, %v1980_v54  ;;  %v1933_v62 = vadd.f32 %v1932_v46, %v4203_v26 }
 0x208   :  { %v2079_v63 = vpop.f32.mrf.mxu0 }
 0x209   :  { %v2078_v45 = vadd.f32 %v2077_v51, %v2029_v57 }
 0x20b   :  { %2105 = vxpose.xlu0.b32.cont [9/16] (narrow) %v2078_v45, 16 }
 0x20c   :  { %v1981_v48 = vpop.f32.mrf.mxu2 }
 0x20d   :  { %v1982_v59 = vadd.f32 %v1981_v48, %v1933_v62 }
 0x20e   :  { %v2030_v25 = vpop.f32.mrf.mxu3  ;;  %v1935_v1 = vpop.f32.mrf.mxu1 }
 0x20f   :  { %v2031_v3 = vadd.f32 %v2030_v25, %v1982_v59  ;;  %v1936_v55 = vadd.f32 %v1935_v1, %v4213_v58 }
 0x210   :  { %v2082_v22 = vpop.f32.mrf.mxu0 }
 0x211   :  { %v2080_v2 = vadd.f32 %v2079_v63, %v2031_v3 }
 0x213   :  { %2106 = vxpose.xlu0.b32.cont [10/16] (narrow) %v2080_v2, 16 }
 0x214   :  { %v1984_v7 = vpop.f32.mrf.mxu2 }
 0x215   :  { %v1985_v50 = vadd.f32 %v1984_v7, %v1936_v55 }
 0x216   :  { %v2033_v5 = vpop.f32.mrf.mxu3  ;;  %v1937_v6 = vpop.f32.mrf.mxu1 }
 0x217   :  { %v2034_v8 = vadd.f32 %v2033_v5, %v1985_v50  ;;  %v1938_v26 = vadd.f32 %v1937_v6, %v4234_v21 }
 0x218   :  { %v2084_v38 = vpop.f32.mrf.mxu0 }
 0x219   :  { %v2083_v11 = vadd.f32 %v2082_v22, %v2034_v8 }
 0x21b   :  { %2107 = vxpose.xlu0.b32.cont [11/16] (narrow) %v2083_v11, 16 }
 0x21c   :  { %v1986_v24 = vpop.f32.mrf.mxu2 }
 0x21d   :  { %v1987_v19 = vadd.f32 %v1986_v24, %v1938_v26 }
 0x21e   :  { %v2035_v16 = vpop.f32.mrf.mxu3  ;;  %v1940_v17 = vpop.f32.mrf.mxu1 }
 0x21f   :  { %v2036_v42 = vadd.f32 %v2035_v16, %v1987_v19  ;;  %v1941_v58 = vadd.f32 %v1940_v17, %v4244_v0 }
 0x220   :  { %v2087_v23 = vpop.f32.mrf.mxu0 }
 0x221   :  { %v2085_v20 = vadd.f32 %v2084_v38, %v2036_v42 }
 0x223   :  { %2108 = vxpose.xlu0.b32.cont [12/16] (narrow) %v2085_v20, 16 }
 0x224   :  { %v1989_v4 = vpop.f32.mrf.mxu2 }
 0x225   :  { %v1990_v28 = vadd.f32 %v1989_v4, %v1941_v58 }
 0x226   :  { %v2038_v44 = vpop.f32.mrf.mxu3  ;;  %v1942_v18 = vpop.f32.mrf.mxu1 }
 0x227   :  { %v2039_v9 = vadd.f32 %v2038_v44, %v1990_v28  ;;  %v1943_v30 = vadd.f32 %v1942_v18, %v4265_v56 }
 0x228   :  { %v2089_v21 = vpop.f32.mrf.mxu0 }
 0x229   :  { %v2088_v61 = vadd.f32 %v2087_v23, %v2039_v9 }
 0x22b   :  { %2109 = vxpose.xlu0.b32.cont [13/16] (narrow) %v2088_v61, 16 }
 0x22c   :  { %v1991_v31 = vpop.f32.mrf.mxu2 }
 0x22d   :  { %v1992_v32 = vadd.f32 %v1991_v31, %v1943_v30 }
 0x22e   :  { %v2040_v13 = vpop.f32.mrf.mxu3  ;;  %v1945_v52 = vpop.f32.mrf.mxu1 }
 0x22f   :  { %v2041_v33 = vadd.f32 %v2040_v13, %v1992_v32  ;;  %v1946_v36 = vadd.f32 %v1945_v52, %v4269_v34 }
 0x230   :  { %v2092_v43 = vpop.f32.mrf.mxu0 }
 0x231   :  { %v2090_v35 = vadd.f32 %v2089_v21, %v2041_v33 }
 0x233   :  { %2110 = vxpose.xlu0.b32.cont [14/16] (narrow) %v2090_v35, 16 }
 0x234   :  { %v1994_v0 = vpop.f32.mrf.mxu2 }
 0x235   :  { %v1995_v10 = vadd.f32 %v1994_v0, %v1946_v36 }
 0x236   :  { %v2043_v41 = vpop.f32.mrf.mxu3  ;;  %v1947_v12 = vpop.f32.mrf.mxu1 }
 0x237   :  { %v2044_v60 = vadd.f32 %v2043_v41, %v1995_v10  ;;  %v1948_v56 = vadd.f32 %v1947_v12, %v4271_v40 }
 0x238   :  { %v2094_v51 = vpop.f32.mrf.mxu0 }
 0x239   :  { %v2093_v15 = vadd.f32 %v2092_v43, %v2044_v60 }
 0x23b   :  { %2111 = vxpose.xlu0.b32.cont [15/16] (narrow) %v2093_v15, 16 }
 0x23c   :  { %v1996_v47 = vpop.f32.mrf.mxu2 }
 0x23d   :  { %v1997_v14 = vadd.f32 %v1996_v47, %v1948_v56 }
 0x23e   :  { %v2045_v49 = vpop.f32.mrf.mxu3 }
 0x23f   :  { %v2046_v39 = vadd.f32 %v2045_v49, %v1997_v14 }
 0x241   :  { %v2095_v29 = vadd.f32 %v2094_v51, %v2046_v39 }
 0x243   :  { %2112 = vxpose.xlu0.b32.end [16/16] (narrow) %v2095_v29, 16 }
 0x26f   :  { %v2113_v27 = vpop.trf.xlu0 }
 0x270   :  { %2129 = vst [vmem:[%s4298_s3] sm:$0xff] %v2113_v27 }
 0x277   :  { %v2114_v34 = vpop.trf.xlu0 }
 0x278   :  { %2130 = vst [vmem:[%s4298_s3 + $0x8] sm:$0x3] %v2114_v34 }

</bundles_post_ra>
